<compile_context>
chip_gen: v7x
topology: tpu7x:2x2x1
jax: 0.10.0
libtpu: 0.0.40
codegen_flags: <defaults>
</compile_context>

<pallas_src>
import jax
import jax.numpy as jnp
from jax.experimental import pallas as pl
from jax.experimental.pallas import tpu as pltpu


# ----------------------------- config (small, synthetic) -----------------------------
BATCH = 2
IN_CH = 3
IMG = 16
PATCH = 4
NUM_PATCHES = (IMG // PATCH) ** 2          # 16
SEQ = NUM_PATCHES + 1                      # 17 (CLS + patches)
SEQ_PAD = 24                               # padded to a multiple of 8 sublanes
CLS_ROW = NUM_PATCHES                      # CLS token lives at row 16 (attention is order-free)
HIDDEN = 32
HEADS = 4
HEAD_DIM = HIDDEN // HEADS                 # 8
INTER = 64
LAYERS = 2
PROJ = 16
PATCH_DIM = IN_CH * PATCH * PATCH          # 48
LN_EPS = 1e-5
ATTN_SCALE = HEAD_DIM ** -0.5


# ----------------------------- fused Pallas kernel -----------------------------
def _clip_vision_kernel(
    patches_ref,            # (NUM_PATCHES, PATCH_DIM)   this image's im2col patches
    patch_w_ref,            # (PATCH_DIM, HIDDEN)        conv weight (bias=False in CLIP)
    cls_ref,                # (1, HIDDEN)                class_emb + pos_emb[0]
    posp_ref,               # (NUM_PATCHES, HIDDEN)      pos_emb[1:]
    pre_g_ref, pre_b_ref,   # (1, HIDDEN)
    ln1_g_ref, ln1_b_ref,   # (LAYERS, 1, HIDDEN)
    qkv_w_ref, qkv_b_ref,   # (LAYERS, HIDDEN, 3*HIDDEN), (LAYERS, 1, 3*HIDDEN)
    o_w_ref, o_b_ref,       # (LAYERS, HIDDEN, HIDDEN),   (LAYERS, 1, HIDDEN)
    ln2_g_ref, ln2_b_ref,   # (LAYERS, 1, HIDDEN)
    fc1_w_ref, fc1_b_ref,   # (LAYERS, HIDDEN, INTER),    (LAYERS, 1, INTER)
    fc2_w_ref, fc2_b_ref,   # (LAYERS, INTER, HIDDEN),    (LAYERS, 1, HIDDEN)
    post_g_ref, post_b_ref, # (1, HIDDEN)
    proj_w_ref,             # (HIDDEN, PROJ)              visual_projection (no bias)
    out_ref,                # (1, 1, PROJ)
    x_ref,                  # VMEM scratch (SEQ_PAD, HIDDEN): resident activations
):
    f32 = jnp.float32

    def layernorm(x, g, b):
        m = jnp.mean(x, axis=-1, keepdims=True)
        v = jnp.mean(jnp.square(x - m), axis=-1, keepdims=True)
        return (x - m) * jax.lax.rsqrt(v + LN_EPS) * g + b

    # ---- embeddings: patch conv (stride==kernel, as matmul) + positional, CLS at row 16 ----
    patch_emb = jnp.dot(patches_ref[...], patch_w_ref[...],
                        preferred_element_type=f32) + posp_ref[...]          # (nP, D)
    x_ref[...] = jnp.zeros((SEQ_PAD, HIDDEN), f32)
    x_ref[pl.ds(0, NUM_PATCHES), :] = patch_emb
    x_ref[pl.ds(CLS_ROW, 1), :] = cls_ref[...]

    # ---- pre_layrnorm ----
    x_ref[...] = layernorm(x_ref[...], pre_g_ref[...], pre_b_ref[...])

    # additive key mask for padded token rows (>= SEQ); hoisted out of the layer loop
    kmask = jax.lax.broadcasted_iota(jnp.int32, (SEQ_PAD, SEQ_PAD), 1) < SEQ
    kbias = jnp.where(kmask, 0.0, -1e30).astype(f32)                         # (S_PAD, S_PAD)

    for l in range(LAYERS):
        # -------- self-attention block --------
        xv = x_ref[...]
        h = layernorm(xv, ln1_g_ref[l], ln1_b_ref[l])
        # fused QKV projection: one MXU contraction, lane-dense (3*HIDDEN) output
        qkv = jnp.dot(h, qkv_w_ref[l], preferred_element_type=f32) + qkv_b_ref[l]  # (S_PAD, 3D)
        o_w_l = o_w_ref[l]                                                   # (D, D)

        attn = jnp.zeros((SEQ_PAD, HIDDEN), f32)
        for hd in range(HEADS):
            lo = hd * HEAD_DIM
            q = qkv[:, lo:lo + HEAD_DIM] * ATTN_SCALE
            k = qkv[:, HIDDEN + lo:HIDDEN + lo + HEAD_DIM]
            v = qkv[:, 2 * HIDDEN + lo:2 * HIDDEN + lo + HEAD_DIM]
            # contract last dims directly (no explicit transpose of K)
            s = jax.lax.dot_general(q, k, (((1,), (1,)), ((), ())),
                                    preferred_element_type=f32)              # (S_PAD, S_PAD)
            s = s + kbias
            s = s - jnp.max(s, axis=-1, keepdims=True)
            p = jnp.exp(s)
            p = p * pl.reciprocal(jnp.sum(p, axis=-1, keepdims=True), approx=True)
            c = jnp.dot(p, v, preferred_element_type=f32)                    # (S_PAD, Dh)
            # accumulate the output projection per head (avoids a lane concat)
            attn = attn + jnp.dot(c, o_w_l[lo:lo + HEAD_DIM, :],
                                  preferred_element_type=f32)                # (S_PAD, D)
        # residual add fused here
        x_ref[...] = xv + attn + o_b_ref[l]

        # -------- MLP block (quick_gelu) --------
        xv = x_ref[...]
        h = layernorm(xv, ln2_g_ref[l], ln2_b_ref[l])
        h = jnp.dot(h, fc1_w_ref[l], preferred_element_type=f32) + fc1_b_ref[l]
        h = h * jax.nn.sigmoid(1.702 * h)                                    # quick_gelu
        h = jnp.dot(h, fc2_w_ref[l], preferred_element_type=f32) + fc2_b_ref[l]
        x_ref[...] = xv + h

    # ---- CLS pooling -> post_layernorm -> visual_projection (no bias) ----
    cls_tok = x_ref[pl.ds(CLS_ROW, 1), :]                                    # (1, D)
    pooled = layernorm(cls_tok, post_g_ref[...], post_b_ref[...])
    feat = jnp.dot(pooled, proj_w_ref[...], preferred_element_type=f32)      # (1, PROJ)
    out_ref[...] = feat.reshape(1, 1, PROJ).astype(out_ref.dtype)


def _const_spec(shape):
    n = len(shape)
    return pl.BlockSpec(shape, lambda b, _n=n: (0,) * _n)


# ----------------------------- parameters -----------------------------
def init_params(key):
    keys = list(jax.random.split(key, 16 + LAYERS * 16))
    kit = iter(keys)

    def nrm(shape, std=0.02):
        return jax.random.normal(next(kit), shape, jnp.float32) * std

    params = {
        "patch_w": nrm((PATCH_DIM, HIDDEN)),          # conv weight, flattened (C,kh,kw) x D
        "class_emb": nrm((1, 1, HIDDEN)),
        "pos_emb": nrm((SEQ, HIDDEN)),
        "pre_ln_g": 1.0 + nrm((1, HIDDEN)),
        "pre_ln_b": nrm((1, HIDDEN)),
        "post_ln_g": 1.0 + nrm((1, HIDDEN)),
        "post_ln_b": nrm((1, HIDDEN)),
        "proj_w": nrm((HIDDEN, PROJ)),                # visual_projection (no bias)
        "layers": [],
    }
    for _ in range(LAYERS):
        params["layers"].append({
            "ln1_g": 1.0 + nrm((1, HIDDEN)), "ln1_b": nrm((1, HIDDEN)),
            "q_w": nrm((HIDDEN, HIDDEN)), "q_b": nrm((1, HIDDEN)),
            "k_w": nrm((HIDDEN, HIDDEN)), "k_b": nrm((1, HIDDEN)),
            "v_w": nrm((HIDDEN, HIDDEN)), "v_b": nrm((1, HIDDEN)),
            "o_w": nrm((HIDDEN, HIDDEN)), "o_b": nrm((1, HIDDEN)),
            "ln2_g": 1.0 + nrm((1, HIDDEN)), "ln2_b": nrm((1, HIDDEN)),
            "fc1_w": nrm((HIDDEN, INTER)), "fc1_b": nrm((1, INTER)),
            "fc2_w": nrm((INTER, HIDDEN)), "fc2_b": nrm((1, HIDDEN)),
        })
    return params


# ----------------------------- model wrapper -----------------------------
@jax.jit
def get_image_features(image, params):
    B = image.shape[0]
    # im2col for stride==kernel conv: pure reshape/transpose (no FLOPs), done in glue.
    nh = IMG // PATCH
    x = image.reshape(B, IN_CH, nh, PATCH, nh, PATCH)
    x = x.transpose(0, 2, 4, 1, 3, 5)                   # (B, nh, nw, C, ph, pw)
    patches = x.reshape(B * NUM_PATCHES, PATCH_DIM)

    # parameter prep (constant-folded under jit): fused QKV, CLS+pos0, stacked layers
    cls_tok = params["class_emb"].reshape(1, HIDDEN) + params["pos_emb"][0:1]
    pos_patch = params["pos_emb"][1:]

    def stack(name):
        return jnp.stack([lp[name] for lp in params["layers"]], axis=0)

    qkv_w = jnp.stack([jnp.concatenate([lp["q_w"], lp["k_w"], lp["v_w"]], axis=1)
                       for lp in params["layers"]], axis=0)          # (L, D, 3D)
    qkv_b = jnp.stack([jnp.concatenate([lp["q_b"], lp["k_b"], lp["v_b"]], axis=1)
                       for lp in params["layers"]], axis=0)          # (L, 1, 3D)

    inputs = [
        patches, params["patch_w"], cls_tok, pos_patch,
        params["pre_ln_g"], params["pre_ln_b"],
        stack("ln1_g"), stack("ln1_b"), qkv_w, qkv_b,
        stack("o_w"), stack("o_b"),
        stack("ln2_g"), stack("ln2_b"),
        stack("fc1_w"), stack("fc1_b"), stack("fc2_w"), stack("fc2_b"),
        params["post_ln_g"], params["post_ln_b"], params["proj_w"],
    ]

    in_specs = [pl.BlockSpec((NUM_PATCHES, PATCH_DIM), lambda b: (b, 0))]
    in_specs += [_const_spec(a.shape) for a in inputs[1:]]

    feats = pl.pallas_call(
        _clip_vision_kernel,
        out_shape=jax.ShapeDtypeStruct((B, 1, PROJ), jnp.float32),
        grid=(B,),
        in_specs=in_specs,
        out_specs=pl.BlockSpec((1, 1, PROJ), lambda b: (b, 0, 0)),
        scratch_shapes=[pltpu.VMEM((SEQ_PAD, HIDDEN), jnp.float32)],
        compiler_params=pltpu.CompilerParams(dimension_semantics=("parallel",)),
    )(*inputs)
    return feats.reshape(B, PROJ)


# ----------------------------- main -----------------------------
if __name__ == "__main__":
    key = jax.random.PRNGKey(0)
    k_img, k_par = jax.random.split(key)
    image = jax.random.normal(k_img, (BATCH, IN_CH, IMG, IMG), jnp.float32)  # NCHW, as PyTorch
    params = init_params(k_par)

    feats = get_image_features(image, params)
    jax.block_until_ready(feats)
    assert feats.shape == (BATCH, PROJ) and feats.dtype == jnp.float32
    assert bool(jnp.all(jnp.isfinite(feats)))
    print("KERNEL_OK")
</pallas_src>

<mosaic_0001>
module attributes {stable_mosaic.version = 11 : i64} {
  func.func @_clip_vision_kernel(%arg0: i32, %arg1: memref<16x48xf32, #tpu.memory_space<vmem>>, %arg2: memref<48x32xf32, #tpu.memory_space<vmem>>, %arg3: memref<1x32xf32, #tpu.memory_space<vmem>>, %arg4: memref<16x32xf32, #tpu.memory_space<vmem>>, %arg5: memref<1x32xf32, #tpu.memory_space<vmem>>, %arg6: memref<1x32xf32, #tpu.memory_space<vmem>>, %arg7: memref<2x1x32xf32, #tpu.memory_space<vmem>>, %arg8: memref<2x1x32xf32, #tpu.memory_space<vmem>>, %arg9: memref<2x32x96xf32, #tpu.memory_space<vmem>>, %arg10: memref<2x1x96xf32, #tpu.memory_space<vmem>>, %arg11: memref<2x32x32xf32, #tpu.memory_space<vmem>>, %arg12: memref<2x1x32xf32, #tpu.memory_space<vmem>>, %arg13: memref<2x1x32xf32, #tpu.memory_space<vmem>>, %arg14: memref<2x1x32xf32, #tpu.memory_space<vmem>>, %arg15: memref<2x32x64xf32, #tpu.memory_space<vmem>>, %arg16: memref<2x1x64xf32, #tpu.memory_space<vmem>>, %arg17: memref<2x64x32xf32, #tpu.memory_space<vmem>>, %arg18: memref<2x1x32xf32, #tpu.memory_space<vmem>>, %arg19: memref<1x32xf32, #tpu.memory_space<vmem>>, %arg20: memref<1x32xf32, #tpu.memory_space<vmem>>, %arg21: memref<32x16xf32, #tpu.memory_space<vmem>>, %arg22: memref<1x1x16xf32, #tpu.memory_space<vmem>>, %arg23: memref<24x32xf32, #tpu.memory_space<vmem>>) attributes {dimension_semantics = [#tpu.dimension_semantics<parallel>], iteration_bounds = array<i64: 2>, scalar_prefetch = 0 : i64, scratch_operands = 1 : i64, tpu.core_type = #tpu.core_type<tc>, window_params = [{transform_indices = @transform_0, window_bounds = array<i64: 16, 48>}, {pipeline_mode = #tpu.pipeline_mode<synchronous>, transform_indices = @transform_1, window_bounds = array<i64: 48, 32>}, {pipeline_mode = #tpu.pipeline_mode<synchronous>, transform_indices = @transform_2, window_bounds = array<i64: 1, 32>}, {pipeline_mode = #tpu.pipeline_mode<synchronous>, transform_indices = @transform_3, window_bounds = array<i64: 16, 32>}, {pipeline_mode = #tpu.pipeline_mode<synchronous>, transform_indices = @transform_4, window_bounds = array<i64: 1, 32>}, {pipeline_mode = #tpu.pipeline_mode<synchronous>, transform_indices = @transform_5, window_bounds = array<i64: 1, 32>}, {pipeline_mode = #tpu.pipeline_mode<synchronous>, transform_indices = @transform_6, window_bounds = array<i64: 2, 1, 32>}, {pipeline_mode = #tpu.pipeline_mode<synchronous>, transform_indices = @transform_7, window_bounds = array<i64: 2, 1, 32>}, {pipeline_mode = #tpu.pipeline_mode<synchronous>, transform_indices = @transform_8, window_bounds = array<i64: 2, 32, 96>}, {pipeline_mode = #tpu.pipeline_mode<synchronous>, transform_indices = @transform_9, window_bounds = array<i64: 2, 1, 96>}, {pipeline_mode = #tpu.pipeline_mode<synchronous>, transform_indices = @transform_10, window_bounds = array<i64: 2, 32, 32>}, {pipeline_mode = #tpu.pipeline_mode<synchronous>, transform_indices = @transform_11, window_bounds = array<i64: 2, 1, 32>}, {pipeline_mode = #tpu.pipeline_mode<synchronous>, transform_indices = @transform_12, window_bounds = array<i64: 2, 1, 32>}, {pipeline_mode = #tpu.pipeline_mode<synchronous>, transform_indices = @transform_13, window_bounds = array<i64: 2, 1, 32>}, {pipeline_mode = #tpu.pipeline_mode<synchronous>, transform_indices = @transform_14, window_bounds = array<i64: 2, 32, 64>}, {pipeline_mode = #tpu.pipeline_mode<synchronous>, transform_indices = @transform_15, window_bounds = array<i64: 2, 1, 64>}, {pipeline_mode = #tpu.pipeline_mode<synchronous>, transform_indices = @transform_16, window_bounds = array<i64: 2, 64, 32>}, {pipeline_mode = #tpu.pipeline_mode<synchronous>, transform_indices = @transform_17, window_bounds = array<i64: 2, 1, 32>}, {pipeline_mode = #tpu.pipeline_mode<synchronous>, transform_indices = @transform_18, window_bounds = array<i64: 1, 32>}, {pipeline_mode = #tpu.pipeline_mode<synchronous>, transform_indices = @transform_19, window_bounds = array<i64: 1, 32>}, {pipeline_mode = #tpu.pipeline_mode<synchronous>, transform_indices = @transform_20, window_bounds = array<i64: 32, 16>}, {transform_indices = @transform_21, window_bounds = array<i64: 1, 1, 16>}]} {
    %c0 = arith.constant 0 : index
    %c0_0 = arith.constant 0 : index
    %0 = vector.load %arg1[%c0, %c0_0] : memref<16x48xf32, #tpu.memory_space<vmem>>, vector<16x48xf32>
    %c0_1 = arith.constant 0 : index
    %c0_2 = arith.constant 0 : index
    %1 = vector.load %arg2[%c0_1, %c0_2] : memref<48x32xf32, #tpu.memory_space<vmem>>, vector<48x32xf32>
    %cst = arith.constant dense<0.000000e+00> : vector<16x32xf32>
    %2 = tpu.matmul %0, %1, %cst {dimension_numbers = #tpu.dot_dimension_numbers<[1], [0], [0], [1], [0, 0, 1, 1], [], []>} : vector<16x48xf32>, vector<48x32xf32>, vector<16x32xf32> -> vector<16x32xf32>
    %c0_3 = arith.constant 0 : index
    %c0_4 = arith.constant 0 : index
    %3 = vector.load %arg4[%c0_3, %c0_4] : memref<16x32xf32, #tpu.memory_space<vmem>>, vector<16x32xf32>
    %4 = arith.addf %2, %3 : vector<16x32xf32>
    %cst_5 = arith.constant 0.000000e+00 : f32
    %5 = vector.broadcast %cst_5 : f32 to vector<24x32xf32>
    %c0_6 = arith.constant 0 : index
    %c0_7 = arith.constant 0 : index
    %6 = vector.load %arg23[%c0_6, %c0_7] : memref<24x32xf32, #tpu.memory_space<vmem>>, vector<24x32xf32>
    tpu.vector_store %arg23[%c0_6, %c0_7], %5 {strides = array<i32>} : memref<24x32xf32, #tpu.memory_space<vmem>>, vector<24x32xf32>,
    %c0_8 = arith.constant 0 : index
    %c0_9 = arith.constant 0 : index
    %7 = vector.load %arg23[%c0_8, %c0_9] : memref<24x32xf32, #tpu.memory_space<vmem>>, vector<16x32xf32>
    tpu.vector_store %arg23[%c0_8, %c0_9], %4 {strides = array<i32>} : memref<24x32xf32, #tpu.memory_space<vmem>>, vector<16x32xf32>,
    %c0_10 = arith.constant 0 : index
    %c0_11 = arith.constant 0 : index
    %8 = vector.load %arg3[%c0_10, %c0_11] : memref<1x32xf32, #tpu.memory_space<vmem>>, vector<1x32xf32>
    %c16 = arith.constant 16 : index
    %c0_12 = arith.constant 0 : index
    %9 = vector.load %arg23[%c16, %c0_12] : memref<24x32xf32, #tpu.memory_space<vmem>>, vector<1x32xf32>
    tpu.vector_store %arg23[%c16, %c0_12], %8 {strides = array<i32>} : memref<24x32xf32, #tpu.memory_space<vmem>>, vector<1x32xf32>,
    %c0_13 = arith.constant 0 : index
    %c0_14 = arith.constant 0 : index
    %10 = vector.load %arg23[%c0_13, %c0_14] : memref<24x32xf32, #tpu.memory_space<vmem>>, vector<24x32xf32>
    %c0_15 = arith.constant 0 : index
    %c0_16 = arith.constant 0 : index
    %11 = vector.load %arg5[%c0_15, %c0_16] : memref<1x32xf32, #tpu.memory_space<vmem>>, vector<1x32xf32>
    %c0_17 = arith.constant 0 : index
    %c0_18 = arith.constant 0 : index
    %12 = vector.load %arg6[%c0_17, %c0_18] : memref<1x32xf32, #tpu.memory_space<vmem>>, vector<1x32xf32>
    %cst_19 = arith.constant dense<0.000000e+00> : vector<24xf32>
    %13 = vector.multi_reduction <add>, %10, %cst_19 [1] : vector<24x32xf32> to vector<24xf32>
    %14 = vector.shape_cast %13 : vector<24xf32> to vector<24x1xf32>
    %cst_20 = arith.constant 3.200000e+01 : f32
    %15 = vector.broadcast %cst_20 : f32 to vector<24x1xf32>
    %16 = arith.divf %14, %15 : vector<24x1xf32>
    %17 = vector.broadcast %16 : vector<24x1xf32> to vector<24x32xf32>
    %18 = arith.subf %10, %17 : vector<24x32xf32>
    %19 = arith.mulf %18, %18 : vector<24x32xf32>
    %cst_21 = arith.constant dense<0.000000e+00> : vector<24xf32>
    %20 = vector.multi_reduction <add>, %19, %cst_21 [1] : vector<24x32xf32> to vector<24xf32>
    %21 = vector.shape_cast %20 : vector<24xf32> to vector<24x1xf32>
    %cst_22 = arith.constant 3.200000e+01 : f32
    %22 = vector.broadcast %cst_22 : f32 to vector<24x1xf32>
    %23 = arith.divf %21, %22 : vector<24x1xf32>
    %24 = vector.broadcast %16 : vector<24x1xf32> to vector<24x32xf32>
    %25 = arith.subf %10, %24 : vector<24x32xf32>
    %cst_23 = arith.constant 9.99999974E-6 : f32
    %26 = vector.broadcast %cst_23 : f32 to vector<24x1xf32>
    %27 = arith.addf %23, %26 : vector<24x1xf32>
    %28 = math.rsqrt %27 : vector<24x1xf32>
    %29 = vector.broadcast %28 : vector<24x1xf32> to vector<24x32xf32>
    %30 = arith.mulf %25, %29 : vector<24x32xf32>
    %31 = vector.broadcast %11 : vector<1x32xf32> to vector<24x32xf32>
    %32 = arith.mulf %30, %31 : vector<24x32xf32>
    %33 = vector.broadcast %12 : vector<1x32xf32> to vector<24x32xf32>
    %34 = arith.addf %32, %33 : vector<24x32xf32>
    %c0_24 = arith.constant 0 : index
    %c0_25 = arith.constant 0 : index
    %35 = vector.load %arg23[%c0_24, %c0_25] : memref<24x32xf32, #tpu.memory_space<vmem>>, vector<24x32xf32>
    tpu.vector_store %arg23[%c0_24, %c0_25], %34 {strides = array<i32>} : memref<24x32xf32, #tpu.memory_space<vmem>>, vector<24x32xf32>,
    %36 = tpu.iota {dimensions = array<i32: 1>} : vector<24x24xi32>
    %c17_i32 = arith.constant 17 : i32
    %37 = vector.broadcast %c17_i32 : i32 to vector<24x24xi32>
    %38 = arith.cmpi slt, %36, %37 : vector<24x24xi32>
    %cst_26 = arith.constant 0.000000e+00 : f32
    %cst_27 = arith.constant -1.000000e+30 : f32
    %39 = vector.broadcast %cst_26 : f32 to vector<24x24xf32>
    %40 = vector.broadcast %cst_27 : f32 to vector<24x24xf32>
    %41 = arith.select %38, %39, %40 : vector<24x24xi1>, vector<24x24xf32>
    %c0_28 = arith.constant 0 : index
    %c0_29 = arith.constant 0 : index
    %42 = vector.load %arg23[%c0_28, %c0_29] : memref<24x32xf32, #tpu.memory_space<vmem>>, vector<24x32xf32>
    %c0_30 = arith.constant 0 : index
    %c0_31 = arith.constant 0 : index
    %c0_32 = arith.constant 0 : index
    %43 = vector.load %arg7[%c0_30, %c0_31, %c0_32] : memref<2x1x32xf32, #tpu.memory_space<vmem>>, vector<1x1x32xf32>
    %44 = vector.shape_cast %43 : vector<1x1x32xf32> to vector<1x32xf32>
    %c0_33 = arith.constant 0 : index
    %c0_34 = arith.constant 0 : index
    %c0_35 = arith.constant 0 : index
    %45 = vector.load %arg8[%c0_33, %c0_34, %c0_35] : memref<2x1x32xf32, #tpu.memory_space<vmem>>, vector<1x1x32xf32>
    %46 = vector.shape_cast %45 : vector<1x1x32xf32> to vector<1x32xf32>
    %cst_36 = arith.constant dense<0.000000e+00> : vector<24xf32>
    %47 = vector.multi_reduction <add>, %42, %cst_36 [1] : vector<24x32xf32> to vector<24xf32>
    %48 = vector.shape_cast %47 : vector<24xf32> to vector<24x1xf32>
    %cst_37 = arith.constant 3.200000e+01 : f32
    %49 = vector.broadcast %cst_37 : f32 to vector<24x1xf32>
    %50 = arith.divf %48, %49 : vector<24x1xf32>
    %51 = vector.broadcast %50 : vector<24x1xf32> to vector<24x32xf32>
    %52 = arith.subf %42, %51 : vector<24x32xf32>
    %53 = arith.mulf %52, %52 : vector<24x32xf32>
    %cst_38 = arith.constant dense<0.000000e+00> : vector<24xf32>
    %54 = vector.multi_reduction <add>, %53, %cst_38 [1] : vector<24x32xf32> to vector<24xf32>
    %55 = vector.shape_cast %54 : vector<24xf32> to vector<24x1xf32>
    %cst_39 = arith.constant 3.200000e+01 : f32
    %56 = vector.broadcast %cst_39 : f32 to vector<24x1xf32>
    %57 = arith.divf %55, %56 : vector<24x1xf32>
    %58 = vector.broadcast %50 : vector<24x1xf32> to vector<24x32xf32>
    %59 = arith.subf %42, %58 : vector<24x32xf32>
    %cst_40 = arith.constant 9.99999974E-6 : f32
    %60 = vector.broadcast %cst_40 : f32 to vector<24x1xf32>
    %61 = arith.addf %57, %60 : vector<24x1xf32>
    %62 = math.rsqrt %61 : vector<24x1xf32>
    %63 = vector.broadcast %62 : vector<24x1xf32> to vector<24x32xf32>
    %64 = arith.mulf %59, %63 : vector<24x32xf32>
    %65 = vector.broadcast %44 : vector<1x32xf32> to vector<24x32xf32>
    %66 = arith.mulf %64, %65 : vector<24x32xf32>
    %67 = vector.broadcast %46 : vector<1x32xf32> to vector<24x32xf32>
    %68 = arith.addf %66, %67 : vector<24x32xf32>
    %c0_41 = arith.constant 0 : index
    %c0_42 = arith.constant 0 : index
    %c0_43 = arith.constant 0 : index
    %69 = vector.load %arg9[%c0_41, %c0_42, %c0_43] : memref<2x32x96xf32, #tpu.memory_space<vmem>>, vector<1x32x96xf32>
    %70 = vector.shape_cast %69 : vector<1x32x96xf32> to vector<32x96xf32>
    %cst_44 = arith.constant dense<0.000000e+00> : vector<24x96xf32>
    %71 = tpu.matmul %68, %70, %cst_44 {dimension_numbers = #tpu.dot_dimension_numbers<[1], [0], [0], [1], [0, 0, 1, 1], [], []>} : vector<24x32xf32>, vector<32x96xf32>, vector<24x96xf32> -> vector<24x96xf32>
    %c0_45 = arith.constant 0 : index
    %c0_46 = arith.constant 0 : index
    %c0_47 = arith.constant 0 : index
    %72 = vector.load %arg10[%c0_45, %c0_46, %c0_47] : memref<2x1x96xf32, #tpu.memory_space<vmem>>, vector<1x1x96xf32>
    %73 = vector.shape_cast %72 : vector<1x1x96xf32> to vector<1x96xf32>
    %74 = vector.broadcast %73 : vector<1x96xf32> to vector<24x96xf32>
    %75 = arith.addf %71, %74 : vector<24x96xf32>
    %c0_48 = arith.constant 0 : index
    %c0_49 = arith.constant 0 : index
    %c0_50 = arith.constant 0 : index
    %76 = vector.load %arg11[%c0_48, %c0_49, %c0_50] : memref<2x32x32xf32, #tpu.memory_space<vmem>>, vector<1x32x32xf32>
    %77 = vector.shape_cast %76 : vector<1x32x32xf32> to vector<32x32xf32>
    %cst_51 = arith.constant 0.000000e+00 : f32
    %78 = vector.broadcast %cst_51 : f32 to vector<24x32xf32>
    %79 = vector.extract_strided_slice %75 {offsets = [0, 0], sizes = [24, 8], strides = [1, 1]} : vector<24x96xf32> to vector<24x8xf32>
    %cst_52 = arith.constant 0.353553385 : f32
    %80 = vector.broadcast %cst_52 : f32 to vector<24x8xf32>
    %81 = arith.mulf %79, %80 : vector<24x8xf32>
    %82 = vector.extract_strided_slice %75 {offsets = [0, 32], sizes = [24, 8], strides = [1, 1]} : vector<24x96xf32> to vector<24x8xf32>
    %83 = vector.extract_strided_slice %75 {offsets = [0, 64], sizes = [24, 8], strides = [1, 1]} : vector<24x96xf32> to vector<24x8xf32>
    %cst_53 = arith.constant dense<0.000000e+00> : vector<24x24xf32>
    %84 = tpu.matmul %81, %82, %cst_53 {dimension_numbers = #tpu.dot_dimension_numbers<[1], [1], [0], [0], [0, 0, 1, 0], [], []>} : vector<24x8xf32>, vector<24x8xf32>, vector<24x24xf32> -> vector<24x24xf32>
    %85 = arith.addf %84, %41 : vector<24x24xf32>
    %cst_54 = arith.constant dense<0xFF800000> : vector<24xf32>
    %86 = vector.multi_reduction <maximumf>, %85, %cst_54 [1] : vector<24x24xf32> to vector<24xf32>
    %87 = vector.shape_cast %86 : vector<24xf32> to vector<24x1xf32>
    %88 = vector.broadcast %87 : vector<24x1xf32> to vector<24x24xf32>
    %89 = arith.subf %85, %88 : vector<24x24xf32>
    %90 = math.exp %89 : vector<24x24xf32>
    %cst_55 = arith.constant dense<0.000000e+00> : vector<24xf32>
    %91 = vector.multi_reduction <add>, %90, %cst_55 [1] : vector<24x24xf32> to vector<24xf32>
    %92 = vector.shape_cast %91 : vector<24xf32> to vector<24x1xf32>
    %93 = tpu.reciprocal %92 {approx = true} : vector<24x1xf32> -> vector<24x1xf32>
    %94 = vector.broadcast %93 : vector<24x1xf32> to vector<24x24xf32>
    %95 = arith.mulf %90, %94 : vector<24x24xf32>
    %cst_56 = arith.constant dense<0.000000e+00> : vector<24x8xf32>
    %96 = tpu.matmul %95, %83, %cst_56 {dimension_numbers = #tpu.dot_dimension_numbers<[1], [0], [0], [1], [0, 0, 1, 1], [], []>} : vector<24x24xf32>, vector<24x8xf32>, vector<24x8xf32> -> vector<24x8xf32>
    %97 = vector.extract_strided_slice %77 {offsets = [0, 0], sizes = [8, 32], strides = [1, 1]} : vector<32x32xf32> to vector<8x32xf32>
    %cst_57 = arith.constant dense<0.000000e+00> : vector<24x32xf32>
    %98 = tpu.matmul %96, %97, %cst_57 {dimension_numbers = #tpu.dot_dimension_numbers<[1], [0], [0], [1], [0, 0, 1, 1], [], []>} : vector<24x8xf32>, vector<8x32xf32>, vector<24x32xf32> -> vector<24x32xf32>
    %99 = arith.addf %78, %98 : vector<24x32xf32>
    %100 = vector.extract_strided_slice %75 {offsets = [0, 8], sizes = [24, 8], strides = [1, 1]} : vector<24x96xf32> to vector<24x8xf32>
    %cst_58 = arith.constant 0.353553385 : f32
    %101 = vector.broadcast %cst_58 : f32 to vector<24x8xf32>
    %102 = arith.mulf %100, %101 : vector<24x8xf32>
    %103 = vector.extract_strided_slice %75 {offsets = [0, 40], sizes = [24, 8], strides = [1, 1]} : vector<24x96xf32> to vector<24x8xf32>
    %104 = vector.extract_strided_slice %75 {offsets = [0, 72], sizes = [24, 8], strides = [1, 1]} : vector<24x96xf32> to vector<24x8xf32>
    %cst_59 = arith.constant dense<0.000000e+00> : vector<24x24xf32>
    %105 = tpu.matmul %102, %103, %cst_59 {dimension_numbers = #tpu.dot_dimension_numbers<[1], [1], [0], [0], [0, 0, 1, 0], [], []>} : vector<24x8xf32>, vector<24x8xf32>, vector<24x24xf32> -> vector<24x24xf32>
    %106 = arith.addf %105, %41 : vector<24x24xf32>
    %cst_60 = arith.constant dense<0xFF800000> : vector<24xf32>
    %107 = vector.multi_reduction <maximumf>, %106, %cst_60 [1] : vector<24x24xf32> to vector<24xf32>
    %108 = vector.shape_cast %107 : vector<24xf32> to vector<24x1xf32>
    %109 = vector.broadcast %108 : vector<24x1xf32> to vector<24x24xf32>
    %110 = arith.subf %106, %109 : vector<24x24xf32>
    %111 = math.exp %110 : vector<24x24xf32>
    %cst_61 = arith.constant dense<0.000000e+00> : vector<24xf32>
    %112 = vector.multi_reduction <add>, %111, %cst_61 [1] : vector<24x24xf32> to vector<24xf32>
    %113 = vector.shape_cast %112 : vector<24xf32> to vector<24x1xf32>
    %114 = tpu.reciprocal %113 {approx = true} : vector<24x1xf32> -> vector<24x1xf32>
    %115 = vector.broadcast %114 : vector<24x1xf32> to vector<24x24xf32>
    %116 = arith.mulf %111, %115 : vector<24x24xf32>
    %cst_62 = arith.constant dense<0.000000e+00> : vector<24x8xf32>
    %117 = tpu.matmul %116, %104, %cst_62 {dimension_numbers = #tpu.dot_dimension_numbers<[1], [0], [0], [1], [0, 0, 1, 1], [], []>} : vector<24x24xf32>, vector<24x8xf32>, vector<24x8xf32> -> vector<24x8xf32>
    %118 = vector.extract_strided_slice %77 {offsets = [8, 0], sizes = [8, 32], strides = [1, 1]} : vector<32x32xf32> to vector<8x32xf32>
    %cst_63 = arith.constant dense<0.000000e+00> : vector<24x32xf32>
    %119 = tpu.matmul %117, %118, %cst_63 {dimension_numbers = #tpu.dot_dimension_numbers<[1], [0], [0], [1], [0, 0, 1, 1], [], []>} : vector<24x8xf32>, vector<8x32xf32>, vector<24x32xf32> -> vector<24x32xf32>
    %120 = arith.addf %99, %119 : vector<24x32xf32>
    %121 = vector.extract_strided_slice %75 {offsets = [0, 16], sizes = [24, 8], strides = [1, 1]} : vector<24x96xf32> to vector<24x8xf32>
    %cst_64 = arith.constant 0.353553385 : f32
    %122 = vector.broadcast %cst_64 : f32 to vector<24x8xf32>
    %123 = arith.mulf %121, %122 : vector<24x8xf32>
    %124 = vector.extract_strided_slice %75 {offsets = [0, 48], sizes = [24, 8], strides = [1, 1]} : vector<24x96xf32> to vector<24x8xf32>
    %125 = vector.extract_strided_slice %75 {offsets = [0, 80], sizes = [24, 8], strides = [1, 1]} : vector<24x96xf32> to vector<24x8xf32>
    %cst_65 = arith.constant dense<0.000000e+00> : vector<24x24xf32>
    %126 = tpu.matmul %123, %124, %cst_65 {dimension_numbers = #tpu.dot_dimension_numbers<[1], [1], [0], [0], [0, 0, 1, 0], [], []>} : vector<24x8xf32>, vector<24x8xf32>, vector<24x24xf32> -> vector<24x24xf32>
    %127 = arith.addf %126, %41 : vector<24x24xf32>
    %cst_66 = arith.constant dense<0xFF800000> : vector<24xf32>
    %128 = vector.multi_reduction <maximumf>, %127, %cst_66 [1] : vector<24x24xf32> to vector<24xf32>
    %129 = vector.shape_cast %128 : vector<24xf32> to vector<24x1xf32>
    %130 = vector.broadcast %129 : vector<24x1xf32> to vector<24x24xf32>
    %131 = arith.subf %127, %130 : vector<24x24xf32>
    %132 = math.exp %131 : vector<24x24xf32>
    %cst_67 = arith.constant dense<0.000000e+00> : vector<24xf32>
    %133 = vector.multi_reduction <add>, %132, %cst_67 [1] : vector<24x24xf32> to vector<24xf32>
    %134 = vector.shape_cast %133 : vector<24xf32> to vector<24x1xf32>
    %135 = tpu.reciprocal %134 {approx = true} : vector<24x1xf32> -> vector<24x1xf32>
    %136 = vector.broadcast %135 : vector<24x1xf32> to vector<24x24xf32>
    %137 = arith.mulf %132, %136 : vector<24x24xf32>
    %cst_68 = arith.constant dense<0.000000e+00> : vector<24x8xf32>
    %138 = tpu.matmul %137, %125, %cst_68 {dimension_numbers = #tpu.dot_dimension_numbers<[1], [0], [0], [1], [0, 0, 1, 1], [], []>} : vector<24x24xf32>, vector<24x8xf32>, vector<24x8xf32> -> vector<24x8xf32>
    %139 = vector.extract_strided_slice %77 {offsets = [16, 0], sizes = [8, 32], strides = [1, 1]} : vector<32x32xf32> to vector<8x32xf32>
    %cst_69 = arith.constant dense<0.000000e+00> : vector<24x32xf32>
    %140 = tpu.matmul %138, %139, %cst_69 {dimension_numbers = #tpu.dot_dimension_numbers<[1], [0], [0], [1], [0, 0, 1, 1], [], []>} : vector<24x8xf32>, vector<8x32xf32>, vector<24x32xf32> -> vector<24x32xf32>
    %141 = arith.addf %120, %140 : vector<24x32xf32>
    %142 = vector.extract_strided_slice %75 {offsets = [0, 24], sizes = [24, 8], strides = [1, 1]} : vector<24x96xf32> to vector<24x8xf32>
    %cst_70 = arith.constant 0.353553385 : f32
    %143 = vector.broadcast %cst_70 : f32 to vector<24x8xf32>
    %144 = arith.mulf %142, %143 : vector<24x8xf32>
    %145 = vector.extract_strided_slice %75 {offsets = [0, 56], sizes = [24, 8], strides = [1, 1]} : vector<24x96xf32> to vector<24x8xf32>
    %146 = vector.extract_strided_slice %75 {offsets = [0, 88], sizes = [24, 8], strides = [1, 1]} : vector<24x96xf32> to vector<24x8xf32>
    %cst_71 = arith.constant dense<0.000000e+00> : vector<24x24xf32>
    %147 = tpu.matmul %144, %145, %cst_71 {dimension_numbers = #tpu.dot_dimension_numbers<[1], [1], [0], [0], [0, 0, 1, 0], [], []>} : vector<24x8xf32>, vector<24x8xf32>, vector<24x24xf32> -> vector<24x24xf32>
    %148 = arith.addf %147, %41 : vector<24x24xf32>
    %cst_72 = arith.constant dense<0xFF800000> : vector<24xf32>
    %149 = vector.multi_reduction <maximumf>, %148, %cst_72 [1] : vector<24x24xf32> to vector<24xf32>
    %150 = vector.shape_cast %149 : vector<24xf32> to vector<24x1xf32>
    %151 = vector.broadcast %150 : vector<24x1xf32> to vector<24x24xf32>
    %152 = arith.subf %148, %151 : vector<24x24xf32>
    %153 = math.exp %152 : vector<24x24xf32>
    %cst_73 = arith.constant dense<0.000000e+00> : vector<24xf32>
    %154 = vector.multi_reduction <add>, %153, %cst_73 [1] : vector<24x24xf32> to vector<24xf32>
    %155 = vector.shape_cast %154 : vector<24xf32> to vector<24x1xf32>
    %156 = tpu.reciprocal %155 {approx = true} : vector<24x1xf32> -> vector<24x1xf32>
    %157 = vector.broadcast %156 : vector<24x1xf32> to vector<24x24xf32>
    %158 = arith.mulf %153, %157 : vector<24x24xf32>
    %cst_74 = arith.constant dense<0.000000e+00> : vector<24x8xf32>
    %159 = tpu.matmul %158, %146, %cst_74 {dimension_numbers = #tpu.dot_dimension_numbers<[1], [0], [0], [1], [0, 0, 1, 1], [], []>} : vector<24x24xf32>, vector<24x8xf32>, vector<24x8xf32> -> vector<24x8xf32>
    %160 = vector.extract_strided_slice %77 {offsets = [24, 0], sizes = [8, 32], strides = [1, 1]} : vector<32x32xf32> to vector<8x32xf32>
    %cst_75 = arith.constant dense<0.000000e+00> : vector<24x32xf32>
    %161 = tpu.matmul %159, %160, %cst_75 {dimension_numbers = #tpu.dot_dimension_numbers<[1], [0], [0], [1], [0, 0, 1, 1], [], []>} : vector<24x8xf32>, vector<8x32xf32>, vector<24x32xf32> -> vector<24x32xf32>
    %162 = arith.addf %141, %161 : vector<24x32xf32>
    %163 = arith.addf %42, %162 : vector<24x32xf32>
    %c0_76 = arith.constant 0 : index
    %c0_77 = arith.constant 0 : index
    %c0_78 = arith.constant 0 : index
    %164 = vector.load %arg12[%c0_76, %c0_77, %c0_78] : memref<2x1x32xf32, #tpu.memory_space<vmem>>, vector<1x1x32xf32>
    %165 = vector.shape_cast %164 : vector<1x1x32xf32> to vector<1x32xf32>
    %166 = vector.broadcast %165 : vector<1x32xf32> to vector<24x32xf32>
    %167 = arith.addf %163, %166 : vector<24x32xf32>
    %c0_79 = arith.constant 0 : index
    %c0_80 = arith.constant 0 : index
    %168 = vector.load %arg23[%c0_79, %c0_80] : memref<24x32xf32, #tpu.memory_space<vmem>>, vector<24x32xf32>
    tpu.vector_store %arg23[%c0_79, %c0_80], %167 {strides = array<i32>} : memref<24x32xf32, #tpu.memory_space<vmem>>, vector<24x32xf32>,
    %c0_81 = arith.constant 0 : index
    %c0_82 = arith.constant 0 : index
    %169 = vector.load %arg23[%c0_81, %c0_82] : memref<24x32xf32, #tpu.memory_space<vmem>>, vector<24x32xf32>
    %c0_83 = arith.constant 0 : index
    %c0_84 = arith.constant 0 : index
    %c0_85 = arith.constant 0 : index
    %170 = vector.load %arg13[%c0_83, %c0_84, %c0_85] : memref<2x1x32xf32, #tpu.memory_space<vmem>>, vector<1x1x32xf32>
    %171 = vector.shape_cast %170 : vector<1x1x32xf32> to vector<1x32xf32>
    %c0_86 = arith.constant 0 : index
    %c0_87 = arith.constant 0 : index
    %c0_88 = arith.constant 0 : index
    %172 = vector.load %arg14[%c0_86, %c0_87, %c0_88] : memref<2x1x32xf32, #tpu.memory_space<vmem>>, vector<1x1x32xf32>
    %173 = vector.shape_cast %172 : vector<1x1x32xf32> to vector<1x32xf32>
    %cst_89 = arith.constant dense<0.000000e+00> : vector<24xf32>
    %174 = vector.multi_reduction <add>, %169, %cst_89 [1] : vector<24x32xf32> to vector<24xf32>
    %175 = vector.shape_cast %174 : vector<24xf32> to vector<24x1xf32>
    %cst_90 = arith.constant 3.200000e+01 : f32
    %176 = vector.broadcast %cst_90 : f32 to vector<24x1xf32>
    %177 = arith.divf %175, %176 : vector<24x1xf32>
    %178 = vector.broadcast %177 : vector<24x1xf32> to vector<24x32xf32>
    %179 = arith.subf %169, %178 : vector<24x32xf32>
    %180 = arith.mulf %179, %179 : vector<24x32xf32>
    %cst_91 = arith.constant dense<0.000000e+00> : vector<24xf32>
    %181 = vector.multi_reduction <add>, %180, %cst_91 [1] : vector<24x32xf32> to vector<24xf32>
    %182 = vector.shape_cast %181 : vector<24xf32> to vector<24x1xf32>
    %cst_92 = arith.constant 3.200000e+01 : f32
    %183 = vector.broadcast %cst_92 : f32 to vector<24x1xf32>
    %184 = arith.divf %182, %183 : vector<24x1xf32>
    %185 = vector.broadcast %177 : vector<24x1xf32> to vector<24x32xf32>
    %186 = arith.subf %169, %185 : vector<24x32xf32>
    %cst_93 = arith.constant 9.99999974E-6 : f32
    %187 = vector.broadcast %cst_93 : f32 to vector<24x1xf32>
    %188 = arith.addf %184, %187 : vector<24x1xf32>
    %189 = math.rsqrt %188 : vector<24x1xf32>
    %190 = vector.broadcast %189 : vector<24x1xf32> to vector<24x32xf32>
    %191 = arith.mulf %186, %190 : vector<24x32xf32>
    %192 = vector.broadcast %171 : vector<1x32xf32> to vector<24x32xf32>
    %193 = arith.mulf %191, %192 : vector<24x32xf32>
    %194 = vector.broadcast %173 : vector<1x32xf32> to vector<24x32xf32>
    %195 = arith.addf %193, %194 : vector<24x32xf32>
    %c0_94 = arith.constant 0 : index
    %c0_95 = arith.constant 0 : index
    %c0_96 = arith.constant 0 : index
    %196 = vector.load %arg15[%c0_94, %c0_95, %c0_96] : memref<2x32x64xf32, #tpu.memory_space<vmem>>, vector<1x32x64xf32>
    %197 = vector.shape_cast %196 : vector<1x32x64xf32> to vector<32x64xf32>
    %cst_97 = arith.constant dense<0.000000e+00> : vector<24x64xf32>
    %198 = tpu.matmul %195, %197, %cst_97 {dimension_numbers = #tpu.dot_dimension_numbers<[1], [0], [0], [1], [0, 0, 1, 1], [], []>} : vector<24x32xf32>, vector<32x64xf32>, vector<24x64xf32> -> vector<24x64xf32>
    %c0_98 = arith.constant 0 : index
    %c0_99 = arith.constant 0 : index
    %c0_100 = arith.constant 0 : index
    %199 = vector.load %arg16[%c0_98, %c0_99, %c0_100] : memref<2x1x64xf32, #tpu.memory_space<vmem>>, vector<1x1x64xf32>
    %200 = vector.shape_cast %199 : vector<1x1x64xf32> to vector<1x64xf32>
    %201 = vector.broadcast %200 : vector<1x64xf32> to vector<24x64xf32>
    %202 = arith.addf %198, %201 : vector<24x64xf32>
    %cst_101 = arith.constant 1.702000e+00 : f32
    %203 = vector.broadcast %cst_101 : f32 to vector<24x64xf32>
    %204 = arith.mulf %203, %202 : vector<24x64xf32>
    %205 = arith.negf %204 : vector<24x64xf32>
    %206 = math.exp %205 : vector<24x64xf32>
    %cst_102 = arith.constant 1.000000e+00 : f32
    %207 = vector.broadcast %cst_102 : f32 to vector<24x64xf32>
    %208 = arith.addf %207, %206 : vector<24x64xf32>
    %209 = arith.divf %207, %208 : vector<24x64xf32>
    %210 = arith.mulf %202, %209 : vector<24x64xf32>
    %c0_103 = arith.constant 0 : index
    %c0_104 = arith.constant 0 : index
    %c0_105 = arith.constant 0 : index
    %211 = vector.load %arg17[%c0_103, %c0_104, %c0_105] : memref<2x64x32xf32, #tpu.memory_space<vmem>>, vector<1x64x32xf32>
    %212 = vector.shape_cast %211 : vector<1x64x32xf32> to vector<64x32xf32>
    %cst_106 = arith.constant dense<0.000000e+00> : vector<24x32xf32>
    %213 = tpu.matmul %210, %212, %cst_106 {dimension_numbers = #tpu.dot_dimension_numbers<[1], [0], [0], [1], [0, 0, 1, 1], [], []>} : vector<24x64xf32>, vector<64x32xf32>, vector<24x32xf32> -> vector<24x32xf32>
    %c0_107 = arith.constant 0 : index
    %c0_108 = arith.constant 0 : index
    %c0_109 = arith.constant 0 : index
    %214 = vector.load %arg18[%c0_107, %c0_108, %c0_109] : memref<2x1x32xf32, #tpu.memory_space<vmem>>, vector<1x1x32xf32>
    %215 = vector.shape_cast %214 : vector<1x1x32xf32> to vector<1x32xf32>
    %216 = vector.broadcast %215 : vector<1x32xf32> to vector<24x32xf32>
    %217 = arith.addf %213, %216 : vector<24x32xf32>
    %218 = arith.addf %169, %217 : vector<24x32xf32>
    %c0_110 = arith.constant 0 : index
    %c0_111 = arith.constant 0 : index
    %219 = vector.load %arg23[%c0_110, %c0_111] : memref<24x32xf32, #tpu.memory_space<vmem>>, vector<24x32xf32>
    tpu.vector_store %arg23[%c0_110, %c0_111], %218 {strides = array<i32>} : memref<24x32xf32, #tpu.memory_space<vmem>>, vector<24x32xf32>,
    %c0_112 = arith.constant 0 : index
    %c0_113 = arith.constant 0 : index
    %220 = vector.load %arg23[%c0_112, %c0_113] : memref<24x32xf32, #tpu.memory_space<vmem>>, vector<24x32xf32>
    %c1 = arith.constant 1 : index
    %c0_114 = arith.constant 0 : index
    %c0_115 = arith.constant 0 : index
    %221 = vector.load %arg7[%c1, %c0_114, %c0_115] : memref<2x1x32xf32, #tpu.memory_space<vmem>>, vector<1x1x32xf32>
    %222 = vector.shape_cast %221 : vector<1x1x32xf32> to vector<1x32xf32>
    %c1_116 = arith.constant 1 : index
    %c0_117 = arith.constant 0 : index
    %c0_118 = arith.constant 0 : index
    %223 = vector.load %arg8[%c1_116, %c0_117, %c0_118] : memref<2x1x32xf32, #tpu.memory_space<vmem>>, vector<1x1x32xf32>
    %224 = vector.shape_cast %223 : vector<1x1x32xf32> to vector<1x32xf32>
    %cst_119 = arith.constant dense<0.000000e+00> : vector<24xf32>
    %225 = vector.multi_reduction <add>, %220, %cst_119 [1] : vector<24x32xf32> to vector<24xf32>
    %226 = vector.shape_cast %225 : vector<24xf32> to vector<24x1xf32>
    %cst_120 = arith.constant 3.200000e+01 : f32
    %227 = vector.broadcast %cst_120 : f32 to vector<24x1xf32>
    %228 = arith.divf %226, %227 : vector<24x1xf32>
    %229 = vector.broadcast %228 : vector<24x1xf32> to vector<24x32xf32>
    %230 = arith.subf %220, %229 : vector<24x32xf32>
    %231 = arith.mulf %230, %230 : vector<24x32xf32>
    %cst_121 = arith.constant dense<0.000000e+00> : vector<24xf32>
    %232 = vector.multi_reduction <add>, %231, %cst_121 [1] : vector<24x32xf32> to vector<24xf32>
    %233 = vector.shape_cast %232 : vector<24xf32> to vector<24x1xf32>
    %cst_122 = arith.constant 3.200000e+01 : f32
    %234 = vector.broadcast %cst_122 : f32 to vector<24x1xf32>
    %235 = arith.divf %233, %234 : vector<24x1xf32>
    %236 = vector.broadcast %228 : vector<24x1xf32> to vector<24x32xf32>
    %237 = arith.subf %220, %236 : vector<24x32xf32>
    %cst_123 = arith.constant 9.99999974E-6 : f32
    %238 = vector.broadcast %cst_123 : f32 to vector<24x1xf32>
    %239 = arith.addf %235, %238 : vector<24x1xf32>
    %240 = math.rsqrt %239 : vector<24x1xf32>
    %241 = vector.broadcast %240 : vector<24x1xf32> to vector<24x32xf32>
    %242 = arith.mulf %237, %241 : vector<24x32xf32>
    %243 = vector.broadcast %222 : vector<1x32xf32> to vector<24x32xf32>
    %244 = arith.mulf %242, %243 : vector<24x32xf32>
    %245 = vector.broadcast %224 : vector<1x32xf32> to vector<24x32xf32>
    %246 = arith.addf %244, %245 : vector<24x32xf32>
    %c1_124 = arith.constant 1 : index
    %c0_125 = arith.constant 0 : index
    %c0_126 = arith.constant 0 : index
    %247 = vector.load %arg9[%c1_124, %c0_125, %c0_126] : memref<2x32x96xf32, #tpu.memory_space<vmem>>, vector<1x32x96xf32>
    %248 = vector.shape_cast %247 : vector<1x32x96xf32> to vector<32x96xf32>
    %cst_127 = arith.constant dense<0.000000e+00> : vector<24x96xf32>
    %249 = tpu.matmul %246, %248, %cst_127 {dimension_numbers = #tpu.dot_dimension_numbers<[1], [0], [0], [1], [0, 0, 1, 1], [], []>} : vector<24x32xf32>, vector<32x96xf32>, vector<24x96xf32> -> vector<24x96xf32>
    %c1_128 = arith.constant 1 : index
    %c0_129 = arith.constant 0 : index
    %c0_130 = arith.constant 0 : index
    %250 = vector.load %arg10[%c1_128, %c0_129, %c0_130] : memref<2x1x96xf32, #tpu.memory_space<vmem>>, vector<1x1x96xf32>
    %251 = vector.shape_cast %250 : vector<1x1x96xf32> to vector<1x96xf32>
    %252 = vector.broadcast %251 : vector<1x96xf32> to vector<24x96xf32>
    %253 = arith.addf %249, %252 : vector<24x96xf32>
    %c1_131 = arith.constant 1 : index
    %c0_132 = arith.constant 0 : index
    %c0_133 = arith.constant 0 : index
    %254 = vector.load %arg11[%c1_131, %c0_132, %c0_133] : memref<2x32x32xf32, #tpu.memory_space<vmem>>, vector<1x32x32xf32>
    %255 = vector.shape_cast %254 : vector<1x32x32xf32> to vector<32x32xf32>
    %cst_134 = arith.constant 0.000000e+00 : f32
    %256 = vector.broadcast %cst_134 : f32 to vector<24x32xf32>
    %257 = vector.extract_strided_slice %253 {offsets = [0, 0], sizes = [24, 8], strides = [1, 1]} : vector<24x96xf32> to vector<24x8xf32>
    %cst_135 = arith.constant 0.353553385 : f32
    %258 = vector.broadcast %cst_135 : f32 to vector<24x8xf32>
    %259 = arith.mulf %257, %258 : vector<24x8xf32>
    %260 = vector.extract_strided_slice %253 {offsets = [0, 32], sizes = [24, 8], strides = [1, 1]} : vector<24x96xf32> to vector<24x8xf32>
    %261 = vector.extract_strided_slice %253 {offsets = [0, 64], sizes = [24, 8], strides = [1, 1]} : vector<24x96xf32> to vector<24x8xf32>
    %cst_136 = arith.constant dense<0.000000e+00> : vector<24x24xf32>
    %262 = tpu.matmul %259, %260, %cst_136 {dimension_numbers = #tpu.dot_dimension_numbers<[1], [1], [0], [0], [0, 0, 1, 0], [], []>} : vector<24x8xf32>, vector<24x8xf32>, vector<24x24xf32> -> vector<24x24xf32>
    %263 = arith.addf %262, %41 : vector<24x24xf32>
    %cst_137 = arith.constant dense<0xFF800000> : vector<24xf32>
    %264 = vector.multi_reduction <maximumf>, %263, %cst_137 [1] : vector<24x24xf32> to vector<24xf32>
    %265 = vector.shape_cast %264 : vector<24xf32> to vector<24x1xf32>
    %266 = vector.broadcast %265 : vector<24x1xf32> to vector<24x24xf32>
    %267 = arith.subf %263, %266 : vector<24x24xf32>
    %268 = math.exp %267 : vector<24x24xf32>
    %cst_138 = arith.constant dense<0.000000e+00> : vector<24xf32>
    %269 = vector.multi_reduction <add>, %268, %cst_138 [1] : vector<24x24xf32> to vector<24xf32>
    %270 = vector.shape_cast %269 : vector<24xf32> to vector<24x1xf32>
    %271 = tpu.reciprocal %270 {approx = true} : vector<24x1xf32> -> vector<24x1xf32>
    %272 = vector.broadcast %271 : vector<24x1xf32> to vector<24x24xf32>
    %273 = arith.mulf %268, %272 : vector<24x24xf32>
    %cst_139 = arith.constant dense<0.000000e+00> : vector<24x8xf32>
    %274 = tpu.matmul %273, %261, %cst_139 {dimension_numbers = #tpu.dot_dimension_numbers<[1], [0], [0], [1], [0, 0, 1, 1], [], []>} : vector<24x24xf32>, vector<24x8xf32>, vector<24x8xf32> -> vector<24x8xf32>
    %275 = vector.extract_strided_slice %255 {offsets = [0, 0], sizes = [8, 32], strides = [1, 1]} : vector<32x32xf32> to vector<8x32xf32>
    %cst_140 = arith.constant dense<0.000000e+00> : vector<24x32xf32>
    %276 = tpu.matmul %274, %275, %cst_140 {dimension_numbers = #tpu.dot_dimension_numbers<[1], [0], [0], [1], [0, 0, 1, 1], [], []>} : vector<24x8xf32>, vector<8x32xf32>, vector<24x32xf32> -> vector<24x32xf32>
    %277 = arith.addf %256, %276 : vector<24x32xf32>
    %278 = vector.extract_strided_slice %253 {offsets = [0, 8], sizes = [24, 8], strides = [1, 1]} : vector<24x96xf32> to vector<24x8xf32>
    %cst_141 = arith.constant 0.353553385 : f32
    %279 = vector.broadcast %cst_141 : f32 to vector<24x8xf32>
    %280 = arith.mulf %278, %279 : vector<24x8xf32>
    %281 = vector.extract_strided_slice %253 {offsets = [0, 40], sizes = [24, 8], strides = [1, 1]} : vector<24x96xf32> to vector<24x8xf32>
    %282 = vector.extract_strided_slice %253 {offsets = [0, 72], sizes = [24, 8], strides = [1, 1]} : vector<24x96xf32> to vector<24x8xf32>
    %cst_142 = arith.constant dense<0.000000e+00> : vector<24x24xf32>
    %283 = tpu.matmul %280, %281, %cst_142 {dimension_numbers = #tpu.dot_dimension_numbers<[1], [1], [0], [0], [0, 0, 1, 0], [], []>} : vector<24x8xf32>, vector<24x8xf32>, vector<24x24xf32> -> vector<24x24xf32>
    %284 = arith.addf %283, %41 : vector<24x24xf32>
    %cst_143 = arith.constant dense<0xFF800000> : vector<24xf32>
    %285 = vector.multi_reduction <maximumf>, %284, %cst_143 [1] : vector<24x24xf32> to vector<24xf32>
    %286 = vector.shape_cast %285 : vector<24xf32> to vector<24x1xf32>
    %287 = vector.broadcast %286 : vector<24x1xf32> to vector<24x24xf32>
    %288 = arith.subf %284, %287 : vector<24x24xf32>
    %289 = math.exp %288 : vector<24x24xf32>
    %cst_144 = arith.constant dense<0.000000e+00> : vector<24xf32>
    %290 = vector.multi_reduction <add>, %289, %cst_144 [1] : vector<24x24xf32> to vector<24xf32>
    %291 = vector.shape_cast %290 : vector<24xf32> to vector<24x1xf32>
    %292 = tpu.reciprocal %291 {approx = true} : vector<24x1xf32> -> vector<24x1xf32>
    %293 = vector.broadcast %292 : vector<24x1xf32> to vector<24x24xf32>
    %294 = arith.mulf %289, %293 : vector<24x24xf32>
    %cst_145 = arith.constant dense<0.000000e+00> : vector<24x8xf32>
    %295 = tpu.matmul %294, %282, %cst_145 {dimension_numbers = #tpu.dot_dimension_numbers<[1], [0], [0], [1], [0, 0, 1, 1], [], []>} : vector<24x24xf32>, vector<24x8xf32>, vector<24x8xf32> -> vector<24x8xf32>
    %296 = vector.extract_strided_slice %255 {offsets = [8, 0], sizes = [8, 32], strides = [1, 1]} : vector<32x32xf32> to vector<8x32xf32>
    %cst_146 = arith.constant dense<0.000000e+00> : vector<24x32xf32>
    %297 = tpu.matmul %295, %296, %cst_146 {dimension_numbers = #tpu.dot_dimension_numbers<[1], [0], [0], [1], [0, 0, 1, 1], [], []>} : vector<24x8xf32>, vector<8x32xf32>, vector<24x32xf32> -> vector<24x32xf32>
    %298 = arith.addf %277, %297 : vector<24x32xf32>
    %299 = vector.extract_strided_slice %253 {offsets = [0, 16], sizes = [24, 8], strides = [1, 1]} : vector<24x96xf32> to vector<24x8xf32>
    %cst_147 = arith.constant 0.353553385 : f32
    %300 = vector.broadcast %cst_147 : f32 to vector<24x8xf32>
    %301 = arith.mulf %299, %300 : vector<24x8xf32>
    %302 = vector.extract_strided_slice %253 {offsets = [0, 48], sizes = [24, 8], strides = [1, 1]} : vector<24x96xf32> to vector<24x8xf32>
    %303 = vector.extract_strided_slice %253 {offsets = [0, 80], sizes = [24, 8], strides = [1, 1]} : vector<24x96xf32> to vector<24x8xf32>
    %cst_148 = arith.constant dense<0.000000e+00> : vector<24x24xf32>
    %304 = tpu.matmul %301, %302, %cst_148 {dimension_numbers = #tpu.dot_dimension_numbers<[1], [1], [0], [0], [0, 0, 1, 0], [], []>} : vector<24x8xf32>, vector<24x8xf32>, vector<24x24xf32> -> vector<24x24xf32>
    %305 = arith.addf %304, %41 : vector<24x24xf32>
    %cst_149 = arith.constant dense<0xFF800000> : vector<24xf32>
    %306 = vector.multi_reduction <maximumf>, %305, %cst_149 [1] : vector<24x24xf32> to vector<24xf32>
    %307 = vector.shape_cast %306 : vector<24xf32> to vector<24x1xf32>
    %308 = vector.broadcast %307 : vector<24x1xf32> to vector<24x24xf32>
    %309 = arith.subf %305, %308 : vector<24x24xf32>
    %310 = math.exp %309 : vector<24x24xf32>
    %cst_150 = arith.constant dense<0.000000e+00> : vector<24xf32>
    %311 = vector.multi_reduction <add>, %310, %cst_150 [1] : vector<24x24xf32> to vector<24xf32>
    %312 = vector.shape_cast %311 : vector<24xf32> to vector<24x1xf32>
    %313 = tpu.reciprocal %312 {approx = true} : vector<24x1xf32> -> vector<24x1xf32>
    %314 = vector.broadcast %313 : vector<24x1xf32> to vector<24x24xf32>
    %315 = arith.mulf %310, %314 : vector<24x24xf32>
    %cst_151 = arith.constant dense<0.000000e+00> : vector<24x8xf32>
    %316 = tpu.matmul %315, %303, %cst_151 {dimension_numbers = #tpu.dot_dimension_numbers<[1], [0], [0], [1], [0, 0, 1, 1], [], []>} : vector<24x24xf32>, vector<24x8xf32>, vector<24x8xf32> -> vector<24x8xf32>
    %317 = vector.extract_strided_slice %255 {offsets = [16, 0], sizes = [8, 32], strides = [1, 1]} : vector<32x32xf32> to vector<8x32xf32>
    %cst_152 = arith.constant dense<0.000000e+00> : vector<24x32xf32>
    %318 = tpu.matmul %316, %317, %cst_152 {dimension_numbers = #tpu.dot_dimension_numbers<[1], [0], [0], [1], [0, 0, 1, 1], [], []>} : vector<24x8xf32>, vector<8x32xf32>, vector<24x32xf32> -> vector<24x32xf32>
    %319 = arith.addf %298, %318 : vector<24x32xf32>
    %320 = vector.extract_strided_slice %253 {offsets = [0, 24], sizes = [24, 8], strides = [1, 1]} : vector<24x96xf32> to vector<24x8xf32>
    %cst_153 = arith.constant 0.353553385 : f32
    %321 = vector.broadcast %cst_153 : f32 to vector<24x8xf32>
    %322 = arith.mulf %320, %321 : vector<24x8xf32>
    %323 = vector.extract_strided_slice %253 {offsets = [0, 56], sizes = [24, 8], strides = [1, 1]} : vector<24x96xf32> to vector<24x8xf32>
    %324 = vector.extract_strided_slice %253 {offsets = [0, 88], sizes = [24, 8], strides = [1, 1]} : vector<24x96xf32> to vector<24x8xf32>
    %cst_154 = arith.constant dense<0.000000e+00> : vector<24x24xf32>
    %325 = tpu.matmul %322, %323, %cst_154 {dimension_numbers = #tpu.dot_dimension_numbers<[1], [1], [0], [0], [0, 0, 1, 0], [], []>} : vector<24x8xf32>, vector<24x8xf32>, vector<24x24xf32> -> vector<24x24xf32>
    %326 = arith.addf %325, %41 : vector<24x24xf32>
    %cst_155 = arith.constant dense<0xFF800000> : vector<24xf32>
    %327 = vector.multi_reduction <maximumf>, %326, %cst_155 [1] : vector<24x24xf32> to vector<24xf32>
    %328 = vector.shape_cast %327 : vector<24xf32> to vector<24x1xf32>
    %329 = vector.broadcast %328 : vector<24x1xf32> to vector<24x24xf32>
    %330 = arith.subf %326, %329 : vector<24x24xf32>
    %331 = math.exp %330 : vector<24x24xf32>
    %cst_156 = arith.constant dense<0.000000e+00> : vector<24xf32>
    %332 = vector.multi_reduction <add>, %331, %cst_156 [1] : vector<24x24xf32> to vector<24xf32>
    %333 = vector.shape_cast %332 : vector<24xf32> to vector<24x1xf32>
    %334 = tpu.reciprocal %333 {approx = true} : vector<24x1xf32> -> vector<24x1xf32>
    %335 = vector.broadcast %334 : vector<24x1xf32> to vector<24x24xf32>
    %336 = arith.mulf %331, %335 : vector<24x24xf32>
    %cst_157 = arith.constant dense<0.000000e+00> : vector<24x8xf32>
    %337 = tpu.matmul %336, %324, %cst_157 {dimension_numbers = #tpu.dot_dimension_numbers<[1], [0], [0], [1], [0, 0, 1, 1], [], []>} : vector<24x24xf32>, vector<24x8xf32>, vector<24x8xf32> -> vector<24x8xf32>
    %338 = vector.extract_strided_slice %255 {offsets = [24, 0], sizes = [8, 32], strides = [1, 1]} : vector<32x32xf32> to vector<8x32xf32>
    %cst_158 = arith.constant dense<0.000000e+00> : vector<24x32xf32>
    %339 = tpu.matmul %337, %338, %cst_158 {dimension_numbers = #tpu.dot_dimension_numbers<[1], [0], [0], [1], [0, 0, 1, 1], [], []>} : vector<24x8xf32>, vector<8x32xf32>, vector<24x32xf32> -> vector<24x32xf32>
    %340 = arith.addf %319, %339 : vector<24x32xf32>
    %341 = arith.addf %220, %340 : vector<24x32xf32>
    %c1_159 = arith.constant 1 : index
    %c0_160 = arith.constant 0 : index
    %c0_161 = arith.constant 0 : index
    %342 = vector.load %arg12[%c1_159, %c0_160, %c0_161] : memref<2x1x32xf32, #tpu.memory_space<vmem>>, vector<1x1x32xf32>
    %343 = vector.shape_cast %342 : vector<1x1x32xf32> to vector<1x32xf32>
    %344 = vector.broadcast %343 : vector<1x32xf32> to vector<24x32xf32>
    %345 = arith.addf %341, %344 : vector<24x32xf32>
    %c0_162 = arith.constant 0 : index
    %c0_163 = arith.constant 0 : index
    %346 = vector.load %arg23[%c0_162, %c0_163] : memref<24x32xf32, #tpu.memory_space<vmem>>, vector<24x32xf32>
    tpu.vector_store %arg23[%c0_162, %c0_163], %345 {strides = array<i32>} : memref<24x32xf32, #tpu.memory_space<vmem>>, vector<24x32xf32>,
    %c0_164 = arith.constant 0 : index
    %c0_165 = arith.constant 0 : index
    %347 = vector.load %arg23[%c0_164, %c0_165] : memref<24x32xf32, #tpu.memory_space<vmem>>, vector<24x32xf32>
    %c1_166 = arith.constant 1 : index
    %c0_167 = arith.constant 0 : index
    %c0_168 = arith.constant 0 : index
    %348 = vector.load %arg13[%c1_166, %c0_167, %c0_168] : memref<2x1x32xf32, #tpu.memory_space<vmem>>, vector<1x1x32xf32>
    %349 = vector.shape_cast %348 : vector<1x1x32xf32> to vector<1x32xf32>
    %c1_169 = arith.constant 1 : index
    %c0_170 = arith.constant 0 : index
    %c0_171 = arith.constant 0 : index
    %350 = vector.load %arg14[%c1_169, %c0_170, %c0_171] : memref<2x1x32xf32, #tpu.memory_space<vmem>>, vector<1x1x32xf32>
    %351 = vector.shape_cast %350 : vector<1x1x32xf32> to vector<1x32xf32>
    %cst_172 = arith.constant dense<0.000000e+00> : vector<24xf32>
    %352 = vector.multi_reduction <add>, %347, %cst_172 [1] : vector<24x32xf32> to vector<24xf32>
    %353 = vector.shape_cast %352 : vector<24xf32> to vector<24x1xf32>
    %cst_173 = arith.constant 3.200000e+01 : f32
    %354 = vector.broadcast %cst_173 : f32 to vector<24x1xf32>
    %355 = arith.divf %353, %354 : vector<24x1xf32>
    %356 = vector.broadcast %355 : vector<24x1xf32> to vector<24x32xf32>
    %357 = arith.subf %347, %356 : vector<24x32xf32>
    %358 = arith.mulf %357, %357 : vector<24x32xf32>
    %cst_174 = arith.constant dense<0.000000e+00> : vector<24xf32>
    %359 = vector.multi_reduction <add>, %358, %cst_174 [1] : vector<24x32xf32> to vector<24xf32>
    %360 = vector.shape_cast %359 : vector<24xf32> to vector<24x1xf32>
    %cst_175 = arith.constant 3.200000e+01 : f32
    %361 = vector.broadcast %cst_175 : f32 to vector<24x1xf32>
    %362 = arith.divf %360, %361 : vector<24x1xf32>
    %363 = vector.broadcast %355 : vector<24x1xf32> to vector<24x32xf32>
    %364 = arith.subf %347, %363 : vector<24x32xf32>
    %cst_176 = arith.constant 9.99999974E-6 : f32
    %365 = vector.broadcast %cst_176 : f32 to vector<24x1xf32>
    %366 = arith.addf %362, %365 : vector<24x1xf32>
    %367 = math.rsqrt %366 : vector<24x1xf32>
    %368 = vector.broadcast %367 : vector<24x1xf32> to vector<24x32xf32>
    %369 = arith.mulf %364, %368 : vector<24x32xf32>
    %370 = vector.broadcast %349 : vector<1x32xf32> to vector<24x32xf32>
    %371 = arith.mulf %369, %370 : vector<24x32xf32>
    %372 = vector.broadcast %351 : vector<1x32xf32> to vector<24x32xf32>
    %373 = arith.addf %371, %372 : vector<24x32xf32>
    %c1_177 = arith.constant 1 : index
    %c0_178 = arith.constant 0 : index
    %c0_179 = arith.constant 0 : index
    %374 = vector.load %arg15[%c1_177, %c0_178, %c0_179] : memref<2x32x64xf32, #tpu.memory_space<vmem>>, vector<1x32x64xf32>
    %375 = vector.shape_cast %374 : vector<1x32x64xf32> to vector<32x64xf32>
    %cst_180 = arith.constant dense<0.000000e+00> : vector<24x64xf32>
    %376 = tpu.matmul %373, %375, %cst_180 {dimension_numbers = #tpu.dot_dimension_numbers<[1], [0], [0], [1], [0, 0, 1, 1], [], []>} : vector<24x32xf32>, vector<32x64xf32>, vector<24x64xf32> -> vector<24x64xf32>
    %c1_181 = arith.constant 1 : index
    %c0_182 = arith.constant 0 : index
    %c0_183 = arith.constant 0 : index
    %377 = vector.load %arg16[%c1_181, %c0_182, %c0_183] : memref<2x1x64xf32, #tpu.memory_space<vmem>>, vector<1x1x64xf32>
    %378 = vector.shape_cast %377 : vector<1x1x64xf32> to vector<1x64xf32>
    %379 = vector.broadcast %378 : vector<1x64xf32> to vector<24x64xf32>
    %380 = arith.addf %376, %379 : vector<24x64xf32>
    %cst_184 = arith.constant 1.702000e+00 : f32
    %381 = vector.broadcast %cst_184 : f32 to vector<24x64xf32>
    %382 = arith.mulf %381, %380 : vector<24x64xf32>
    %383 = arith.negf %382 : vector<24x64xf32>
    %384 = math.exp %383 : vector<24x64xf32>
    %cst_185 = arith.constant 1.000000e+00 : f32
    %385 = vector.broadcast %cst_185 : f32 to vector<24x64xf32>
    %386 = arith.addf %385, %384 : vector<24x64xf32>
    %387 = arith.divf %385, %386 : vector<24x64xf32>
    %388 = arith.mulf %380, %387 : vector<24x64xf32>
    %c1_186 = arith.constant 1 : index
    %c0_187 = arith.constant 0 : index
    %c0_188 = arith.constant 0 : index
    %389 = vector.load %arg17[%c1_186, %c0_187, %c0_188] : memref<2x64x32xf32, #tpu.memory_space<vmem>>, vector<1x64x32xf32>
    %390 = vector.shape_cast %389 : vector<1x64x32xf32> to vector<64x32xf32>
    %cst_189 = arith.constant dense<0.000000e+00> : vector<24x32xf32>
    %391 = tpu.matmul %388, %390, %cst_189 {dimension_numbers = #tpu.dot_dimension_numbers<[1], [0], [0], [1], [0, 0, 1, 1], [], []>} : vector<24x64xf32>, vector<64x32xf32>, vector<24x32xf32> -> vector<24x32xf32>
    %c1_190 = arith.constant 1 : index
    %c0_191 = arith.constant 0 : index
    %c0_192 = arith.constant 0 : index
    %392 = vector.load %arg18[%c1_190, %c0_191, %c0_192] : memref<2x1x32xf32, #tpu.memory_space<vmem>>, vector<1x1x32xf32>
    %393 = vector.shape_cast %392 : vector<1x1x32xf32> to vector<1x32xf32>
    %394 = vector.broadcast %393 : vector<1x32xf32> to vector<24x32xf32>
    %395 = arith.addf %391, %394 : vector<24x32xf32>
    %396 = arith.addf %347, %395 : vector<24x32xf32>
    %c0_193 = arith.constant 0 : index
    %c0_194 = arith.constant 0 : index
    %397 = vector.load %arg23[%c0_193, %c0_194] : memref<24x32xf32, #tpu.memory_space<vmem>>, vector<24x32xf32>
    tpu.vector_store %arg23[%c0_193, %c0_194], %396 {strides = array<i32>} : memref<24x32xf32, #tpu.memory_space<vmem>>, vector<24x32xf32>,
    %c16_195 = arith.constant 16 : index
    %c0_196 = arith.constant 0 : index
    %398 = vector.load %arg23[%c16_195, %c0_196] : memref<24x32xf32, #tpu.memory_space<vmem>>, vector<1x32xf32>
    %c0_197 = arith.constant 0 : index
    %c0_198 = arith.constant 0 : index
    %399 = vector.load %arg19[%c0_197, %c0_198] : memref<1x32xf32, #tpu.memory_space<vmem>>, vector<1x32xf32>
    %c0_199 = arith.constant 0 : index
    %c0_200 = arith.constant 0 : index
    %400 = vector.load %arg20[%c0_199, %c0_200] : memref<1x32xf32, #tpu.memory_space<vmem>>, vector<1x32xf32>
    %cst_201 = arith.constant dense<0.000000e+00> : vector<1xf32>
    %401 = vector.multi_reduction <add>, %398, %cst_201 [1] : vector<1x32xf32> to vector<1xf32>
    %402 = vector.shape_cast %401 : vector<1xf32> to vector<1x1xf32>
    %cst_202 = arith.constant 3.200000e+01 : f32
    %403 = vector.broadcast %cst_202 : f32 to vector<1x1xf32>
    %404 = arith.divf %402, %403 : vector<1x1xf32>
    %405 = vector.broadcast %404 : vector<1x1xf32> to vector<1x32xf32>
    %406 = arith.subf %398, %405 : vector<1x32xf32>
    %407 = arith.mulf %406, %406 : vector<1x32xf32>
    %cst_203 = arith.constant dense<0.000000e+00> : vector<1xf32>
    %408 = vector.multi_reduction <add>, %407, %cst_203 [1] : vector<1x32xf32> to vector<1xf32>
    %409 = vector.shape_cast %408 : vector<1xf32> to vector<1x1xf32>
    %cst_204 = arith.constant 3.200000e+01 : f32
    %410 = vector.broadcast %cst_204 : f32 to vector<1x1xf32>
    %411 = arith.divf %409, %410 : vector<1x1xf32>
    %412 = vector.broadcast %404 : vector<1x1xf32> to vector<1x32xf32>
    %413 = arith.subf %398, %412 : vector<1x32xf32>
    %cst_205 = arith.constant 9.99999974E-6 : f32
    %414 = vector.broadcast %cst_205 : f32 to vector<1x1xf32>
    %415 = arith.addf %411, %414 : vector<1x1xf32>
    %416 = math.rsqrt %415 : vector<1x1xf32>
    %417 = vector.broadcast %416 : vector<1x1xf32> to vector<1x32xf32>
    %418 = arith.mulf %413, %417 : vector<1x32xf32>
    %419 = arith.mulf %418, %399 : vector<1x32xf32>
    %420 = arith.addf %419, %400 : vector<1x32xf32>
    %c0_206 = arith.constant 0 : index
    %c0_207 = arith.constant 0 : index
    %421 = vector.load %arg21[%c0_206, %c0_207] : memref<32x16xf32, #tpu.memory_space<vmem>>, vector<32x16xf32>
    %cst_208 = arith.constant dense<0.000000e+00> : vector<1x16xf32>
    %422 = tpu.matmul %420, %421, %cst_208 {dimension_numbers = #tpu.dot_dimension_numbers<[1], [0], [0], [1], [0, 0, 1, 1], [], []>} : vector<1x32xf32>, vector<32x16xf32>, vector<1x16xf32> -> vector<1x16xf32>
    %423 = vector.shape_cast %422 : vector<1x16xf32> to vector<1x1x16xf32>
    %c0_209 = arith.constant 0 : index
    %c0_210 = arith.constant 0 : index
    %c0_211 = arith.constant 0 : index
    %424 = vector.load %arg22[%c0_209, %c0_210, %c0_211] : memref<1x1x16xf32, #tpu.memory_space<vmem>>, vector<1x1x16xf32>
    tpu.vector_store %arg22[%c0_209, %c0_210, %c0_211], %423 {strides = array<i32>} : memref<1x1x16xf32, #tpu.memory_space<vmem>>, vector<1x1x16xf32>,
    return
  }
  func.func @transform_0(%arg0: i32) -> (i32, i32) {
    %c0_i32 = arith.constant 0 : i32
    %c0_i32_0 = arith.constant 0 : i32
    return %arg0, %c0_i32 : i32, i32
  }
  func.func @transform_1(%arg0: i32) -> (i32, i32) {
    %c0_i32 = arith.constant 0 : i32
    %c0_i32_0 = arith.constant 0 : i32
    %c0_i32_1 = arith.constant 0 : i32
    return %c0_i32, %c0_i32_0 : i32, i32
  }
  func.func @transform_2(%arg0: i32) -> (i32, i32) {
    %c0_i32 = arith.constant 0 : i32
    %c0_i32_0 = arith.constant 0 : i32
    %c0_i32_1 = arith.constant 0 : i32
    return %c0_i32, %c0_i32_0 : i32, i32
  }
  func.func @transform_3(%arg0: i32) -> (i32, i32) {
    %c0_i32 = arith.constant 0 : i32
    %c0_i32_0 = arith.constant 0 : i32
    %c0_i32_1 = arith.constant 0 : i32
    return %c0_i32, %c0_i32_0 : i32, i32
  }
  func.func @transform_4(%arg0: i32) -> (i32, i32) {
    %c0_i32 = arith.constant 0 : i32
    %c0_i32_0 = arith.constant 0 : i32
    %c0_i32_1 = arith.constant 0 : i32
    return %c0_i32, %c0_i32_0 : i32, i32
  }
  func.func @transform_5(%arg0: i32) -> (i32, i32) {
    %c0_i32 = arith.constant 0 : i32
    %c0_i32_0 = arith.constant 0 : i32
    %c0_i32_1 = arith.constant 0 : i32
    return %c0_i32, %c0_i32_0 : i32, i32
  }
  func.func @transform_6(%arg0: i32) -> (i32, i32, i32) {
    %c0_i32 = arith.constant 0 : i32
    %c0_i32_0 = arith.constant 0 : i32
    %c0_i32_1 = arith.constant 0 : i32
    %c0_i32_2 = arith.constant 0 : i32
    return %c0_i32, %c0_i32_0, %c0_i32_1 : i32, i32, i32
  }
  func.func @transform_7(%arg0: i32) -> (i32, i32, i32) {
    %c0_i32 = arith.constant 0 : i32
    %c0_i32_0 = arith.constant 0 : i32
    %c0_i32_1 = arith.constant 0 : i32
    %c0_i32_2 = arith.constant 0 : i32
    return %c0_i32, %c0_i32_0, %c0_i32_1 : i32, i32, i32
  }
  func.func @transform_8(%arg0: i32) -> (i32, i32, i32) {
    %c0_i32 = arith.constant 0 : i32
    %c0_i32_0 = arith.constant 0 : i32
    %c0_i32_1 = arith.constant 0 : i32
    %c0_i32_2 = arith.constant 0 : i32
    return %c0_i32, %c0_i32_0, %c0_i32_1 : i32, i32, i32
  }
  func.func @transform_9(%arg0: i32) -> (i32, i32, i32) {
    %c0_i32 = arith.constant 0 : i32
    %c0_i32_0 = arith.constant 0 : i32
    %c0_i32_1 = arith.constant 0 : i32
    %c0_i32_2 = arith.constant 0 : i32
    return %c0_i32, %c0_i32_0, %c0_i32_1 : i32, i32, i32
  }
  func.func @transform_10(%arg0: i32) -> (i32, i32, i32) {
    %c0_i32 = arith.constant 0 : i32
    %c0_i32_0 = arith.constant 0 : i32
    %c0_i32_1 = arith.constant 0 : i32
    %c0_i32_2 = arith.constant 0 : i32
    return %c0_i32, %c0_i32_0, %c0_i32_1 : i32, i32, i32
  }
  func.func @transform_11(%arg0: i32) -> (i32, i32, i32) {
    %c0_i32 = arith.constant 0 : i32
    %c0_i32_0 = arith.constant 0 : i32
    %c0_i32_1 = arith.constant 0 : i32
    %c0_i32_2 = arith.constant 0 : i32
    return %c0_i32, %c0_i32_0, %c0_i32_1 : i32, i32, i32
  }
  func.func @transform_12(%arg0: i32) -> (i32, i32, i32) {
    %c0_i32 = arith.constant 0 : i32
    %c0_i32_0 = arith.constant 0 : i32
    %c0_i32_1 = arith.constant 0 : i32
    %c0_i32_2 = arith.constant 0 : i32
    return %c0_i32, %c0_i32_0, %c0_i32_1 : i32, i32, i32
  }
  func.func @transform_13(%arg0: i32) -> (i32, i32, i32) {
    %c0_i32 = arith.constant 0 : i32
    %c0_i32_0 = arith.constant 0 : i32
    %c0_i32_1 = arith.constant 0 : i32
    %c0_i32_2 = arith.constant 0 : i32
    return %c0_i32, %c0_i32_0, %c0_i32_1 : i32, i32, i32
  }
  func.func @transform_14(%arg0: i32) -> (i32, i32, i32) {
    %c0_i32 = arith.constant 0 : i32
    %c0_i32_0 = arith.constant 0 : i32
    %c0_i32_1 = arith.constant 0 : i32
    %c0_i32_2 = arith.constant 0 : i32
    return %c0_i32, %c0_i32_0, %c0_i32_1 : i32, i32, i32
  }
  func.func @transform_15(%arg0: i32) -> (i32, i32, i32) {
    %c0_i32 = arith.constant 0 : i32
    %c0_i32_0 = arith.constant 0 : i32
    %c0_i32_1 = arith.constant 0 : i32
    %c0_i32_2 = arith.constant 0 : i32
    return %c0_i32, %c0_i32_0, %c0_i32_1 : i32, i32, i32
  }
  func.func @transform_16(%arg0: i32) -> (i32, i32, i32) {
    %c0_i32 = arith.constant 0 : i32
    %c0_i32_0 = arith.constant 0 : i32
    %c0_i32_1 = arith.constant 0 : i32
    %c0_i32_2 = arith.constant 0 : i32
    return %c0_i32, %c0_i32_0, %c0_i32_1 : i32, i32, i32
  }
  func.func @transform_17(%arg0: i32) -> (i32, i32, i32) {
    %c0_i32 = arith.constant 0 : i32
    %c0_i32_0 = arith.constant 0 : i32
    %c0_i32_1 = arith.constant 0 : i32
    %c0_i32_2 = arith.constant 0 : i32
    return %c0_i32, %c0_i32_0, %c0_i32_1 : i32, i32, i32
  }
  func.func @transform_18(%arg0: i32) -> (i32, i32) {
    %c0_i32 = arith.constant 0 : i32
    %c0_i32_0 = arith.constant 0 : i32
    %c0_i32_1 = arith.constant 0 : i32
    return %c0_i32, %c0_i32_0 : i32, i32
  }
  func.func @transform_19(%arg0: i32) -> (i32, i32) {
    %c0_i32 = arith.constant 0 : i32
    %c0_i32_0 = arith.constant 0 : i32
    %c0_i32_1 = arith.constant 0 : i32
    return %c0_i32, %c0_i32_0 : i32, i32
  }
  func.func @transform_20(%arg0: i32) -> (i32, i32) {
    %c0_i32 = arith.constant 0 : i32
    %c0_i32_0 = arith.constant 0 : i32
    %c0_i32_1 = arith.constant 0 : i32
    return %c0_i32, %c0_i32_0 : i32, i32
  }
  func.func @transform_21(%arg0: i32) -> (i32, i32, i32) {
    %c0_i32 = arith.constant 0 : i32
    %c0_i32_0 = arith.constant 0 : i32
    %c0_i32_1 = arith.constant 0 : i32
    return %arg0, %c0_i32, %c0_i32_0 : i32, i32, i32
  }
}

</mosaic_0001>

<bundles_post_ra>
// kernel: get_image_features.1
= control target key start
LH: loop header
LB: loop body
LE: loop exit
PB: predicated region body
PF: predicated region fallthrough
CT: control target
= control target key end

     0   :  { %s7021_s0 = inlined_call_operand.vmem [shape: f32[32,48], index: 0, kind: input, shape index: {}]   ;;  %s7022_s1 = inlined_call_operand.vmem [shape: f32[48,32], index: 1, kind: input, shape index: {}]   ;;  %s7023_s2 = inlined_call_operand.vmem [shape: f32[1,32], index: 2, kind: input, shape index: {}]   ;;  %s7024_s3 = inlined_call_operand.vmem [shape: f32[16,32], index: 3, kind: input, shape index: {}]   ;;  %s7025_s4 = inlined_call_operand.vmem [shape: f32[1,32], index: 4, kind: input, shape index: {}]   ;;  %s7026_s5 = inlined_call_operand.vmem [shape: f32[1,32], index: 5, kind: input, shape index: {}]   ;;  %s7027_s6 = inlined_call_operand.vmem [shape: f32[2,1,32], index: 6, kind: input, shape index: {}]   ;;  %s7028_s7 = inlined_call_operand.vmem [shape: f32[2,1,32], index: 7, kind: input, shape index: {}]   ;;  %s7029_s8 = inlined_call_operand.vmem [shape: f32[2,32,96], index: 8, kind: input, shape index: {}]   ;;  %s7030_s9 = inlined_call_operand.vmem [shape: f32[2,1,96], index: 9, kind: input, shape index: {}]   ;;  %s7031_s10 = inlined_call_operand.vmem [shape: f32[2,32,32], index: 10, kind: input, shape index: {}]   ;;  %s7032_s11 = inlined_call_operand.vmem [shape: f32[2,1,32], index: 11, kind: input, shape index: {}]   ;;  %s7033_s12 = inlined_call_operand.vmem [shape: f32[2,1,32], index: 12, kind: input, shape index: {}]   ;;  %s7034_s13 = inlined_call_operand.vmem [shape: f32[2,1,32], index: 13, kind: input, shape index: {}]   ;;  %s7035_s14 = inlined_call_operand.vmem [shape: f32[2,32,64], index: 14, kind: input, shape index: {}]   ;;  %s7036_s15 = inlined_call_operand.vmem [shape: f32[2,1,64], index: 15, kind: input, shape index: {}]   ;;  %s7037_s16 = inlined_call_operand.vmem [shape: f32[2,64,32], index: 16, kind: input, shape index: {}]   ;;  %s7038_s17 = inlined_call_operand.vmem [shape: f32[2,1,32], index: 17, kind: input, shape index: {}]   ;;  %s7039_s18 = inlined_call_operand.vmem [shape: f32[1,32], index: 18, kind: input, shape index: {}]   ;;  %s7040_s19 = inlined_call_operand.vmem [shape: f32[1,32], index: 19, kind: input, shape index: {}]   ;;  %s7041_s20 = inlined_call_operand.vmem [shape: f32[32,16], index: 20, kind: input, shape index: {}]   ;;  %s7042_s21 = inlined_call_operand.hbm [shape: f32[2,1,16], index: 21, kind: output, shape index: {}]  }
   0x1   :  { %7069 = sst [smem:[#allocation12_spill]] %s7021_s0 }
   0x2   :  { %7070 = sst [smem:[#allocation13_spill]] %s7022_s1 }
   0x3   :  { %7071 = sst [smem:[#allocation14_spill]] %s7023_s2 }
   0x4   :  { %7072 = sst [smem:[#allocation15_spill]] %s7024_s3 }
   0x5   :  { %7073 = sst [smem:[#allocation16_spill]] %s7025_s4 }
   0x6   :  { %7074 = sst [smem:[#allocation17_spill]] %s7026_s5 }
   0x7   :  { %26 = vsyncpa [#allocation4], 0 }
   0x8   :  { %28 = vsyncpa [#allocation4 + $0x1], 0  ;;  %s6022_s2 = smov 0   ;;  %s6024_s25 = smov 0  }
   0x9   :  { %s6026_s26 = smov 0   ;;  %s6028_s27 = smov 0  }
   0xa LB: > { %7075 = sst [smem:[#allocation6_spill]] %s5882_s2  ;;  %s6043_s3 = sadd.s32 4294967295, %s5894_s27   ;;  %s5894_s27 = sphi %s6028_s27, %s7103_s27   ;;  %s5890_s26 = sphi %s6026_s26, %s7105_s26   ;;  %s5886_s25 = sphi %s6024_s25, %s7107_s25   ;;  %s5882_s2 = sphi %s6022_s2, %s7106_s2  }
   0xb   : > { %7076 = sst [smem:[#allocation7_spill]] %s5890_s26  ;;  %s4573_s28 = sadd.s32 4294967294, %s5894_s27  }
   0xc   : > { %7077 = sst [smem:[#allocation8_spill]] %s5894_s27  ;;  %s6047_s29 = sadd.s32 1, %s5894_s27  }
   0xd   : > { %7078 = sst [smem:[#allocation9_spill]] %s6047_s29  ;;  %s487_s0 = sadd.s32 1, %s5890_s26 }
   0xe   : > { %s484_s4 = ssub.s32 %s5894_s27, %s6047_s29  ;;  %p497_p0 = scmp.ne.s32.totalorder %s5890_s26, %s5886_s25 }
   0xf   : > { %p485_p1 = scmp.eq.s32.totalorder %s484_s4, 0  ;;  %p498_p2 = scmp.eq.s32.totalorder %s6043_s3, 1 }
  0x10   : > { %p503_p3 = scmp.ne.s32.totalorder %s5886_s25, %s5882_s2  ;;  %p504_p4 = scmp.eq.s32.totalorder %s4573_s28, 1 }
  0x11   : > { %s6058_s30 = scalar_select %p485_p1, %s5890_s26, %s487_s0  }
  0x12   : > { %p6060_p5 = por %p498_p2, %p497_p0  ;;  %p6064_p6 = por %p504_p4, %p503_p3 }
  0x13   : > { %7079 = sst [smem:[#allocation10_spill]] %s6058_s30  ;;  %p4576_p7 = scmp.ge.s32.totalorder %s5894_s27, 1 }
  0x14   : > { %s7081_s22 = scalar_select %p6064_p6, 1, 0 }
  0x15   : > { %p591_p8 = scmp.lt.s32.totalorder %s5894_s27, 3 }
  0x16   : > { %7082 = sst [smem:[#allocation11_spill]] %s7081_s22 }
  0x17   : > { %p592_p9 = pnand %p4576_p7, %p591_p8 }
  0x18   : > { %s7083_s24 = sld [smem:[#allocation13_spill]] (!%p592_p9)  ;;  %s4577_s26 = sshll.u32 (!%p592_p9), %s6043_s3, 1  ;;  %vm666_vm0 = vcmask (!%p592_p9), 392192   ;;  %vm748_vm1 = vcmask (!%p592_p9), 261120   ;;  %v5896_v11 = vmov (!%p592_p9), 0.0   ;;  %vm755_vm2 = vcmask (!%p592_p9), 253952  }
  0x19   : > { %595 = sbr.rel (%p592_p9) target bundleno = 9184 (0x23e0), region = 104  ;;  %p651_p10 = scmp.lt.s32.totalorder (!%p592_p9), %s4577_s26, 3  ;;  %750 = vst.msk [vmem:[#allocation2 + $0x8] sm:$0xff] (!%p592_p9), %vm748_vm1, %v5896_v11  ;;  %749 = vst.msk [vmem:[#allocation2] sm:$0xff] (!%p592_p9), %vm748_vm1, %v5896_v11  ;;  %vm5898_vm3 = vmmov (!%p592_p9), 0   ;;  %vm1005_vm4 = vcmask (!%p592_p9), 64512  }
  0x1a   : > { %s7084_s22 = sld [smem:[#allocation12_spill]] (!%p592_p9)  ;;  %751 = vst.msk [vmem:[#allocation2 + $0x10] sm:$0xff] (!%p592_p9), %vm748_vm1, %v5896_v11  ;;  %s7085_s27 = sld [smem:[#allocation14_spill]] (!%p592_p9)  ;;  %4965 = vmatprep.mubr.msk.f32.mxu1 (!%p592_p9), %vm5898_vm3, %v5896_v11  ;;  %vm6179_vm5 = vmpackc.low (!%p592_p9), %vm1005_vm4, %vm1005_vm4  ;;  %vm1101_vm7 = vcmask (!%p592_p9), 195584   ;;  %vm2517_vm8 = vcmask (!%p592_p9), 523264   ;;  %vm4503_vm9 = vcmask (!%p592_p9), 122880  }
  0x1b   : > { %s7086_s1 = sld [smem:[#allocation15_spill]] (!%p592_p9)  ;;  %s5899_s29 = smov (!%p592_p9), 96  }
  0x1c   : > { %s7067_s2 = smov (!%p592_p9), 120   ;;  %s7059_s4 = smov (!%p592_p9), 112  }
  0x1d   : > { %s7053_s28 = smov (!%p592_p9), 72   ;;  %s7051_s23 = smov (!%p592_p9), 104  }
  0x1e   : > { %v658_v0 = vld [vmem:[%s7083_s24] sm:$0xff] (!%p592_p9)  ;;  %v659_v1 = vld [vmem:[%s7083_s24 + $0x8] sm:$0xff] (!%p592_p9)  ;;  %v660_v2 = vld [vmem:[%s7083_s24 + $0x10] sm:$0xff] (!%p592_p9) }
  0x1f   : > { %v5414_v3 = vpack.c.bf16 (!%p592_p9), %v659_v1, %v658_v0  ;;  %v661_v4 = vld [vmem:[%s7083_s24 + $0x18] sm:$0xff] (!%p592_p9)  ;;  %v662_v6 = vld [vmem:[%s7083_s24 + $0x20] sm:$0xff] (!%p592_p9)  ;;  %v663_v7 = vld [vmem:[%s7083_s24 + $0x28] sm:$0xff] (!%p592_p9) }
  0x20   : > { %v5418_v5 = vpack.c.bf16 %v661_v4, %v660_v2  ;;  %s7109_s26 = smov (!%p651_p10, %s4577_s26), 3  ;;  %v5422_v8 = vpack.c.bf16 %v663_v7, %v662_v6  ;;  %v754_v12 = vld [vmem:[%s7085_s27] sm:$0x1]  ;;  %s7088_s27 = sld [smem:[#allocation17_spill]] }
  0x21   : > { %5415 = vmatprep.subr.bf16.mxu0 %v5414_v3  ;;  %s4578_s30 = sshll.u32 %s7109_s26, 3  ;;  %756 = vst.msk [vmem:[#allocation2 + $0x10] sm:$0x1] %vm755_vm2, %v754_v12  ;;  %v665_v15 = vld [vmem:[%s7086_s1 + $0x8] sm:$0xff]  ;;  %v664_v16 = vld [vmem:[%s7086_s1] sm:$0xff]  ;;  %s7063_s26 = smov 56  }
  0x22   : > { %5417 = vmatpush3.bf16.msra.mxu0 %v5414_v3  ;;  %s654_s0 = scalar_lea.vmem %s7084_s22, %s4578_s30  ;;  %s7065_s22 = smov 64  }
  0x23   : > { %5419 = vmatprep.subr.bf16.mxu0 %v5418_v5  ;;  %v656_v9 = vld [vmem:[%s654_s0] sm:$0xff]  ;;  %v657_v10 = vld [vmem:[%s654_s0 + $0x8] sm:$0xff]  ;;  %s7087_s0 = sld [smem:[#allocation16_spill]]  ;;  %s7057_s30 = smov 48  }
  0x24   : > { %4954 = vmatprep.mubr.msk.f32.mxu0 %vm666_vm0, %v656_v9 }
  0x26   : > { %5421 = vmatpush3.bf16.msra.mxu0 %v5418_v5  ;;  %v4582_v52 = vld [vmem:[%s7088_s27] ss:$0 sm:$0xff]  ;;  %s7061_s27 = smov 80  }
  0x27   : > { %5423 = vmatprep.subr.bf16.mxu0 %v5422_v8 }
  0x28   : > { %v759_v13 = vld [vmem:[#allocation2 + $0x10] sm:$0xff] }
  0x29   : > { %v768_v14 = vsel %vm748_vm1, %v759_v13, 0.0  ;;  %v4581_v50 = vld [vmem:[%s7087_s0] ss:$0 sm:$0xff]  ;;  %s5902_s0 = smov 88  }
  0x2a   : > { %5425 = vmatpush3.bf16.msra.mxu0 %v5422_v8  ;;  %769 = vadd.xlane.f32.xlu1 %v768_v14 }
  0x2d   : > { %4955 = vmatmul.mubr.msk.f32.vlgmr.msra.gmra.mrb[0].mxu0 %vm666_vm0, %v657_v10 }
  0x2e   : > { %4995 = vmatprep.mubr.msk.f32.mxu0 %vm5898_vm3, %v5896_v11 }
  0xb7   : > { %v770_v25 = vpop.xlane.xlu1 %769 }
  0xb8   : > { %v774_v26 = vmul.f32 0.03125, %v770_v25 }
  0xba   : > { %v777_v29 = vsub.f32 %v759_v13, %v774_v26  ;;  %v892_v26 = vld [vmem:[%s7029_s8 + $0x18] sm:$0xff] }
  0xbc   : > { %v780_v34 = vmul.f32 %v777_v29, %v777_v29 }
  0xbe   : > { %v787_v37 = vsel %vm748_vm1, %v780_v34, 0.0 }
 0x100   : > { %v4956_v17 = vpop.f32.mrb[0].mxu0 }
 0x101   : > { %v745_v18 = vadd.f32 %v4956_v17, %v665_v15  ;;  %v739_v19 = vpop.f32.mrb[1].mxu0 }
 0x102   : > { %v740_v20 = vadd.f32 %v739_v19, %v664_v16 }
 0x103   : > { %753 = vst.msk [vmem:[#allocation2 + $0x8] sm:$0xff] %vm748_vm1, %v745_v18 }
 0x104   : > { %752 = vst.msk [vmem:[#allocation2] sm:$0xff] %vm748_vm1, %v740_v20 }
 0x10a   : > { %v758_v23 = vld [vmem:[#allocation2 + $0x8] sm:$0xff] }
 0x10b   : > { %v757_v21 = vld [vmem:[#allocation2] sm:$0xff]  ;;  %v765_v24 = vsel %vm748_vm1, %v758_v23, 0.0 }
 0x10c   : > { %v762_v22 = vsel %vm748_vm1, %v757_v21, 0.0 }
 0x10d   : > { %763 = vadd.xlane.f32.xlu0 %v762_v22  ;;  %v890_v22 = vld [vmem:[%s7029_s8 + $0x8] sm:$0xff] }
 0x111   : > { %766 = vadd.xlane.f32.xlu0 %v765_v24  ;;  %v5897_v24 = vmov 0.0|0.0  }
 0x112   : > { %5426 = vmatprep.subr.bf16.mxu1 %v5897_v24  ;;  %5436 = vmatprep.subr.bf16.mxu0 %v5897_v24 }
 0x19a   : > { %v764_v27 = vpop.xlane.xlu0 %763 }
 0x19b   : > { %v772_v28 = vmul.f32 0.03125, %v764_v27 }
 0x19d   : > { %v775_v30 = vsub.f32 %v757_v21, %v772_v28  ;;  %v889_v21 = vld [vmem:[%s7029_s8] sm:$0xff] }
 0x19e   : > { %v767_v31 = vpop.xlane.xlu0 %766  ;;  %v5427_v25 = vpack.c.bf16 %v890_v22, %v889_v21 }
 0x19f   : > { %v773_v32 = vmul.f32 0.03125, %v767_v31  ;;  %v778_v33 = vmul.f32 %v775_v30, %v775_v30 }
 0x1a0   : > { %5428 = vmatpush3.bf16.msra.mxu1 %v5427_v25 }
 0x1a1   : > { %v776_v35 = vsub.f32 %v758_v23, %v773_v32  ;;  %v781_v36 = vsel %vm748_vm1, %v778_v33, 0.0  ;;  %v891_v23 = vld [vmem:[%s7029_s8 + $0x10] sm:$0xff]  ;;  %5429 = vmatprep.subr.bf16.mxu1 %v5897_v24 }
 0x1a2   : > { %782 = vadd.xlane.f32.xlu1 %v781_v36  ;;  %v5430_v27 = vpack.c.bf16 %v892_v26, %v891_v23 }
 0x1a3   : > { %v779_v38 = vmul.f32 %v776_v35, %v776_v35 }
 0x1a4   : > { %5431 = vmatpush3.bf16.msra.mxu1 %v5430_v27 }
 0x1a5   : > { %v784_v39 = vsel %vm748_vm1, %v779_v38, 0.0  ;;  %5432 = vmatprep.subr.bf16.mxu1 %v5897_v24  ;;  %v4583_v38 = vld [vmem:[%s7027_s6] ss:$0 sm:$0xff] }
 0x1a6   : > { %788 = vadd.xlane.f32.xlu1 %v787_v37  ;;  %785 = vadd.xlane.f32.xlu0 %v784_v39 }
 0x22f   : > { %v783_v40 = vpop.xlane.xlu1 %782 }
 0x230   : > { %v790_v41 = vmul.f32 0.03125, %v783_v40  ;;  %v4584_v40 = vld [vmem:[%s7028_s7] ss:$0 sm:$0xff] }
 0x232   : > { %v793_v42 = vadd.f32 1e-05, %v790_v41 }
 0x233   : > { %v789_v43 = vpop.xlane.xlu1 %788  ;;  %v786_v44 = vpop.xlane.xlu0 %785 }
 0x234   : > { %5674 = vrsqrt.f32 %v793_v42  ;;  %v792_v45 = vmul.f32 0.03125, %v789_v43  ;;  %v791_v46 = vmul.f32 0.03125, %v786_v44 }
 0x236   : > { %v795_v47 = vadd.f32 1e-05, %v792_v45  ;;  %v794_v48 = vadd.f32 1e-05, %v791_v46 }
 0x238   : > { %5676 = vrsqrt.f32 %v795_v47 }
 0x239   : > { %5678 = vrsqrt.f32 %v794_v48 }
 0x23e   : > { %v5675_v49 = vpop.eup %5674 }
 0x23f   : > { %v799_v51 = vmul.f32 %v5675_v49, %v775_v30 }
 0x241   : > { %v808_v53 = vmul.f32 %v4581_v50, %v799_v51 }
 0x242   : > { %v5677_v54 = vpop.eup %5676 }
 0x243   : > { %v5679_v55 = vpop.eup %5678  ;;  %v817_v56 = vadd.f32 %v4582_v52, %v808_v53  ;;  %v801_v57 = vmul.f32 %v5677_v54, %v777_v29  ;;  %v4585_v53 = vld [vmem:[%s7030_s9] ss:$0 sm:$0xff] }
 0x244   : > { %v800_v58 = vmul.f32 %v5679_v55, %v776_v35 }
 0x245   : > { %820 = vst.msk [vmem:[#allocation2] sm:$0xff] %vm748_vm1, %v817_v56  ;;  %v810_v59 = vmul.f32 %v4581_v50, %v801_v57 }
 0x246   : > { %v809_v60 = vmul.f32 %v4581_v50, %v800_v58 }
 0x247   : > { %v819_v61 = vadd.f32 %v4582_v52, %v810_v59 }
 0x248   : > { %v818_v62 = vadd.f32 %v4582_v52, %v809_v60 }
 0x249   : > { %822 = vst.msk [vmem:[#allocation2 + $0x10] sm:$0xff] %vm748_vm1, %v819_v61 }
 0x24a   : > { %821 = vst.msk [vmem:[#allocation2 + $0x8] sm:$0xff] %vm748_vm1, %v818_v62 }
 0x24c   : > { %v827_v63 = vld [vmem:[#allocation2] sm:$0xff] }
 0x24d   : > { %v832_v0 = vsel %vm748_vm1, %v827_v63, 0.0 }
 0x24e   : > { %833 = vadd.xlane.f32.xlu0 %v832_v0 }
 0x250   : > { %v829_v1 = vld [vmem:[#allocation2 + $0x10] sm:$0xff] }
 0x251   : > { %v838_v2 = vsel %vm748_vm1, %v829_v1, 0.0  ;;  %v828_v3 = vld [vmem:[#allocation2 + $0x8] sm:$0xff] }
 0x252   : > { %839 = vadd.xlane.f32.xlu0 %v838_v2  ;;  %v835_v4 = vsel %vm748_vm1, %v828_v3, 0.0 }
 0x253   : > { %836 = vadd.xlane.f32.xlu1 %v835_v4 }
 0x2db   : > { %v834_v5 = vpop.xlane.xlu0 %833 }
 0x2dc   : > { %v841_v6 = vmul.f32 0.03125, %v834_v5 }
 0x2de   : > { %v844_v7 = vsub.f32 %v827_v63, %v841_v6 }
 0x2df   : > { %v840_v8 = vpop.xlane.xlu0 %839 }
 0x2e0   : > { %v837_v9 = vpop.xlane.xlu1 %836  ;;  %v843_v10 = vmul.f32 0.03125, %v840_v8  ;;  %v847_v12 = vmul.f32 %v844_v7, %v844_v7 }
 0x2e1   : > { %v842_v13 = vmul.f32 0.03125, %v837_v9  ;;  %v5900_v9 = vmov -1e+30  }
 0x2e2   : > { %v846_v14 = vsub.f32 %v829_v1, %v843_v10  ;;  %v850_v15 = vsel %vm748_vm1, %v847_v12, 0.0 }
 0x2e3   : > { %v845_v16 = vsub.f32 %v828_v3, %v842_v13  ;;  %851 = vadd.xlane.f32.xlu1 %v850_v15 }
 0x2e4   : > { %v849_v17 = vmul.f32 %v846_v14, %v846_v14 }
 0x2e5   : > { %v848_v18 = vmul.f32 %v845_v16, %v845_v16 }
 0x2e6   : > { %v856_v19 = vsel %vm748_vm1, %v849_v17, 0.0 }
 0x2e7   : > { %v853_v20 = vsel %vm748_vm1, %v848_v18, 0.0  ;;  %857 = vadd.xlane.f32.xlu1 %v856_v19 }
 0x2e8   : > { %854 = vadd.xlane.f32.xlu0 %v853_v20 }
 0x370   : > { %v852_v28 = vpop.xlane.xlu1 %851 }
 0x371   : > { %v859_v29 = vmul.f32 0.03125, %v852_v28 }
 0x373   : > { %v862_v30 = vadd.f32 1e-05, %v859_v29 }
 0x374   : > { %v858_v31 = vpop.xlane.xlu1 %857 }
 0x375   : > { %5680 = vrsqrt.f32 %v862_v30  ;;  %v861_v32 = vmul.f32 0.03125, %v858_v31  ;;  %v855_v33 = vpop.xlane.xlu0 %854 }
 0x376   : > { %v860_v34 = vmul.f32 0.03125, %v855_v33 }
 0x377   : > { %v864_v35 = vadd.f32 1e-05, %v861_v32 }
 0x378   : > { %v863_v36 = vadd.f32 1e-05, %v860_v34 }
 0x379   : > { %5682 = vrsqrt.f32 %v864_v35 }
 0x37a   : > { %5684 = vrsqrt.f32 %v863_v36 }
 0x37f   : > { %v5681_v37 = vpop.eup %5680 }
 0x380   : > { %v868_v39 = vmul.f32 %v5681_v37, %v844_v7  ;;  %v823_v7 = vlaneseq }
 0x382   : > { %v877_v41 = vmul.f32 %v4583_v38, %v868_v39  ;;  %v824_v8 = vand.u32 127, %v823_v7 }
 0x383   : > { %v5683_v42 = vpop.eup %5682 }
 0x384   : > { %v5685_v43 = vpop.eup %5684  ;;  %v886_v44 = vadd.f32 %v4584_v40, %v877_v41  ;;  %v870_v46 = vmul.f32 %v5683_v42, %v846_v14  ;;  %vm825_vm6 = vcmp.lt.s32.totalorder %v824_v8, 17 }
 0x385   : > { %v869_v45 = vmul.f32 %v5685_v43, %v845_v16  ;;  %v6207_v10 = vsel %vm825_vm6, 0.0, %v5900_v9 }
 0x386   : > { %4966 = vmatmul.mubr.msk.f32.vlgmr.msra.gmra.mrb[0].mxu1 %vm748_vm1, %v886_v44  ;;  %v879_v49 = vmul.f32 %v4583_v38, %v870_v46 }
 0x387   : > { %4968 = vmatprep.mubr.msk.f32.mxu1 %vm5898_vm3, %v5896_v11  ;;  %v878_v47 = vmul.f32 %v4583_v38, %v869_v45 }
 0x388   : > { %v888_v50 = vadd.f32 %v4584_v40, %v879_v49 }
 0x389   : > { %v887_v48 = vadd.f32 %v4584_v40, %v878_v47 }
 0x38b   : > { %4969 = vmatmul.mubr.msk.f32.gmra.mrb[2].mxu1 %vm748_vm1, %v887_v48 }
 0x38c   : > { %4971 = vmatprep.mubr.msk.f32.mxu1 %vm5898_vm3, %v5896_v11 }
 0x38f   : > { %4972 = vmatmul.mubr.msk.f32.gmra.mrb[4].mxu1 %vm748_vm1, %v888_v50 }
 0x390   : > { %4980 = vmatprep.mubr.msk.f32.mxu1 %vm5898_vm3, %v5896_v11 }
 0x459   : > { %v975_v51 = vpop.f32.mrb[0].mxu1 }
 0x45a   : > { %v4967_v52 = vpop.f32.mrb[1].mxu1  ;;  %v976_v55 = vadd.f32 %v4585_v53, %v975_v51 }
 0x45c   : > { %v6187_v4 = vmul.f32 0.35355338, %v976_v55 }
 0x45e   : > { %v980_v54 = vpop.f32.mrb[2].mxu1 }
 0x45f   : > { %v981_v56 = vadd.f32 %v4585_v53, %v980_v54  ;;  %v4970_v57 = vpop.f32.mrb[3].mxu1 }
 0x461   : > { %v6169_v58 = vpack.i.bf16 %v981_v56, %v976_v55  ;;  %v6194_v5 = vmul.f32 0.35355338, %v981_v56 }
 0x462   : > { %v985_v59 = vpop.f32.mrb[4].mxu1 }
 0x463   : > { %v6171_v60 = vadd.f32 %v4585_v53, %v985_v59  ;;  %5595 = vrot.lane.b32.xlu0 %v6169_v58, %s5899_s29  ;;  %v4973_v61 = vpop.f32.mrb[5].mxu1 }
 0x465   : > { %1003 = vrot.lane.b32.xlu1 %v6171_v60, %s5899_s29  ;;  %v6201_v6 = vmul.f32 0.35355338, %v6171_v60 }
 0x4d5   : > { %v5596_v62 = vpop.permute.xlu0 %5595 }
 0x4d6   : > { %v5598_v63 = vunpack.i.h.bf16 %v5596_v62  ;;  %v5597_v0 = vunpack.i.l.bf16 %v5596_v62 }
 0x4d7   : > { %v1004_v3 = vpop.permute.xlu1 %1003 }
 0x4d8   : > { %v5433_v2 = vpack.c.bf16 %v5598_v63, %v5597_v0 }
 0x4da   : > { %5435 = vmatpush3.bf16.xpose.msk.msra.mxu1 %vm6179_vm5, %v5433_v2 }
 0x4db   : > { %4978 = vmatprep.subr.mxu1 %v5896_v11 }
 0x4e2   : > { %4979 = vmatpush3.xpose.msk.msra.mxu1 %vm1005_vm4, %v1004_v3 }
 0x4e3   : > { %5443 = vmatprep.subr.bf16.mxu1 %v5897_v24 }
 0x4e5   : > { %4981 = vmatmul.mubr.msk.f32.vlgmr.msra.gmra.mrb[6].mxu1 %vm1005_vm4, %v6187_v4 }
 0x4e6   : > { %4983 = vmatprep.mubr.msk.f32.mxu1 %vm5898_vm3, %v5896_v11 }
 0x4e9   : > { %4984 = vmatmul.mubr.msk.f32.gmra.mrb[8].mxu1 %vm1005_vm4, %v6194_v5 }
 0x4ea   : > { %4986 = vmatprep.mubr.msk.f32.mxu1 %vm5898_vm3, %v5896_v11 }
 0x4ed   : > { %4987 = vmatmul.mubr.msk.f32.gmra.mrb[10].mxu1 %vm1005_vm4, %v6201_v6 }
 0x4ee   : > { %5025 = vmatprep.mubr.msk.f32.mxu1 %vm5898_vm3, %v5896_v11 }
 0x5b8   : > { %v1087_v12 = vpop.f32.mrb[6].mxu1 }
 0x5b9   : > { %v1088_v13 = vadd.f32 %v1087_v12, %v6207_v10  ;;  %v4982_v14 = vpop.f32.mrb[7].mxu1 }
 0x5bb   : > { %v1102_v15 = vsel %vm1101_vm7, %v1088_v13, -inf }
 0x5bc   : > { %1103 = vmax.xlane.f32.xlu1 %v1102_v15  ;;  %v1092_v16 = vpop.f32.mrb[8].mxu1 }
 0x5bd   : > { %v1093_v17 = vadd.f32 %v1092_v16, %v6207_v10  ;;  %v4985_v18 = vpop.f32.mrb[9].mxu1 }
 0x5bf   : > { %v1105_v19 = vsel %vm1101_vm7, %v1093_v17, -inf }
 0x5c0   : > { %1106 = vmax.xlane.f32.xlu0 %v1105_v19  ;;  %v1097_v20 = vpop.f32.mrb[10].mxu1 }
 0x5c1   : > { %v1098_v21 = vadd.f32 %v1097_v20, %v6207_v10  ;;  %v4988_v22 = vpop.f32.mrb[11].mxu1 }
 0x5c3   : > { %v1108_v23 = vsel %vm1101_vm7, %v1098_v21, -inf }
 0x5c4   : > { %1109 = vmax.xlane.f32.xlu0 %v1108_v23 }
 0x649   : > { %v1104_v25 = vpop.xlane.xlu1 %1103 }
 0x64a   : > { %v1111_v26 = vsub.f32 %v1088_v13, %v1104_v25 }
 0x64c   : > { %v1114_v27 = vmul.f32 1.442695, %v1111_v26 }
 0x64d   : > { %v1107_v28 = vpop.xlane.xlu0 %1106 }
 0x64e   : > { %5686 = vpow2.f32 %v1114_v27  ;;  %v1112_v29 = vsub.f32 %v1093_v17, %v1107_v28 }
 0x650   : > { %v1116_v30 = vmul.f32 1.442695, %v1112_v29 }
 0x651   : > { %v1110_v35 = vpop.xlane.xlu0 %1109 }
 0x652   : > { %5688 = vpow2.f32 %v1116_v30  ;;  %v1113_v36 = vsub.f32 %v1098_v21, %v1110_v35 }
 0x654   : > { %v1118_v37 = vmul.f32 1.442695, %v1113_v36 }
 0x656   : > { %5690 = vpow2.f32 %v1118_v37 }
 0x658   : > { %v5687_v31 = vpop.eup %5686 }
 0x659   : > { %v1120_v32 = vsel %vm1101_vm7, %v5687_v31, 0.0 }
 0x65a   : > { %1121 = vadd.xlane.f32.xlu1 %v1120_v32 }
 0x65c   : > { %v5689_v33 = vpop.eup %5688 }
 0x65d   : > { %v1123_v34 = vsel %vm1101_vm7, %v5689_v33, 0.0 }
 0x65e   : > { %1124 = vadd.xlane.f32.xlu0 %v1123_v34 }
 0x660   : > { %v5691_v38 = vpop.eup %5690 }
 0x661   : > { %v1126_v39 = vsel %vm1101_vm7, %v5691_v38, 0.0 }
 0x66b   : > { %1139 = vrot.lane.b32.xlu1 %v6171_v60, %s7065_s22 }
 0x66f   : > { %5605 = vrot.lane.b32.xlu1 %v6169_v58, %s5902_s0 }
 0x673   : > { %1243 = vrot.lane.b32.xlu1 %v6171_v60, %s5902_s0 }
 0x674   : > { %5600 = vrot.lane.b32.xlu0 %v6169_v58, %s7065_s22 }
 0x678   : > { %1233 = vrot.lane.b32.xlu0 %v6187_v4, %s7067_s2 }
 0x67c   : > { %1237 = vrot.lane.b32.xlu0 %v6201_v6, %s7067_s2 }
 0x697   : > { %1127 = vadd.xlane.f32.xlu1 %v1126_v39 }
 0x6a8   : > { %1235 = vrot.lane.b32.xlu1 %v6194_v5, %s7067_s2 }
 0x6e7   : > { %v1122_v40 = vpop.xlane.xlu1 %1121 }
 0x6e8   : > { %5692 = vrcp.f32 %v1122_v40  ;;  %v990_v40 = vld [vmem:[%s7031_s10 + $0x8] sm:$0xff] }
 0x6eb   : > { %v1125_v41 = vpop.xlane.xlu0 %1124  ;;  %v1140_v43 = vpop.permute.xlu1 %1139 }
 0x6ec   : > { %5694 = vrcp.f32 %v1125_v41 }
 0x6ef   : > { %v5601_v42 = vpop.permute.xlu0 %5600  ;;  %v5606_v48 = vpop.permute.xlu1 %5605 }
 0x6f0   : > { %v5603_v44 = vunpack.i.h.bf16 %v5601_v42  ;;  %v5602_v45 = vunpack.i.l.bf16 %v5601_v42  ;;  %v5608_v51 = vunpack.i.h.bf16 %v5606_v48  ;;  %v5607_v52 = vunpack.i.l.bf16 %v5606_v48 }
 0x6f2   : > { %v5437_v46 = vpack.c.bf16 %v5603_v44, %v5602_v45  ;;  %v5693_v47 = vpop.eup %5692  ;;  %v5440_v54 = vpack.c.bf16 %v5608_v51, %v5607_v52  ;;  %v989_v51 = vld [vmem:[%s7031_s10] sm:$0xff] }
 0x6f3   : > { %v1132_v49 = vmul.f32 %v5693_v47, %v5687_v31  ;;  %v1244_v55 = vpop.permute.xlu1 %1243  ;;  %v1234_v61 = vpop.permute.xlu0 %1233 }
 0x6f4   : > { %5438 = vmatpush3.bf16.msra.mxu0 %v5437_v46 }
 0x6f5   : > { %4993 = vmatprep.subr.mxu0 %v5896_v11 }
 0x6f6   : > { %v5695_v50 = vpop.eup %5694 }
 0x6f7   : > { %v1133_v53 = vmul.f32 %v5695_v50, %v5689_v33  ;;  %v1238_v63 = vpop.permute.xlu0 %1237 }
 0x6f8   : > { %4994 = vmatpush3.msra.mxu0 %v1140_v43 }
 0x6f9   : > { %4996 = vmatmul.mubr.msk.f32.vlgmr.msra.gmra.mrb[2].mxu0 %vm1101_vm7, %v1132_v49  ;;  %5439 = vmatprep.subr.bf16.mxu0 %v5897_v24 }
 0x6fa   : > { %4998 = vmatprep.mubr.msk.f32.mxu0 %vm5898_vm3, %v5896_v11 }
 0x6fd   : > { %4999 = vmatmul.mubr.msk.f32.gmra.mrb[4].mxu0 %vm1101_vm7, %v1133_v53 }
 0x6fe   : > { %5001 = vmatprep.mubr.msk.f32.mxu0 %vm5898_vm3, %v5896_v11 }
 0x6ff   : > { %5442 = vmatpush3.bf16.xpose.msk.msra.mxu0 %vm6179_vm5, %v5440_v54 }
 0x700   : > { %5008 = vmatprep.subr.mxu0 %v5896_v11 }
 0x707   : > { %5009 = vmatpush3.xpose.msk.msra.mxu0 %vm1005_vm4, %v1244_v55 }
 0x708   : > { %5034 = vmatprep.subr.mxu0 %v5896_v11 }
 0x724   : > { %v1128_v56 = vpop.xlane.xlu1 %1127 }
 0x725   : > { %5696 = vrcp.f32 %v1128_v56 }
 0x728   : > { %v1236_v62 = vpop.permute.xlu1 %1235 }
 0x72f   : > { %v5697_v57 = vpop.eup %5696 }
 0x730   : > { %v1134_v59 = vmul.f32 %v5697_v57, %v5691_v38 }
 0x732   : > { %5002 = vmatmul.mubr.msk.f32.gmra.mrb[6].mxu0 %vm1101_vm7, %v1134_v59 }
 0x733   : > { %5010 = vmatprep.mubr.msk.f32.mxu0 %vm5898_vm3, %v5896_v11 }
 0x736   : > { %5011 = vmatmul.mubr.msk.f32.vlgmr.msra.gmra.mrb[8].mxu0 %vm1005_vm4, %v1234_v61 }
 0x737   : > { %5013 = vmatprep.mubr.msk.f32.mxu0 %vm5898_vm3, %v5896_v11  ;;  %5035 = vmatpush3.msra.mxu0 %v990_v40 }
 0x738   : > { %5446 = vmatprep.subr.bf16.mxu0 %v5897_v24 }
 0x73a   : > { %5014 = vmatmul.mubr.msk.f32.gmra.mrb[10].mxu0 %vm1005_vm4, %v1236_v62 }
 0x73b   : > { %5016 = vmatprep.mubr.msk.f32.mxu0 %vm5898_vm3, %v5896_v11 }
 0x73e   : > { %5017 = vmatmul.mubr.msk.f32.gmra.mrb[12].mxu0 %vm1005_vm4, %v1238_v63 }
 0x73f   : > { %5036 = vmatprep.mubr.msk.f32.mxu0 %vm5898_vm3, %v5896_v11 }
 0x7cc   : > { %v6257_v0 = vpop.f32.mrb[2].mxu0 }
 0x7cd   : > { %v4997_v2 = vpop.f32.mrb[3].mxu0 }
 0x7d0   : > { %v6259_v3 = vpop.f32.mrb[4].mxu0 }
 0x7d1   : > { %v5000_v7 = vpop.f32.mrb[5].mxu0 }
 0x805   : > { %v6261_v8 = vpop.f32.mrb[6].mxu0 }
 0x806   : > { %v5003_v9 = vpop.f32.mrb[7].mxu0 }
 0x809   : > { %v1323_v12 = vpop.f32.mrb[8].mxu0 }
 0x80a   : > { %v1324_v13 = vadd.f32 %v1323_v12, %v6207_v10  ;;  %v5012_v14 = vpop.f32.mrb[9].mxu0 }
 0x80c   : > { %v1337_v15 = vsel %vm1101_vm7, %v1324_v13, -inf }
 0x80d   : > { %1338 = vmax.xlane.f32.xlu1 %v1337_v15  ;;  %v1328_v16 = vpop.f32.mrb[10].mxu0 }
 0x80e   : > { %v1329_v17 = vadd.f32 %v1328_v16, %v6207_v10  ;;  %v5015_v18 = vpop.f32.mrb[11].mxu0 }
 0x810   : > { %v1340_v19 = vsel %vm1101_vm7, %v1329_v17, -inf }
 0x811   : > { %1341 = vmax.xlane.f32.xlu0 %v1340_v19  ;;  %v1333_v20 = vpop.f32.mrb[12].mxu0 }
 0x812   : > { %v1334_v21 = vadd.f32 %v1333_v20, %v6207_v10  ;;  %v5018_v22 = vpop.f32.mrb[13].mxu0 }
 0x814   : > { %v1343_v23 = vsel %vm1101_vm7, %v1334_v21, -inf }
 0x815   : > { %1344 = vmax.xlane.f32.xlu0 %v1343_v23 }
 0x89a   : > { %v1339_v25 = vpop.xlane.xlu1 %1338 }
 0x89b   : > { %v1346_v26 = vsub.f32 %v1324_v13, %v1339_v25 }
 0x89d   : > { %v1349_v27 = vmul.f32 1.442695, %v1346_v26 }
 0x89e   : > { %v1342_v28 = vpop.xlane.xlu0 %1341 }
 0x89f   : > { %5698 = vpow2.f32 %v1349_v27  ;;  %v1347_v29 = vsub.f32 %v1329_v17, %v1342_v28 }
 0x8a1   : > { %v1351_v30 = vmul.f32 1.442695, %v1347_v29 }
 0x8a2   : > { %v1345_v31 = vpop.xlane.xlu0 %1344 }
 0x8a3   : > { %5700 = vpow2.f32 %v1351_v30  ;;  %v1348_v32 = vsub.f32 %v1334_v21, %v1345_v31 }
 0x8a5   : > { %v1353_v33 = vmul.f32 1.442695, %v1348_v32 }
 0x8a7   : > { %5702 = vpow2.f32 %v1353_v33 }
 0x8a9   : > { %v5699_v34 = vpop.eup %5698 }
 0x8aa   : > { %v1355_v35 = vsel %vm1101_vm7, %v5699_v34, 0.0 }
 0x8ab   : > { %1356 = vadd.xlane.f32.xlu0 %v1355_v35 }
 0x8ad   : > { %v5701_v36 = vpop.eup %5700 }
 0x8ae   : > { %v1358_v37 = vsel %vm1101_vm7, %v5701_v36, 0.0 }
 0x8af   : > { %1359 = vadd.xlane.f32.xlu1 %v1358_v37 }
 0x8b1   : > { %v5703_v38 = vpop.eup %5702 }
 0x8b2   : > { %v1361_v39 = vsel %vm1101_vm7, %v5703_v38, 0.0 }
 0x8b3   : > { %1362 = vadd.xlane.f32.xlu0 %v1361_v39 }
 0x8c0   : > { %5610 = vrot.lane.b32.xlu1 %v6169_v58, %s7063_s26 }
 0x8c4   : > { %5615 = vrot.lane.b32.xlu1 %v6169_v58, %s7061_s27 }
 0x8c8   : > { %1656 = vrot.lane.b32.xlu1 %v6171_v60, %s7061_s27 }
 0x8c9   : > { %1374 = vrot.lane.b32.xlu0 %v6171_v60, %s7063_s26  ;;  %s7095_s26 = smov 112  }
 0x8cc   : > { %1646 = vrot.lane.b32.xlu1 %v6187_v4, %s7059_s4 }
 0x8cd   : > { %1648 = vrot.lane.b32.xlu0 %v6194_v5, %s7059_s4 }
 0x8d0   : > { %1650 = vrot.lane.b32.xlu1 %v6201_v6, %s7059_s4 }
 0x938   : > { %v1357_v41 = vpop.xlane.xlu0 %1356 }
 0x939   : > { %5704 = vrcp.f32 %v1357_v41 }
 0x93c   : > { %v1360_v42 = vpop.xlane.xlu1 %1359 }
 0x93d   : > { %5706 = vrcp.f32 %v1360_v42 }
 0x940   : > { %v5611_v43 = vpop.permute.xlu1 %5610  ;;  %v1363_v44 = vpop.xlane.xlu0 %1362 }
 0x941   : > { %v5613_v45 = vunpack.i.h.bf16 %v5611_v43  ;;  %v5612_v46 = vunpack.i.l.bf16 %v5611_v43  ;;  %5708 = vrcp.f32 %v1363_v44 }
 0x943   : > { %v5444_v47 = vpack.c.bf16 %v5613_v45, %v5612_v46  ;;  %v5705_v48 = vpop.eup %5704 }
 0x944   : > { %v1367_v49 = vmul.f32 %v5705_v48, %v5699_v34  ;;  %v1375_v50 = vpop.permute.xlu0 %1374  ;;  %v5616_v56 = vpop.permute.xlu1 %5615 }
 0x945   : > { %5445 = vmatpush3.bf16.msra.mxu1 %v5444_v47  ;;  %v5618_v57 = vunpack.i.h.bf16 %v5616_v56  ;;  %v5617_v59 = vunpack.i.l.bf16 %v5616_v56 }
 0x946   : > { %5023 = vmatprep.subr.mxu1 %v5896_v11 }
 0x947   : > { %v5707_v52 = vpop.eup %5706  ;;  %v5447_v61 = vpack.c.bf16 %v5618_v57, %v5617_v59 }
 0x948   : > { %v1368_v53 = vmul.f32 %v5707_v52, %v5701_v36  ;;  %v1649_v14 = vpop.permute.xlu0 %1648 }
 0x949   : > { %5024 = vmatpush3.msra.mxu1 %v1375_v50 }
 0x94a   : > { %5026 = vmatmul.mubr.msk.f32.vlgmr.msra.gmra.mrb[12].mxu1 %vm1101_vm7, %v1367_v49  ;;  %5045 = vmatprep.subr.mxu1 %v5896_v11 }
 0x94b   : > { %5028 = vmatprep.mubr.msk.f32.mxu1 %vm5898_vm3, %v5896_v11  ;;  %5046 = vmatpush3.msra.mxu1 %v989_v51  ;;  %v5709_v54 = vpop.eup %5708 }
 0x94c   : > { %5450 = vmatprep.subr.bf16.mxu1 %v5897_v24  ;;  %v1369_v55 = vmul.f32 %v5709_v54, %v5703_v38 }
 0x94e   : > { %5029 = vmatmul.mubr.msk.f32.gmra.mrb[14].mxu1 %vm1101_vm7, %v1368_v53 }
 0x94f   : > { %5031 = vmatprep.mubr.msk.f32.mxu1 %vm5898_vm3, %v5896_v11 }
 0x952   : > { %5032 = vmatmul.mubr.msk.f32.gmra.mrb[16].mxu1 %vm1101_vm7, %v1369_v55 }
 0x953   : > { %5047 = vmatprep.mubr.msk.f32.mxu1 %vm5898_vm3, %v5896_v11 }
 0x956   : > { %5048 = vmatmul.mubr.msk.f32.vlgmr.msra.gmra.mrb[18].mxu1 %vm1005_vm4, %v6257_v0 }
 0x957   : > { %5050 = vmatprep.mubr.msk.f32.mxu1 %vm5898_vm3, %v5896_v11 }
 0x95a   : > { %5051 = vmatmul.mubr.msk.f32.gmra.mrb[20].mxu1 %vm1005_vm4, %v6259_v3  ;;  %v1657_v3 = vpop.permute.xlu1 %1656 }
 0x95b   : > { %5053 = vmatprep.mubr.msk.f32.mxu1 %vm5898_vm3, %v5896_v11 }
 0x95e   : > { %5054 = vmatmul.mubr.msk.f32.gmra.mrb[22].mxu1 %vm1005_vm4, %v6261_v8  ;;  %v1647_v9 = vpop.permute.xlu1 %1646 }
 0x95f   : > { %5077 = vmatprep.mubr.msk.f32.mxu1 %vm5898_vm3, %v5896_v11 }
 0x962   : > { %v1651_v17 = vpop.permute.xlu1 %1650 }
 0xa1d   : > { %v1454_v62 = vpop.f32.mrb[12].mxu1 }
 0xa1e   : > { %v5027_v63 = vpop.f32.mrb[13].mxu1  ;;  %5037 = vmatmul.mubr.msk.f32.vlgmr.msra.gmra.mrb[14].mxu0 %vm1005_vm4, %v1454_v62 }
 0xa1f   : > { %5449 = vmatpush3.bf16.xpose.msk.msra.mxu0 %vm6179_vm5, %v5447_v61  ;;  %5039 = vmatprep.mubr.msk.f32.mxu0 %vm5898_vm3, %v5896_v11 }
 0xa20   : > { %5060 = vmatprep.subr.mxu0 %v5896_v11 }
 0xa21   : > { %v1459_v0 = vpop.f32.mrb[14].mxu1 }
 0xa22   : > { %v5030_v2 = vpop.f32.mrb[15].mxu1  ;;  %5040 = vmatmul.mubr.msk.f32.gmra.mrb[16].mxu0 %vm1005_vm4, %v1459_v0 }
 0xa23   : > { %5042 = vmatprep.mubr.msk.f32.mxu0 %vm5898_vm3, %v5896_v11 }
 0xa25   : > { %v1464_v7 = vpop.f32.mrb[16].mxu1 }
 0xa26   : > { %v5033_v8 = vpop.f32.mrb[17].mxu1  ;;  %5043 = vmatmul.mubr.msk.f32.gmra.mrb[18].mxu0 %vm1005_vm4, %v1464_v7 }
 0xa27   : > { %5061 = vmatpush3.xpose.msk.msra.mxu0 %vm1005_vm4, %v1657_v3  ;;  %5062 = vmatprep.mubr.msk.f32.mxu0 %vm5898_vm3, %v5896_v11 }
 0xa28   : > { %5086 = vmatprep.subr.mxu0 %v5896_v11 }
 0xa29   : > { %v1632_v12 = vpop.f32.mrb[18].mxu1 }
 0xa2a   : > { %v5049_v13 = vpop.f32.mrb[19].mxu1  ;;  %5063 = vmatmul.mubr.msk.f32.vlgmr.msra.gmra.mrb[20].mxu0 %vm1005_vm4, %v1647_v9 }
 0xa2b   : > { %5065 = vmatprep.mubr.msk.f32.mxu0 %vm5898_vm3, %v5896_v11 }
 0xa2d   : > { %v1637_v15 = vpop.f32.mrb[20].mxu1 }
 0xa2e   : > { %v5052_v16 = vpop.f32.mrb[21].mxu1  ;;  %5066 = vmatmul.mubr.msk.f32.gmra.mrb[22].mxu0 %vm1005_vm4, %v1649_v14 }
 0xa2f   : > { %5068 = vmatprep.mubr.msk.f32.mxu0 %vm5898_vm3, %v5896_v11 }
 0xa31   : > { %v1642_v18 = vpop.f32.mrb[22].mxu1 }
 0xa32   : > { %v5055_v19 = vpop.f32.mrb[23].mxu1  ;;  %5069 = vmatmul.mubr.msk.f32.gmra.mrb[24].mxu0 %vm1005_vm4, %v1651_v17 }
 0xa33   : > { %5088 = vmatprep.mubr.msk.f32.mxu0 %vm5898_vm3, %v5896_v11 }
 0xaf1   : > { %v1543_v20 = vpop.f32.mrb[14].mxu0 }
 0xaf2   : > { %v6340_v21 = vadd.f32 %v1632_v12, %v1543_v20  ;;  %v5038_v22 = vpop.f32.mrb[15].mxu0  ;;  %v991_v20 = vld [vmem:[%s7031_s10 + $0x10] sm:$0xff] }
 0xaf3   : > { %5087 = vmatpush3.msra.mxu0 %v991_v20 }
 0xaf4   : > { %5457 = vmatprep.subr.bf16.mxu0 %v5897_v24 }
 0xaf5   : > { %v1548_v23 = vpop.f32.mrb[16].mxu0 }
 0xaf6   : > { %v6342_v25 = vadd.f32 %v1637_v15, %v1548_v23  ;;  %v5041_v26 = vpop.f32.mrb[17].mxu0 }
 0xaf9   : > { %v1553_v27 = vpop.f32.mrb[18].mxu0 }
 0xafa   : > { %v6344_v28 = vadd.f32 %v1642_v18, %v1553_v27  ;;  %v5044_v29 = vpop.f32.mrb[19].mxu0 }
 0xafd   : > { %v1736_v30 = vpop.f32.mrb[20].mxu0 }
 0xafe   : > { %v1737_v31 = vadd.f32 %v1736_v30, %v6207_v10  ;;  %v5064_v32 = vpop.f32.mrb[21].mxu0 }
 0xb00   : > { %v1750_v33 = vsel %vm1101_vm7, %v1737_v31, -inf }
 0xb01   : > { %1751 = vmax.xlane.f32.xlu0 %v1750_v33  ;;  %v1741_v34 = vpop.f32.mrb[22].mxu0 }
 0xb02   : > { %v1742_v35 = vadd.f32 %v1741_v34, %v6207_v10  ;;  %v5067_v36 = vpop.f32.mrb[23].mxu0 }
 0xb04   : > { %v1753_v37 = vsel %vm1101_vm7, %v1742_v35, -inf }
 0xb05   : > { %1754 = vmax.xlane.f32.xlu1 %v1753_v37  ;;  %v1746_v38 = vpop.f32.mrb[24].mxu0 }
 0xb06   : > { %v1747_v39 = vadd.f32 %v1746_v38, %v6207_v10  ;;  %v5070_v40 = vpop.f32.mrb[25].mxu0 }
 0xb08   : > { %v1756_v41 = vsel %vm1101_vm7, %v1747_v39, -inf }
 0xb09   : > { %1757 = vmax.xlane.f32.xlu0 %v1756_v41 }
 0xb16   : > { %1787 = vrot.lane.b32.xlu1 %v6171_v60, %s7057_s30 }
 0xb1a   : > { %5625 = vrot.lane.b32.xlu1 %v6169_v58, %s7053_s28 }
 0xb1e   : > { %1983 = vrot.lane.b32.xlu1 %v6171_v60, %s7053_s28  ;;  %s7055_s28 = smov 40  }
 0xb8e   : > { %v1752_v42 = vpop.xlane.xlu0 %1751 }
 0xb8f   : > { %v1759_v43 = vsub.f32 %v1737_v31, %v1752_v42 }
 0xb91   : > { %v1762_v44 = vmul.f32 1.442695, %v1759_v43 }
 0xb92   : > { %v1755_v45 = vpop.xlane.xlu1 %1754 }
 0xb93   : > { %5710 = vpow2.f32 %v1762_v44  ;;  %v1760_v46 = vsub.f32 %v1742_v35, %v1755_v45 }
 0xb95   : > { %v1764_v47 = vmul.f32 1.442695, %v1760_v46 }
 0xb96   : > { %v1758_v48 = vpop.xlane.xlu0 %1757  ;;  %v1788_v57 = vpop.permute.xlu1 %1787 }
 0xb97   : > { %5712 = vpow2.f32 %v1764_v47  ;;  %v1761_v49 = vsub.f32 %v1747_v39, %v1758_v48 }
 0xb99   : > { %v1766_v50 = vmul.f32 1.442695, %v1761_v49 }
 0xb9a   : > { %v5626_v59 = vpop.permute.xlu1 %5625 }
 0xb9b   : > { %5714 = vpow2.f32 %v1766_v50  ;;  %v5627_v12 = vunpack.i.l.bf16 %v5626_v59 }
 0xb9d   : > { %v5711_v51 = vpop.eup %5710 }
 0xb9e   : > { %v1768_v52 = vsel %vm1101_vm7, %v5711_v51, 0.0  ;;  %v1984_v62 = vpop.permute.xlu1 %1983 }
 0xb9f   : > { %1769 = vadd.xlane.f32.xlu0 %v1768_v52 }
 0xba1   : > { %v5713_v53 = vpop.eup %5712 }
 0xba2   : > { %v1771_v54 = vsel %vm1101_vm7, %v5713_v53, 0.0 }
 0xba3   : > { %1772 = vadd.xlane.f32.xlu0 %v1771_v54 }
 0xba5   : > { %v5715_v55 = vpop.eup %5714 }
 0xba6   : > { %v1774_v56 = vsel %vm1101_vm7, %v5715_v55, 0.0 }
 0xba7   : > { %1775 = vadd.xlane.f32.xlu1 %v1774_v56 }
 0xbb8   : > { %1975 = vrot.lane.b32.xlu1 %v6194_v5, %s7051_s23 }
 0xbb9   : > { %5620 = vrot.lane.b32.xlu0 %v6169_v58, %s7057_s30  ;;  %s7096_s30 = smov 48  }
 0xbbd   : > { %1973 = vrot.lane.b32.xlu0 %v6187_v4, %s7051_s23 }
 0xbc1   : > { %1977 = vrot.lane.b32.xlu0 %v6201_v6, %s7051_s23  ;;  %v5628_v6 = vunpack.i.h.bf16 %v5626_v59  ;;  %s7094_s23 = smov 80  }
 0xbc3   : > { %v5454_v15 = vpack.c.bf16 %v5628_v6, %v5627_v12 }
 0xc2c   : > { %v1770_v61 = vpop.xlane.xlu0 %1769 }
 0xc2d   : > { %5716 = vrcp.f32 %v1770_v61 }
 0xc30   : > { %v1773_v63 = vpop.xlane.xlu0 %1772 }
 0xc31   : > { %5718 = vrcp.f32 %v1773_v63 }
 0xc34   : > { %v1776_v0 = vpop.xlane.xlu1 %1775  ;;  %v5621_v2 = vpop.permute.xlu0 %5620 }
 0xc35   : > { %v5623_v3 = vunpack.i.h.bf16 %v5621_v2  ;;  %v5622_v5 = vunpack.i.l.bf16 %v5621_v2  ;;  %5720 = vrcp.f32 %v1776_v0 }
 0xc37   : > { %v5451_v7 = vpack.c.bf16 %v5623_v3, %v5622_v5  ;;  %v5717_v8 = vpop.eup %5716 }
 0xc38   : > { %v1780_v4 = vmul.f32 %v5717_v8, %v5711_v51  ;;  %v1974_v17 = vpop.permute.xlu0 %1973  ;;  %v1976_v18 = vpop.permute.xlu1 %1975 }
 0xc39   : > { %5452 = vmatpush3.bf16.msra.mxu1 %v5451_v7 }
 0xc3a   : > { %5075 = vmatprep.subr.mxu1 %v5896_v11 }
 0xc3b   : > { %v5719_v9 = vpop.eup %5718 }
 0xc3c   : > { %v1781_v13 = vmul.f32 %v5719_v9, %v5713_v53  ;;  %v1978_v19 = vpop.permute.xlu0 %1977 }
 0xc3d   : > { %5076 = vmatpush3.msra.mxu1 %v1788_v57 }
 0xc3e   : > { %5078 = vmatmul.mubr.msk.f32.vlgmr.msra.gmra.mrb[24].mxu1 %vm1101_vm7, %v1780_v4  ;;  %5453 = vmatprep.subr.bf16.mxu1 %v5897_v24 }
 0xc3f   : > { %5080 = vmatprep.mubr.msk.f32.mxu1 %vm5898_vm3, %v5896_v11  ;;  %v5721_v14 = vpop.eup %5720 }
 0xc40   : > { %v1782_v16 = vmul.f32 %v5721_v14, %v5715_v55 }
 0xc42   : > { %5081 = vmatmul.mubr.msk.f32.gmra.mrb[26].mxu1 %vm1101_vm7, %v1781_v13 }
 0xc43   : > { %5083 = vmatprep.mubr.msk.f32.mxu1 %vm5898_vm3, %v5896_v11 }
 0xc44   : > { %5456 = vmatpush3.bf16.xpose.msk.msra.mxu1 %vm6179_vm5, %v5454_v15 }
 0xc45   : > { %5101 = vmatprep.subr.mxu1 %v5896_v11 }
 0xc46   : > { %5084 = vmatmul.mubr.msk.f32.gmra.mrb[28].mxu1 %vm1101_vm7, %v1782_v16 }
 0xc47   : > { %5103 = vmatprep.mubr.msk.f32.mxu1 %vm5898_vm3, %v5896_v11 }
 0xc4c   : > { %5102 = vmatpush3.xpose.msk.msra.mxu1 %vm1005_vm4, %v1984_v62 }
 0xc4d   : > { %5536 = vmatprep.subr.bf16.mxu1 %v5897_v24 }
 0xc4f   : > { %5104 = vmatmul.mubr.msk.f32.vlgmr.msra.gmra.mrb[30].mxu1 %vm1005_vm4, %v1974_v17  ;;  %v992_v17 = vld [vmem:[%s7031_s10 + $0x18] sm:$0xff] }
 0xc50   : > { %5106 = vmatprep.mubr.msk.f32.mxu1 %vm5898_vm3, %v5896_v11 }
 0xc53   : > { %5107 = vmatmul.mubr.msk.f32.gmra.mrb[32].mxu1 %vm1005_vm4, %v1976_v18 }
 0xc54   : > { %5109 = vmatprep.mubr.msk.f32.mxu1 %vm5898_vm3, %v5896_v11 }
 0xc57   : > { %5110 = vmatmul.mubr.msk.f32.gmra.mrb[34].mxu1 %vm1005_vm4, %v1978_v19 }
 0xc58   : > { %5124 = vmatprep.mubr.msk.f32.mxu1 %vm5898_vm3, %v5896_v11 }
 0xd11   : > { %v1867_v22 = vpop.f32.mrb[24].mxu1 }
 0xd12   : > { %v5079_v23 = vpop.f32.mrb[25].mxu1  ;;  %5089 = vmatmul.mubr.msk.f32.vlgmr.msra.gmra.mrb[26].mxu0 %vm1005_vm4, %v1867_v22 }
 0xd13   : > { %5091 = vmatprep.mubr.msk.f32.mxu0 %vm5898_vm3, %v5896_v11 }
 0xd15   : > { %v1872_v26 = vpop.f32.mrb[26].mxu1 }
 0xd16   : > { %v5082_v27 = vpop.f32.mrb[27].mxu1  ;;  %5092 = vmatmul.mubr.msk.f32.gmra.mrb[28].mxu0 %vm1005_vm4, %v1872_v26 }
 0xd17   : > { %5094 = vmatprep.mubr.msk.f32.mxu0 %vm5898_vm3, %v5896_v11 }
 0xd19   : > { %v1877_v29 = vpop.f32.mrb[28].mxu1 }
 0xd1a   : > { %v5085_v30 = vpop.f32.mrb[29].mxu1  ;;  %5095 = vmatmul.mubr.msk.f32.gmra.mrb[30].mxu0 %vm1005_vm4, %v1877_v29 }
 0xd1b   : > { %5118 = vmatprep.mubr.msk.f32.mxu0 %vm5898_vm3, %v5896_v11 }
 0xd22   : > { %v2063_v31 = vpop.f32.mrb[30].mxu1 }
 0xd23   : > { %v2064_v32 = vadd.f32 %v2063_v31, %v6207_v10  ;;  %v5105_v33 = vpop.f32.mrb[31].mxu1  ;;  %v4637_v31 = vld [vmem:[%s7032_s11] ss:$0 sm:$0xff] }
 0xd25   : > { %v2077_v34 = vsel %vm1101_vm7, %v2064_v32, -inf }
 0xd26   : > { %2078 = vmax.xlane.f32.xlu1 %v2077_v34  ;;  %v2068_v35 = vpop.f32.mrb[32].mxu1 }
 0xd27   : > { %v2069_v36 = vadd.f32 %v2068_v35, %v6207_v10  ;;  %v5108_v37 = vpop.f32.mrb[33].mxu1 }
 0xd29   : > { %v2080_v38 = vsel %vm1101_vm7, %v2069_v36, -inf }
 0xd2a   : > { %2081 = vmax.xlane.f32.xlu0 %v2080_v38  ;;  %v2073_v39 = vpop.f32.mrb[34].mxu1  ;;  %v5827_v38 = vld [vmem:[#allocation2 + $0x8] sm:$0xff] }
 0xd2b   : > { %v2074_v40 = vadd.f32 %v2073_v39, %v6207_v10  ;;  %v5111_v41 = vpop.f32.mrb[35].mxu1 }
 0xd2d   : > { %v2083_v42 = vsel %vm1101_vm7, %v2074_v40, -inf }
 0xd2e   : > { %2084 = vmax.xlane.f32.xlu0 %v2083_v42 }
 0xdb3   : > { %v2079_v43 = vpop.xlane.xlu1 %2078 }
 0xdb4   : > { %v2086_v44 = vsub.f32 %v2064_v32, %v2079_v43  ;;  %v5826_v32 = vld [vmem:[#allocation2] sm:$0xff] }
 0xdb6   : > { %v2089_v45 = vmul.f32 1.442695, %v2086_v44  ;;  %v5828_v44 = vld [vmem:[#allocation2 + $0x10] sm:$0xff] }
 0xdb7   : > { %v2082_v46 = vpop.xlane.xlu0 %2081 }
 0xdb8   : > { %5722 = vpow2.f32 %v2089_v45  ;;  %v2087_v47 = vsub.f32 %v2069_v36, %v2082_v46 }
 0xdba   : > { %v2091_v48 = vmul.f32 1.442695, %v2087_v47 }
 0xdbb   : > { %v2085_v49 = vpop.xlane.xlu0 %2084 }
 0xdbc   : > { %5724 = vpow2.f32 %v2091_v48  ;;  %v2088_v50 = vsub.f32 %v2074_v40, %v2085_v49 }
 0xdbe   : > { %v2093_v51 = vmul.f32 1.442695, %v2088_v50 }
 0xdc0   : > { %5726 = vpow2.f32 %v2093_v51 }
 0xdc2   : > { %v5723_v52 = vpop.eup %5722 }
 0xdc3   : > { %v2095_v53 = vsel %vm1101_vm7, %v5723_v52, 0.0 }
 0xdc4   : > { %2096 = vadd.xlane.f32.xlu0 %v2095_v53 }
 0xdc6   : > { %v5725_v54 = vpop.eup %5724 }
 0xdc7   : > { %v2098_v55 = vsel %vm1101_vm7, %v5725_v54, 0.0 }
 0xdc8   : > { %2099 = vadd.xlane.f32.xlu1 %v2098_v55 }
 0xdca   : > { %v5727_v56 = vpop.eup %5726 }
 0xdcb   : > { %v2101_v57 = vsel %vm1101_vm7, %v5727_v56, 0.0 }
 0xdcc   : > { %2102 = vadd.xlane.f32.xlu0 %v2101_v57 }
 0xdd9   : > { %5630 = vrot.lane.b32.xlu1 %v6169_v58, %s7055_s28 }
 0xde2   : > { %2114 = vrot.lane.b32.xlu0 %v6171_v60, %s7055_s28  ;;  %s7091_s28 = smov 120  }
 0xde5   : > { %v1956_v59 = vpop.f32.mrb[26].mxu0 }
 0xde6   : > { %v1970_v61 = vadd.f32 %v1956_v59, %v6340_v21  ;;  %v5090_v62 = vpop.f32.mrb[27].mxu0 }
 0xde9   : > { %v1961_v63 = vpop.f32.mrb[28].mxu0 }
 0xdea   : > { %v1971_v0 = vadd.f32 %v1961_v63, %v6342_v25  ;;  %v5093_v2 = vpop.f32.mrb[29].mxu0 }
 0xded   : > { %v1966_v3 = vpop.f32.mrb[30].mxu0 }
 0xdee   : > { %v6423_v5 = vadd.f32 %v1966_v3, %v6344_v28  ;;  %v5096_v7 = vpop.f32.mrb[31].mxu0 }
 0xe51   : > { %v2097_v8 = vpop.xlane.xlu0 %2096 }
 0xe52   : > { %5728 = vrcp.f32 %v2097_v8 }
 0xe55   : > { %v2100_v4 = vpop.xlane.xlu1 %2099 }
 0xe56   : > { %5730 = vrcp.f32 %v2100_v4  ;;  %v2378_v4 = vld [vmem:[%s7035_s14] sm:$0xff] }
 0xe59   : > { %v5631_v58 = vpop.permute.xlu1 %5630  ;;  %v2103_v9 = vpop.xlane.xlu0 %2102 }
 0xe5a   : > { %v5633_v60 = vunpack.i.h.bf16 %v5631_v58  ;;  %v5632_v6 = vunpack.i.l.bf16 %v5631_v58  ;;  %5732 = vrcp.f32 %v2103_v9  ;;  %v2379_v58 = vld [vmem:[%s7035_s14 + $0x8] sm:$0xff] }
 0xe5b   : > { %v5461_v9 = vpack.c.bf16 %v2379_v58, %v2378_v4 }
 0xe5c   : > { %v5458_v21 = vpack.c.bf16 %v5633_v60, %v5632_v6  ;;  %v5729_v12 = vpop.eup %5728  ;;  %v2380_v60 = vld [vmem:[%s7035_s14 + $0x10] sm:$0xff]  ;;  %v2381_v6 = vld [vmem:[%s7035_s14 + $0x18] sm:$0xff] }
 0xe5d   : > { %v2107_v25 = vmul.f32 %v5729_v12, %v5723_v52  ;;  %v2115_v28 = vpop.permute.xlu0 %2114 }
 0xe5e   : > { %5459 = vmatpush3.bf16.msra.mxu0 %v5458_v21  ;;  %5538 = vmatpush3.bf16.msra.mxu1 %v5458_v21  ;;  %v5464_v21 = vpack.c.bf16 %v2381_v6, %v2380_v60 }
 0xe5f   : > { %5116 = vmatprep.subr.mxu0 %v5896_v11  ;;  %5537 = vmatprep.subr.mxu1 %v5896_v11 }
 0xe60   : > { %v5731_v13 = vpop.eup %5730 }
 0xe61   : > { %v2108_v16 = vmul.f32 %v5731_v13, %v5725_v54 }
 0xe62   : > { %5117 = vmatpush3.msra.mxu0 %v2115_v28  ;;  %5539 = vmatpush3.msra.mxu1 %v2115_v28 }
 0xe63   : > { %5119 = vmatmul.mubr.msk.f32.vlgmr.msra.gmra.mrb[32].mxu0 %vm1101_vm7, %v2107_v25  ;;  %5127 = vmatprep.subr.mxu1 %v5896_v11 }
 0xe64   : > { %v5733_v14 = vpop.eup %5732  ;;  %5121 = vmatprep.mubr.msk.f32.mxu0 %vm5898_vm3, %v5896_v11  ;;  %5460 = vmatprep.subr.bf16.mxu0 %v5897_v24 }
 0xe65   : > { %v2109_v15 = vmul.f32 %v5733_v14, %v5727_v56  ;;  %5462 = vmatpush3.bf16.msra.mxu0 %v5461_v9 }
 0xe66   : > { %5463 = vmatprep.subr.bf16.mxu0 %v5897_v24 }
 0xe67   : > { %5122 = vmatmul.mubr.msk.f32.gmra.mrb[34].mxu0 %vm1101_vm7, %v2108_v16  ;;  %5125 = vmatmul.mubr.msk.f32.vlgmr.msra.gmra.mrb[36].mxu1 %vm1101_vm7, %v2109_v15 }
 0xe68   : > { %5129 = vmatprep.mubr.msk.f32.mxu1 %vm5898_vm3, %v5896_v11  ;;  %5146 = vmatprep.mubr.msk.f32.mxu0 %vm5898_vm3, %v5896_v11 }
 0xe69   : > { %5128 = vmatpush3.msra.mxu1 %v992_v17  ;;  %5465 = vmatpush3.bf16.msra.mxu0 %v5464_v21 }
 0xe6a   : > { %5466 = vmatprep.subr.bf16.mxu1 %v5897_v24  ;;  %5478 = vmatprep.subr.bf16.mxu0 %v5897_v24 }
 0xf36   : > { %v2194_v18 = vpop.f32.mrb[32].mxu0 }
 0xf37   : > { %v5120_v19 = vpop.f32.mrb[33].mxu0  ;;  %5130 = vmatmul.mubr.msk.f32.vlgmr.msra.gmra.mrb[38].mxu1 %vm1005_vm4, %v2194_v18 }
 0xf38   : > { %5132 = vmatprep.mubr.msk.f32.mxu1 %vm5898_vm3, %v5896_v11 }
 0xf3a   : > { %v2199_v20 = vpop.f32.mrb[34].mxu0  ;;  %v2204_v22 = vpop.f32.mrb[36].mxu1 }
 0xf3b   : > { %v5123_v23 = vpop.f32.mrb[35].mxu0  ;;  %v5126_v26 = vpop.f32.mrb[37].mxu1  ;;  %5133 = vmatmul.mubr.msk.f32.gmra.mrb[40].mxu1 %vm1005_vm4, %v2199_v20  ;;  %v4638_v20 = vld [vmem:[%s7033_s12] ss:$0 sm:$0xff] }
 0xf3c   : > { %5135 = vmatprep.mubr.msk.f32.mxu1 %vm5898_vm3, %v5896_v11  ;;  %v4639_v23 = vld [vmem:[%s7034_s13] ss:$0 sm:$0xff] }
 0xf3f   : > { %5136 = vmatmul.mubr.msk.f32.gmra.mrb[42].mxu1 %vm1005_vm4, %v2204_v22 }
 0xf40   : > { %5171 = vmatprep.mubr.msk.f32.mxu1 %vm5898_vm3, %v5896_v11 }
0x100a   : > { %v2283_v27 = vpop.f32.mrb[38].mxu1 }
0x100b   : > { %v2297_v29 = vadd.f32 %v2283_v27, %v1970_v61  ;;  %v5131_v30 = vpop.f32.mrb[39].mxu1 }
0x100d   : > { %v2300_v33 = vadd.f32 %v5826_v32, %v2297_v29 }
0x100e   : > { %v2288_v34 = vpop.f32.mrb[40].mxu1 }
0x100f   : > { %v2310_v35 = vadd.f32 %v4637_v31, %v2300_v33  ;;  %v2298_v36 = vadd.f32 %v2288_v34, %v1971_v0  ;;  %v5134_v37 = vpop.f32.mrb[41].mxu1 }
0x1010   : > { %v2502_v37 = vld [vmem:[%s7037_s16] sm:$0xff] }
0x1011   : > { %2313 = vst.msk [vmem:[#allocation2] sm:$0xff] %vm748_vm1, %v2310_v35  ;;  %v2301_v39 = vadd.f32 %v5827_v38, %v2298_v36  ;;  %v2503_v38 = vld [vmem:[%s7037_s16 + $0x8] sm:$0xff] }
0x1012   : > { %v2293_v40 = vpop.f32.mrb[42].mxu1 }
0x1013   : > { %v2311_v41 = vadd.f32 %v4637_v31, %v2301_v39  ;;  %v2299_v42 = vadd.f32 %v2293_v40, %v6423_v5  ;;  %v5137_v43 = vpop.f32.mrb[43].mxu1  ;;  %v5467_v39 = vpack.c.bf16 %v2503_v38, %v2502_v37  ;;  %v2504_v40 = vld [vmem:[%s7037_s16 + $0x10] sm:$0xff] }
0x1014   : > { %v2506_v43 = vld [vmem:[%s7037_s16 + $0x20] sm:$0xff] }
0x1015   : > { %2314 = vst.msk [vmem:[#allocation2 + $0x8] sm:$0xff] %vm748_vm1, %v2311_v41  ;;  %v2302_v45 = vadd.f32 %v5828_v44, %v2299_v42  ;;  %5468 = vmatpush3.bf16.msra.mxu1 %v5467_v39  ;;  %v2505_v41 = vld [vmem:[%s7037_s16 + $0x18] sm:$0xff]  ;;  %v2507_v44 = vld [vmem:[%s7037_s16 + $0x28] sm:$0xff] }
0x1016   : > { %5469 = vmatprep.subr.bf16.mxu1 %v5897_v24  ;;  %v5470_v42 = vpack.c.bf16 %v2505_v41, %v2504_v40 }
0x1017   : > { %v2312_v46 = vadd.f32 %v4637_v31, %v2302_v45  ;;  %v5473_v45 = vpack.c.bf16 %v2507_v44, %v2506_v43 }
0x1018   : > { %v6457_v47 = vld [vmem:[#allocation2] sm:$0xff] }
0x1019   : > { %2315 = vst.msk [vmem:[#allocation2 + $0x10] sm:$0xff] %vm748_vm1, %v2312_v46  ;;  %v2321_v48 = vsel %vm748_vm1, %v6457_v47, 0.0  ;;  %5471 = vmatpush3.bf16.msra.mxu1 %v5470_v42  ;;  %v2508_v46 = vld [vmem:[%s7037_s16 + $0x30] sm:$0xff] }
0x101a   : > { %2322 = vadd.xlane.f32.xlu1 %v2321_v48  ;;  %5472 = vmatprep.subr.bf16.mxu1 %v5897_v24  ;;  %v2509_v48 = vld [vmem:[%s7037_s16 + $0x38] sm:$0xff] }
0x101c   : > { %v6462_v49 = vld [vmem:[#allocation2 + $0x8] sm:$0xff] }
0x101d   : > { %v2324_v50 = vsel %vm748_vm1, %v6462_v49, 0.0  ;;  %5474 = vmatpush3.bf16.msra.mxu1 %v5473_v45 }
0x101e   : > { %2325 = vadd.xlane.f32.xlu0 %v2324_v50  ;;  %5475 = vmatprep.subr.bf16.mxu1 %v5897_v24  ;;  %v5476_v50 = vpack.c.bf16 %v2509_v48, %v2508_v46 }
0x1020   : > { %v6466_v51 = vld [vmem:[#allocation2 + $0x10] sm:$0xff] }
0x1021   : > { %v2327_v52 = vsel %vm748_vm1, %v6466_v51, 0.0  ;;  %5477 = vmatpush3.bf16.msra.mxu1 %v5476_v50 }
0x1022   : > { %2328 = vadd.xlane.f32.xlu1 %v2327_v52  ;;  %5484 = vmatprep.subr.bf16.mxu1 %v5897_v24  ;;  %v4640_v52 = vld [vmem:[%s7036_s15] ss:$0 sm:$0xff] }
0x10a7   : > { %v2323_v53 = vpop.xlane.xlu1 %2322 }
0x10a8   : > { %v2330_v54 = vmul.f32 0.03125, %v2323_v53 }
0x10aa   : > { %v2333_v55 = vsub.f32 %v6457_v47, %v2330_v54 }
0x10ab   : > { %v2326_v56 = vpop.xlane.xlu0 %2325 }
0x10ac   : > { %v2331_v57 = vmul.f32 0.03125, %v2326_v56  ;;  %v2336_v59 = vmul.f32 %v2333_v55, %v2333_v55 }
0x10ae   : > { %v2334_v61 = vsub.f32 %v6462_v49, %v2331_v57  ;;  %v2339_v62 = vsel %vm748_vm1, %v2336_v59, 0.0 }
0x10af   : > { %2340 = vadd.xlane.f32.xlu0 %v2339_v62  ;;  %v2329_v63 = vpop.xlane.xlu1 %2328 }
0x10b0   : > { %v2332_v0 = vmul.f32 0.03125, %v2329_v63  ;;  %v2337_v2 = vmul.f32 %v2334_v61, %v2334_v61 }
0x10b2   : > { %v2335_v3 = vsub.f32 %v6466_v51, %v2332_v0  ;;  %v2342_v5 = vsel %vm748_vm1, %v2337_v2, 0.0 }
0x10b3   : > { %2343 = vadd.xlane.f32.xlu1 %v2342_v5 }
0x10b4   : > { %v2338_v7 = vmul.f32 %v2335_v3, %v2335_v3 }
0x10b6   : > { %v2345_v8 = vsel %vm748_vm1, %v2338_v7, 0.0 }
0x10b7   : > { %2346 = vadd.xlane.f32.xlu0 %v2345_v8 }
0x113c   : > { %v2341_v12 = vpop.xlane.xlu0 %2340 }
0x113d   : > { %v2348_v25 = vmul.f32 0.03125, %v2341_v12 }
0x113f   : > { %v2351_v28 = vadd.f32 1e-05, %v2348_v25 }
0x1140   : > { %v2344_v13 = vpop.xlane.xlu1 %2343 }
0x1141   : > { %5734 = vrsqrt.f32 %v2351_v28  ;;  %v2349_v14 = vmul.f32 0.03125, %v2344_v13 }
0x1143   : > { %v2352_v15 = vadd.f32 1e-05, %v2349_v14 }
0x1144   : > { %v2347_v16 = vpop.xlane.xlu0 %2346 }
0x1145   : > { %5736 = vrsqrt.f32 %v2352_v15  ;;  %v2350_v17 = vmul.f32 0.03125, %v2347_v16  ;;  %v4647_v16 = vld [vmem:[%s7038_s17] ss:$0 sm:$0xff] }
0x1147   : > { %v2353_v18 = vadd.f32 1e-05, %v2350_v17 }
0x1149   : > { %5738 = vrsqrt.f32 %v2353_v18 }
0x114b   : > { %v5735_v19 = vpop.eup %5734 }
0x114c   : > { %v2357_v22 = vmul.f32 %v5735_v19, %v2333_v55 }
0x114e   : > { %v2366_v26 = vmul.f32 %v4638_v20, %v2357_v22 }
0x114f   : > { %v5737_v27 = vpop.eup %5736 }
0x1150   : > { %v2375_v29 = vadd.f32 %v4639_v23, %v2366_v26  ;;  %v2358_v30 = vmul.f32 %v5737_v27, %v2334_v61 }
0x1152   : > { %5147 = vmatmul.mubr.msk.f32.vlgmr.msra.gmra.mrb[36].mxu0 %vm748_vm1, %v2375_v29  ;;  %v2367_v31 = vmul.f32 %v4638_v20, %v2358_v30 }
0x1153   : > { %v5739_v32 = vpop.eup %5738  ;;  %5149 = vmatprep.mubr.msk.f32.mxu0 %vm5898_vm3, %v5896_v11 }
0x1154   : > { %v2376_v33 = vadd.f32 %v4639_v23, %v2367_v31  ;;  %v2359_v34 = vmul.f32 %v5739_v32, %v2335_v3 }
0x1156   : > { %5150 = vmatmul.mubr.msk.f32.gmra.mrb[38].mxu0 %vm748_vm1, %v2376_v33  ;;  %v2368_v35 = vmul.f32 %v4638_v20, %v2359_v34 }
0x1157   : > { %5152 = vmatprep.mubr.msk.f32.mxu0 %vm5898_vm3, %v5896_v11 }
0x1158   : > { %v2377_v36 = vadd.f32 %v4639_v23, %v2368_v35 }
0x115a   : > { %5153 = vmatmul.mubr.msk.f32.gmra.mrb[40].mxu0 %vm748_vm1, %v2377_v36 }
0x115b   : > { %5188 = vmatprep.mubr.msk.f32.mxu0 %vm5898_vm3, %v5896_v11 }
0x1225   : > { %v2464_v53 = vpop.f32.mrb[36].mxu0 }
0x1226   : > { %v2465_v54 = vadd.f32 %v4640_v52, %v2464_v53  ;;  %v5148_v55 = vpop.f32.mrb[37].mxu0 }
0x1227   : > { %v4656_v55 = vld [vmem:[%s7029_s8 + $0x28] sm:$0xff] }
0x1228   : > { %v4644_v56 = vmul.f32 -1.702, %v2465_v54 }
0x1229   : > { %v2469_v57 = vpop.f32.mrb[38].mxu0 }
0x122a   : > { %v2484_v59 = vmul.f32 1.442695, %v4644_v56  ;;  %v2470_v61 = vadd.f32 %v4640_v52, %v2469_v57  ;;  %v5151_v62 = vpop.f32.mrb[39].mxu0  ;;  %v4657_v57 = vld [vmem:[%s7029_s8 + $0x30] sm:$0xff] }
0x122c   : > { %5740 = vpow2.f32 %v2484_v59  ;;  %v4645_v63 = vmul.f32 -1.702, %v2470_v61  ;;  %v4658_v59 = vld [vmem:[%s7029_s8 + $0x38] sm:$0xff] }
0x122d   : > { %v2474_v0 = vpop.f32.mrb[40].mxu0 }
0x122e   : > { %v2486_v2 = vmul.f32 1.442695, %v4645_v63  ;;  %v2475_v3 = vadd.f32 %v4640_v52, %v2474_v0  ;;  %v5154_v5 = vpop.f32.mrb[41].mxu0 }
0x1230   : > { %5742 = vpow2.f32 %v2486_v2  ;;  %v4646_v7 = vmul.f32 -1.702, %v2475_v3 }
0x1232   : > { %v2488_v8 = vmul.f32 1.442695, %v4646_v7 }
0x1234   : > { %5744 = vpow2.f32 %v2488_v8 }
0x1236   : > { %v5741_v4 = vpop.eup %5740 }
0x1237   : > { %v2490_v58 = vadd.f32 1.0, %v5741_v4 }
0x1239   : > { %5746 = vrcp.f32 %v2490_v58 }
0x123a   : > { %v5743_v9 = vpop.eup %5742 }
0x123b   : > { %v2491_v60 = vadd.f32 1.0, %v5743_v9  ;;  %v4653_v9 = vld [vmem:[%s7027_s6 + $0x1] ss:$0 sm:$0xff] }
0x123d   : > { %5748 = vrcp.f32 %v2491_v60 }
0x123e   : > { %v5745_v6 = vpop.eup %5744 }
0x123f   : > { %v2492_v21 = vadd.f32 1.0, %v5745_v6  ;;  %v4654_v6 = vld [vmem:[%s7028_s7 + $0x1] ss:$0 sm:$0xff] }
0x1241   : > { %5750 = vrcp.f32 %v2492_v21 }
0x1243   : > { %v5747_v12 = vpop.eup %5746 }
0x1244   : > { %v2499_v25 = vmul.f32 %v5747_v12, %v2465_v54  ;;  %v4655_v54 = vld [vmem:[%s7029_s8 + $0x20] sm:$0xff] }
0x1245   : > { %v5479_v56 = vpack.c.bf16 %v4656_v55, %v4655_v54 }
0x1246   : > { %5172 = vmatmul.mubr.msk.f32.vlgmr.msra.gmra.mrb[44].mxu1 %vm2517_vm8, %v2499_v25 }
0x1247   : > { %v5749_v28 = vpop.eup %5748  ;;  %5174 = vmatprep.mubr.msk.f32.mxu1 %vm5898_vm3, %v5896_v11  ;;  %5480 = vmatpush3.bf16.msra.mxu0 %v5479_v56 }
0x1248   : > { %v2500_v13 = vmul.f32 %v5749_v28, %v2470_v61  ;;  %5481 = vmatprep.subr.bf16.mxu0 %v5897_v24  ;;  %v5482_v61 = vpack.c.bf16 %v4658_v59, %v4657_v57 }
0x124a   : > { %5175 = vmatmul.mubr.msk.f32.gmra.mrb[46].mxu1 %vm2517_vm8, %v2500_v13 }
0x124b   : > { %v5751_v14 = vpop.eup %5750  ;;  %5177 = vmatprep.mubr.msk.f32.mxu1 %vm5898_vm3, %v5896_v11  ;;  %5483 = vmatpush3.bf16.msra.mxu0 %v5482_v61 }
0x124c   : > { %v2501_v15 = vmul.f32 %v5751_v14, %v2475_v3  ;;  %5488 = vmatprep.subr.bf16.mxu0 %v5897_v24 }
0x124e   : > { %5178 = vmatmul.mubr.msk.f32.gmra.mrb[48].mxu1 %vm2517_vm8, %v2501_v15 }
0x124f   : > { %5203 = vmatprep.mubr.msk.f32.mxu1 %vm5898_vm3, %v5896_v11 }
0x1319   : > { %v2593_v17 = vpop.f32.mrb[44].mxu1 }
0x131a   : > { %v2594_v18 = vadd.f32 %v4647_v16, %v2593_v17  ;;  %v5173_v19 = vpop.f32.mrb[45].mxu1 }
0x131c   : > { %v2607_v20 = vadd.f32 %v2594_v18, %v6457_v47 }
0x131d   : > { %v2598_v22 = vpop.f32.mrb[46].mxu1 }
0x131e   : > { %2610 = vst.msk [vmem:[#allocation2] sm:$0xff] %vm748_vm1, %v2607_v20  ;;  %v2599_v23 = vadd.f32 %v4647_v16, %v2598_v22  ;;  %v5176_v26 = vpop.f32.mrb[47].mxu1  ;;  %v4660_v22 = vld [vmem:[%s7030_s9 + $0x1] ss:$0 sm:$0xff] }
0x1320   : > { %v2608_v27 = vadd.f32 %v2599_v23, %v6462_v49 }
0x1321   : > { %v2603_v29 = vpop.f32.mrb[48].mxu1 }
0x1322   : > { %2611 = vst.msk [vmem:[#allocation2 + $0x8] sm:$0xff] %vm748_vm1, %v2608_v27  ;;  %v2604_v30 = vadd.f32 %v4647_v16, %v2603_v29  ;;  %v5179_v31 = vpop.f32.mrb[49].mxu1 }
0x1324   : > { %v2609_v32 = vadd.f32 %v2604_v30, %v6466_v51 }
0x1325   : > { %v2613_v33 = vld [vmem:[#allocation2] sm:$0xff] }
0x1326   : > { %2612 = vst.msk [vmem:[#allocation2 + $0x10] sm:$0xff] %vm748_vm1, %v2609_v32  ;;  %v2620_v34 = vsel %vm748_vm1, %v2613_v33, 0.0 }
0x1327   : > { %2621 = vadd.xlane.f32.xlu1 %v2620_v34 }
0x1329   : > { %v2614_v47 = vld [vmem:[#allocation2 + $0x8] sm:$0xff] }
0x132a   : > { %v2623_v35 = vsel %vm748_vm1, %v2614_v47, 0.0 }
0x132b   : > { %2624 = vadd.xlane.f32.xlu0 %v2623_v35 }
0x132d   : > { %v2615_v36 = vld [vmem:[#allocation2 + $0x10] sm:$0xff] }
0x132e   : > { %v2626_v49 = vsel %vm748_vm1, %v2615_v36, 0.0 }
0x132f   : > { %2627 = vadd.xlane.f32.xlu1 %v2626_v49 }
0x13b4   : > { %v2622_v37 = vpop.xlane.xlu1 %2621 }
0x13b5   : > { %v2629_v38 = vmul.f32 0.03125, %v2622_v37 }
0x13b7   : > { %v2632_v39 = vsub.f32 %v2613_v33, %v2629_v38 }
0x13b8   : > { %v2625_v40 = vpop.xlane.xlu0 %2624 }
0x13b9   : > { %v2630_v41 = vmul.f32 0.03125, %v2625_v40  ;;  %v2635_v51 = vmul.f32 %v2632_v39, %v2632_v39 }
0x13bb   : > { %v2633_v42 = vsub.f32 %v2614_v47, %v2630_v41  ;;  %v2638_v43 = vsel %vm748_vm1, %v2635_v51, 0.0 }
0x13bc   : > { %2639 = vadd.xlane.f32.xlu0 %v2638_v43  ;;  %v2628_v44 = vpop.xlane.xlu1 %2627 }
0x13bd   : > { %v2631_v45 = vmul.f32 0.03125, %v2628_v44  ;;  %v2636_v46 = vmul.f32 %v2633_v42, %v2633_v42 }
0x13bf   : > { %v2634_v48 = vsub.f32 %v2615_v36, %v2631_v45  ;;  %v2641_v50 = vsel %vm748_vm1, %v2636_v46, 0.0 }
0x13c0   : > { %2642 = vadd.xlane.f32.xlu1 %v2641_v50 }
0x13c1   : > { %v2637_v52 = vmul.f32 %v2634_v48, %v2634_v48 }
0x13c3   : > { %v2644_v53 = vsel %vm748_vm1, %v2637_v52, 0.0 }
0x13c4   : > { %2645 = vadd.xlane.f32.xlu0 %v2644_v53 }
0x1449   : > { %v2640_v62 = vpop.xlane.xlu0 %2639 }
0x144a   : > { %v2647_v63 = vmul.f32 0.03125, %v2640_v62 }
0x144c   : > { %v2650_v0 = vadd.f32 1e-05, %v2647_v63 }
0x144d   : > { %v2643_v2 = vpop.xlane.xlu1 %2642 }
0x144e   : > { %5752 = vrsqrt.f32 %v2650_v0  ;;  %v2648_v3 = vmul.f32 0.03125, %v2643_v2 }
0x1450   : > { %v2651_v5 = vadd.f32 1e-05, %v2648_v3 }
0x1451   : > { %v2646_v7 = vpop.xlane.xlu0 %2645 }
0x1452   : > { %5754 = vrsqrt.f32 %v2651_v5  ;;  %v2649_v8 = vmul.f32 0.03125, %v2646_v7 }
0x1454   : > { %v2652_v4 = vadd.f32 1e-05, %v2649_v8 }
0x1456   : > { %5756 = vrsqrt.f32 %v2652_v4 }
0x1458   : > { %v5753_v58 = vpop.eup %5752 }
0x1459   : > { %v2656_v60 = vmul.f32 %v5753_v58, %v2632_v39 }
0x145b   : > { %v2665_v21 = vmul.f32 %v4653_v9, %v2656_v60 }
0x145c   : > { %v5755_v12 = vpop.eup %5754 }
0x145d   : > { %v2674_v25 = vadd.f32 %v4654_v6, %v2665_v21  ;;  %v2657_v28 = vmul.f32 %v5755_v12, %v2633_v42 }
0x145f   : > { %5189 = vmatmul.mubr.msk.f32.vlgmr.msra.gmra.mrb[42].mxu0 %vm748_vm1, %v2674_v25  ;;  %v2666_v13 = vmul.f32 %v4653_v9, %v2657_v28 }
0x1460   : > { %v5757_v14 = vpop.eup %5756  ;;  %5191 = vmatprep.mubr.msk.f32.mxu0 %vm5898_vm3, %v5896_v11 }
0x1461   : > { %v2675_v15 = vadd.f32 %v4654_v6, %v2666_v13  ;;  %v2658_v16 = vmul.f32 %v5757_v14, %v2634_v48 }
0x1463   : > { %5192 = vmatmul.mubr.msk.f32.gmra.mrb[44].mxu0 %vm748_vm1, %v2675_v15  ;;  %v2667_v17 = vmul.f32 %v4653_v9, %v2658_v16 }
0x1464   : > { %5194 = vmatprep.mubr.msk.f32.mxu0 %vm5898_vm3, %v5896_v11 }
0x1465   : > { %v2676_v18 = vadd.f32 %v4654_v6, %v2667_v17 }
0x1467   : > { %5195 = vmatmul.mubr.msk.f32.gmra.mrb[46].mxu0 %vm748_vm1, %v2676_v18 }
0x1468   : > { %5218 = vmatprep.mubr.msk.f32.mxu0 %vm5898_vm3, %v5896_v11 }
0x1532   : > { %v2765_v19 = vpop.f32.mrb[42].mxu0 }
0x1533   : > { %v5190_v20 = vpop.f32.mrb[43].mxu0  ;;  %v2766_v26 = vadd.f32 %v4660_v22, %v2765_v19 }
0x1535   : > { %v6608_v47 = vmul.f32 0.35355338, %v2766_v26 }
0x1536   : > { %v2770_v23 = vpop.f32.mrb[44].mxu0 }
0x1537   : > { %v2771_v27 = vadd.f32 %v4660_v22, %v2770_v23  ;;  %v5193_v29 = vpop.f32.mrb[45].mxu0 }
0x1539   : > { %v6592_v30 = vpack.i.bf16 %v2771_v27, %v2766_v26  ;;  %v6602_v34 = vmul.f32 0.35355338, %v2771_v27 }
0x153a   : > { %v2775_v31 = vpop.f32.mrb[46].mxu0 }
0x153b   : > { %v6594_v32 = vadd.f32 %v4660_v22, %v2775_v31  ;;  %5635 = vrot.lane.b32.xlu1 %v6592_v30, %s5899_s29  ;;  %v5196_v33 = vpop.f32.mrb[47].mxu0 }
0x153d   : > { %2794 = vrot.lane.b32.xlu0 %v6594_v32, %s5899_s29  ;;  %v6613_v35 = vmul.f32 0.35355338, %v6594_v32  ;;  %s7092_s29 = smov 64  }
0x153f   : > { %5640 = vrot.lane.b32.xlu1 %v6592_v30, %s5902_s0 }
0x1541   : > { %3024 = vrot.lane.b32.xlu0 %v6602_v34, %s7091_s28 }
0x1543   : > { %3032 = vrot.lane.b32.xlu1 %v6594_v32, %s5902_s0  ;;  %s7093_s0 = smov 56  }
0x1547   : > { %3022 = vrot.lane.b32.xlu1 %v6608_v47, %s7091_s28 }
0x154b   : > { %3026 = vrot.lane.b32.xlu1 %v6613_v35, %s7091_s28  ;;  %s7097_s28 = smov 72  }
0x15ad   : > { %v5636_v36 = vpop.permute.xlu1 %5635 }
0x15ae   : > { %v5638_v49 = vunpack.i.h.bf16 %v5636_v36  ;;  %v5637_v37 = vunpack.i.l.bf16 %v5636_v36 }
0x15af   : > { %v2795_v51 = vpop.permute.xlu0 %2794 }
0x15b0   : > { %v5485_v38 = vpack.c.bf16 %v5638_v49, %v5637_v37 }
0x15b1   : > { %v5641_v39 = vpop.permute.xlu1 %5640 }
0x15b2   : > { %5487 = vmatpush3.bf16.xpose.msk.msra.mxu1 %vm6179_vm5, %v5485_v38  ;;  %v5643_v40 = vunpack.i.h.bf16 %v5641_v39  ;;  %v5642_v41 = vunpack.i.l.bf16 %v5641_v39 }
0x15b3   : > { %5201 = vmatprep.subr.mxu1 %v5896_v11  ;;  %v3025_v45 = vpop.permute.xlu0 %3024 }
0x15b4   : > { %v5492_v42 = vpack.c.bf16 %v5643_v40, %v5642_v41 }
0x15b5   : > { %v3033_v43 = vpop.permute.xlu1 %3032 }
0x15b9   : > { %v3023_v44 = vpop.permute.xlu1 %3022 }
0x15ba   : > { %5202 = vmatpush3.xpose.msk.msra.mxu1 %vm1005_vm4, %v2795_v51 }
0x15bb   : > { %5491 = vmatprep.subr.bf16.mxu1 %v5897_v24 }
0x15bd   : > { %5204 = vmatmul.mubr.msk.f32.vlgmr.msra.gmra.mrb[50].mxu1 %vm1005_vm4, %v6608_v47  ;;  %v3027_v46 = vpop.permute.xlu1 %3026 }
0x15be   : > { %5494 = vmatpush3.bf16.xpose.msk.msra.mxu1 %vm6179_vm5, %v5492_v42  ;;  %5206 = vmatprep.mubr.msk.f32.mxu1 %vm5898_vm3, %v5896_v11 }
0x15bf   : > { %5231 = vmatprep.subr.mxu1 %v5896_v11 }
0x15c1   : > { %5207 = vmatmul.mubr.msk.f32.gmra.mrb[52].mxu1 %vm1005_vm4, %v6602_v34 }
0x15c2   : > { %5209 = vmatprep.mubr.msk.f32.mxu1 %vm5898_vm3, %v5896_v11 }
0x15c5   : > { %5210 = vmatmul.mubr.msk.f32.gmra.mrb[54].mxu1 %vm1005_vm4, %v6613_v35 }
0x15c6   : > { %5232 = vmatpush3.xpose.msk.msra.mxu1 %vm1005_vm4, %v3033_v43  ;;  %5233 = vmatprep.mubr.msk.f32.mxu1 %vm5898_vm3, %v5896_v11 }
0x15c7   : > { %5257 = vmatprep.subr.mxu1 %v5896_v11 }
0x15c9   : > { %5234 = vmatmul.mubr.msk.f32.vlgmr.msra.gmra.mrb[56].mxu1 %vm1005_vm4, %v3023_v44 }
0x15ca   : > { %5236 = vmatprep.mubr.msk.f32.mxu1 %vm5898_vm3, %v5896_v11 }
0x15cd   : > { %5237 = vmatmul.mubr.msk.f32.gmra.mrb[58].mxu1 %vm1005_vm4, %v3025_v45 }
0x15ce   : > { %5239 = vmatprep.mubr.msk.f32.mxu1 %vm5898_vm3, %v5896_v11 }
0x15d1   : > { %5240 = vmatmul.mubr.msk.f32.gmra.mrb[60].mxu1 %vm1005_vm4, %v3027_v46 }
0x15d2   : > { %5259 = vmatprep.mubr.msk.f32.mxu1 %vm5898_vm3, %v5896_v11 }
0x1690   : > { %v2877_v48 = vpop.f32.mrb[50].mxu1 }
0x1691   : > { %v2878_v50 = vadd.f32 %v2877_v48, %v6207_v10  ;;  %v5205_v52 = vpop.f32.mrb[51].mxu1 }
0x1693   : > { %v2891_v53 = vsel %vm1101_vm7, %v2878_v50, -inf }
0x1694   : > { %2892 = vmax.xlane.f32.xlu0 %v2891_v53  ;;  %v2882_v54 = vpop.f32.mrb[52].mxu1 }
0x1695   : > { %v2883_v55 = vadd.f32 %v2882_v54, %v6207_v10  ;;  %v5208_v56 = vpop.f32.mrb[53].mxu1 }
0x1697   : > { %v2894_v57 = vsel %vm1101_vm7, %v2883_v55, -inf }
0x1698   : > { %2895 = vmax.xlane.f32.xlu1 %v2894_v57  ;;  %v2887_v59 = vpop.f32.mrb[54].mxu1 }
0x1699   : > { %v2888_v61 = vadd.f32 %v2887_v59, %v6207_v10  ;;  %v5211_v62 = vpop.f32.mrb[55].mxu1 }
0x169b   : > { %v2897_v63 = vsel %vm1101_vm7, %v2888_v61, -inf }
0x169c   : > { %2898 = vmax.xlane.f32.xlu0 %v2897_v63  ;;  %v3112_v0 = vpop.f32.mrb[56].mxu1 }
0x169d   : > { %v3113_v2 = vadd.f32 %v3112_v0, %v6207_v10  ;;  %v5235_v3 = vpop.f32.mrb[57].mxu1 }
0x169f   : > { %v3126_v5 = vsel %vm1101_vm7, %v3113_v2, -inf }
0x16a0   : > { %3127 = vmax.xlane.f32.xlu0 %v3126_v5  ;;  %v3117_v7 = vpop.f32.mrb[58].mxu1 }
0x16a1   : > { %v3118_v8 = vadd.f32 %v3117_v7, %v6207_v10  ;;  %v5238_v4 = vpop.f32.mrb[59].mxu1 }
0x16a3   : > { %v3129_v58 = vsel %vm1101_vm7, %v3118_v8, -inf }
0x16a4   : > { %3130 = vmax.xlane.f32.xlu0 %v3129_v58  ;;  %v3122_v9 = vpop.f32.mrb[60].mxu1 }
0x16a5   : > { %v3123_v60 = vadd.f32 %v3122_v9, %v6207_v10  ;;  %v5241_v6 = vpop.f32.mrb[61].mxu1 }
0x16a7   : > { %v3132_v21 = vsel %vm1101_vm7, %v3123_v60, -inf }
0x16a8   : > { %3133 = vmax.xlane.f32.xlu1 %v3132_v21 }
0x16b9   : > { %5645 = vrot.lane.b32.xlu1 %v6592_v30, %s7092_s29 }
0x1721   : > { %v2893_v12 = vpop.xlane.xlu0 %2892 }
0x1722   : > { %v2900_v25 = vsub.f32 %v2878_v50, %v2893_v12 }
0x1724   : > { %v2903_v28 = vmul.f32 1.442695, %v2900_v25 }
0x1725   : > { %v2896_v13 = vpop.xlane.xlu1 %2895 }
0x1726   : > { %5758 = vpow2.f32 %v2903_v28  ;;  %v2901_v14 = vsub.f32 %v2883_v55, %v2896_v13  ;;  %v4664_v13 = vld [vmem:[%s7031_s10 + $0x20] sm:$0xff] }
0x1728   : > { %v2905_v15 = vmul.f32 1.442695, %v2901_v14  ;;  %v4665_v14 = vld [vmem:[%s7031_s10 + $0x28] sm:$0xff] }
0x1729   : > { %v2899_v16 = vpop.xlane.xlu0 %2898  ;;  %5258 = vmatpush3.msra.mxu1 %v4665_v14 }
0x172a   : > { %5760 = vpow2.f32 %v2905_v15  ;;  %v2902_v17 = vsub.f32 %v2888_v61, %v2899_v16  ;;  %5498 = vmatprep.subr.bf16.mxu1 %v5897_v24 }
0x172c   : > { %v2907_v18 = vmul.f32 1.442695, %v2902_v17 }
0x172d   : > { %v3128_v19 = vpop.xlane.xlu0 %3127 }
0x172e   : > { %5762 = vpow2.f32 %v2907_v18  ;;  %v3135_v20 = vsub.f32 %v3113_v2, %v3128_v19 }
0x1730   : > { %v5759_v22 = vpop.eup %5758  ;;  %v3138_v23 = vmul.f32 1.442695, %v3135_v20 }
0x1731   : > { %v3131_v26 = vpop.xlane.xlu0 %3130  ;;  %v2909_v27 = vsel %vm1101_vm7, %v5759_v22, 0.0 }
0x1732   : > { %5764 = vpow2.f32 %v3138_v23  ;;  %v3136_v29 = vsub.f32 %v3118_v8, %v3131_v26  ;;  %2910 = vadd.xlane.f32.xlu0 %v2909_v27 }
0x1734   : > { %v5761_v31 = vpop.eup %5760  ;;  %v3140_v33 = vmul.f32 1.442695, %v3136_v29 }
0x1735   : > { %v3134_v36 = vpop.xlane.xlu1 %3133  ;;  %v2912_v49 = vsel %vm1101_vm7, %v5761_v31, 0.0 }
0x1736   : > { %5766 = vpow2.f32 %v3140_v33  ;;  %v3137_v37 = vsub.f32 %v3123_v60, %v3134_v36  ;;  %2913 = vadd.xlane.f32.xlu1 %v2912_v49 }
0x1738   : > { %v5763_v38 = vpop.eup %5762  ;;  %v3142_v39 = vmul.f32 1.442695, %v3137_v37 }
0x1739   : > { %v5646_v40 = vpop.permute.xlu1 %5645  ;;  %v2915_v41 = vsel %vm1101_vm7, %v5763_v38, 0.0 }
0x173a   : > { %5768 = vpow2.f32 %v3142_v39  ;;  %v5648_v51 = vunpack.i.h.bf16 %v5646_v40  ;;  %v5647_v42 = vunpack.i.l.bf16 %v5646_v40  ;;  %2916 = vadd.xlane.f32.xlu0 %v2915_v41 }
0x173c   : > { %v5765_v43 = vpop.eup %5764  ;;  %v5489_v44 = vpack.c.bf16 %v5648_v51, %v5647_v42 }
0x173d   : > { %v3144_v45 = vsel %vm1101_vm7, %v5765_v43, 0.0 }
0x173e   : > { %3145 = vadd.xlane.f32.xlu1 %v3144_v45  ;;  %5490 = vmatpush3.bf16.msra.mxu0 %v5489_v44 }
0x173f   : > { %5216 = vmatprep.subr.mxu0 %v5896_v11 }
0x1740   : > { %v5767_v46 = vpop.eup %5766 }
0x1741   : > { %v3147_v48 = vsel %vm1101_vm7, %v5767_v46, 0.0 }
0x1742   : > { %3148 = vadd.xlane.f32.xlu0 %v3147_v48 }
0x1744   : > { %v5769_v50 = vpop.eup %5768 }
0x1745   : > { %v3150_v52 = vsel %vm1101_vm7, %v5769_v50, 0.0 }
0x1746   : > { %3151 = vadd.xlane.f32.xlu0 %v3150_v52 }
0x174f   : > { %5650 = vrot.lane.b32.xlu1 %v6592_v30, %s7093_s0 }
0x1753   : > { %3163 = vrot.lane.b32.xlu1 %v6594_v32, %s7093_s0 }
0x1757   : > { %5655 = vrot.lane.b32.xlu1 %v6592_v30, %s7094_s23 }
0x175b   : > { %3445 = vrot.lane.b32.xlu1 %v6594_v32, %s7094_s23  ;;  %s648_s23 = sand.u32 1, %s5886_s25  }
0x175c   : > { %2928 = vrot.lane.b32.xlu0 %v6594_v32, %s7092_s29  ;;  %s7098_s29 = smov 104   ;;  %s649_s22 = scalar_lea.vmem [#allocation3], %s648_s23 }
0x175d   : > { %s4518_s2 = sshll.u32 %s649_s22, 4  ;;  %s6981_s2 = int_to_ptr.vmem [resolvable:$true] %s4518_s2 }
0x175f   : > { %3437 = vrot.lane.b32.xlu1 %v6602_v34, %s7095_s26 }
0x1760   : > { %3435 = vrot.lane.b32.xlu0 %v6608_v47, %s7095_s26 }
0x1764   : > { %3439 = vrot.lane.b32.xlu0 %v6613_v35, %s7095_s26  ;;  %s7099_s26 = smov 40  }
0x17bf   : > { %v2911_v53 = vpop.xlane.xlu0 %2910 }
0x17c0   : > { %5770 = vrcp.f32 %v2911_v53 }
0x17c3   : > { %v2914_v54 = vpop.xlane.xlu1 %2913 }
0x17c4   : > { %5772 = vrcp.f32 %v2914_v54 }
0x17c7   : > { %v2917_v55 = vpop.xlane.xlu0 %2916 }
0x17c8   : > { %5774 = vrcp.f32 %v2917_v55 }
0x17ca   : > { %v5771_v62 = vpop.eup %5770 }
0x17cb   : > { %v3146_v56 = vpop.xlane.xlu1 %3145  ;;  %v2921_v2 = vmul.f32 %v5771_v62, %v5759_v22 }
0x17cc   : > { %5776 = vrcp.f32 %v3146_v56 }
0x17ce   : > { %v5773_v5 = vpop.eup %5772 }
0x17cf   : > { %v3149_v57 = vpop.xlane.xlu0 %3148  ;;  %v5651_v59 = vpop.permute.xlu1 %5650  ;;  %v2922_v8 = vmul.f32 %v5773_v5, %v5761_v31 }
0x17d0   : > { %v5653_v63 = vunpack.i.h.bf16 %v5651_v59  ;;  %v5652_v0 = vunpack.i.l.bf16 %v5651_v59  ;;  %5778 = vrcp.f32 %v3149_v57 }
0x17d2   : > { %v5496_v7 = vpack.c.bf16 %v5653_v63, %v5652_v0  ;;  %v5775_v4 = vpop.eup %5774 }
0x17d3   : > { %v3152_v61 = vpop.xlane.xlu0 %3151  ;;  %v3164_v58 = vpop.permute.xlu1 %3163  ;;  %v2923_v9 = vmul.f32 %v5775_v4, %v5763_v38 }
0x17d4   : > { %5780 = vrcp.f32 %v3152_v61 }
0x17d6   : > { %v5777_v60 = vpop.eup %5776 }
0x17d7   : > { %v2929_v3 = vpop.permute.xlu0 %2928  ;;  %v3156_v6 = vmul.f32 %v5777_v60, %v5765_v43  ;;  %v5656_v18 = vpop.permute.xlu1 %5655 }
0x17d8   : > { %5217 = vmatpush3.msra.mxu0 %v2929_v3  ;;  %v5658_v20 = vunpack.i.h.bf16 %v5656_v18  ;;  %v5657_v22 = vunpack.i.l.bf16 %v5656_v18 }
0x17d9   : > { %5219 = vmatmul.mubr.msk.f32.vlgmr.msra.gmra.mrb[48].mxu0 %vm1101_vm7, %v2921_v2  ;;  %5495 = vmatprep.subr.bf16.mxu0 %v5897_v24 }
0x17da   : > { %5497 = vmatpush3.bf16.msra.mxu0 %v5496_v7  ;;  %5221 = vmatprep.mubr.msk.f32.mxu0 %vm5898_vm3, %v5896_v11  ;;  %v5779_v21 = vpop.eup %5778  ;;  %v5499_v27 = vpack.c.bf16 %v5658_v20, %v5657_v22 }
0x17db   : > { %5246 = vmatprep.subr.mxu0 %v5896_v11  ;;  %v3157_v12 = vmul.f32 %v5779_v21, %v5767_v46  ;;  %v3446_v37 = vpop.permute.xlu1 %3445  ;;  %v3436_v39 = vpop.permute.xlu0 %3435 }
0x17dd   : > { %5222 = vmatmul.mubr.msk.f32.gmra.mrb[50].mxu0 %vm1101_vm7, %v2922_v8 }
0x17de   : > { %5247 = vmatpush3.msra.mxu0 %v3164_v58  ;;  %5224 = vmatprep.mubr.msk.f32.mxu0 %vm5898_vm3, %v5896_v11  ;;  %v5781_v25 = vpop.eup %5780 }
0x17df   : > { %5268 = vmatprep.subr.mxu0 %v5896_v11  ;;  %v3158_v28 = vmul.f32 %v5781_v25, %v5769_v50  ;;  %v3438_v40 = vpop.permute.xlu1 %3437  ;;  %v3440_v41 = vpop.permute.xlu0 %3439 }
0x17e1   : > { %5225 = vmatmul.mubr.msk.f32.gmra.mrb[52].mxu0 %vm1101_vm7, %v2923_v9 }
0x17e2   : > { %5248 = vmatprep.mubr.msk.f32.mxu0 %vm5898_vm3, %v5896_v11 }
0x17e5   : > { %5249 = vmatmul.mubr.msk.f32.vlgmr.msra.gmra.mrb[54].mxu0 %vm1101_vm7, %v3156_v6 }
0x17e6   : > { %5251 = vmatprep.mubr.msk.f32.mxu0 %vm5898_vm3, %v5896_v11  ;;  %5269 = vmatpush3.msra.mxu0 %v4664_v13 }
0x17e7   : > { %5502 = vmatprep.subr.bf16.mxu0 %v5897_v24 }
0x17e9   : > { %5252 = vmatmul.mubr.msk.f32.gmra.mrb[56].mxu0 %vm1101_vm7, %v3157_v12 }
0x17ea   : > { %5254 = vmatprep.mubr.msk.f32.mxu0 %vm5898_vm3, %v5896_v11 }
0x17ed   : > { %5255 = vmatmul.mubr.msk.f32.gmra.mrb[58].mxu0 %vm1101_vm7, %v3158_v28 }
0x17ee   : > { %5270 = vmatprep.mubr.msk.f32.mxu0 %vm5898_vm3, %v5896_v11 }
0x18ac   : > { %v3008_v15 = vpop.f32.mrb[48].mxu0 }
0x18ad   : > { %v5220_v16 = vpop.f32.mrb[49].mxu0  ;;  %5271 = vmatmul.mubr.msk.f32.vlgmr.msra.gmra.mrb[60].mxu0 %vm1005_vm4, %v3008_v15 }
0x18ae   : > { %5273 = vmatprep.mubr.msk.f32.mxu0 %vm5898_vm3, %v5896_v11 }
0x18b0   : > { %v3013_v17 = vpop.f32.mrb[50].mxu0 }
0x18b1   : > { %v5223_v19 = vpop.f32.mrb[51].mxu0  ;;  %5274 = vmatmul.mubr.msk.f32.gmra.mrb[62].mxu0 %vm1005_vm4, %v3013_v17 }
0x18b2   : > { %5276 = vmatprep.mubr.msk.f32.mxu0 %vm5898_vm3, %v5896_v11 }
0x18b4   : > { %v3018_v23 = vpop.f32.mrb[52].mxu0 }
0x18b5   : > { %v5226_v26 = vpop.f32.mrb[53].mxu0  ;;  %5277 = vmatmul.mubr.msk.f32.gmra.mrb[64].mxu0 %vm1005_vm4, %v3018_v23 }
0x18b6   : > { %5300 = vmatprep.mubr.msk.f32.mxu0 %vm5898_vm3, %v5896_v11 }
0x18b8   : > { %v3243_v29 = vpop.f32.mrb[54].mxu0 }
0x18b9   : > { %v5250_v31 = vpop.f32.mrb[55].mxu0  ;;  %5260 = vmatmul.mubr.msk.f32.vlgmr.msra.gmra.mrb[62].mxu1 %vm1005_vm4, %v3243_v29 }
0x18ba   : > { %5501 = vmatpush3.bf16.xpose.msk.msra.mxu1 %vm6179_vm5, %v5499_v27  ;;  %5262 = vmatprep.mubr.msk.f32.mxu1 %vm5898_vm3, %v5896_v11 }
0x18bb   : > { %5283 = vmatprep.subr.mxu1 %v5896_v11 }
0x18bc   : > { %v3248_v33 = vpop.f32.mrb[56].mxu0 }
0x18bd   : > { %v5253_v36 = vpop.f32.mrb[57].mxu0  ;;  %5263 = vmatmul.mubr.msk.f32.gmra.mrb[64].mxu1 %vm1005_vm4, %v3248_v33 }
0x18be   : > { %5265 = vmatprep.mubr.msk.f32.mxu1 %vm5898_vm3, %v5896_v11 }
0x18c0   : > { %v3253_v49 = vpop.f32.mrb[58].mxu0 }
0x18c1   : > { %v5256_v38 = vpop.f32.mrb[59].mxu0  ;;  %5266 = vmatmul.mubr.msk.f32.gmra.mrb[66].mxu1 %vm1005_vm4, %v3253_v49 }
0x18c2   : > { %5284 = vmatpush3.xpose.msk.msra.mxu1 %vm1005_vm4, %v3446_v37  ;;  %5285 = vmatprep.mubr.msk.f32.mxu1 %vm5898_vm3, %v5896_v11 }
0x18c3   : > { %5309 = vmatprep.subr.mxu1 %v5896_v11 }
0x18c5   : > { %5286 = vmatmul.mubr.msk.f32.vlgmr.msra.gmra.mrb[68].mxu1 %vm1005_vm4, %v3436_v39 }
0x18c6   : > { %5288 = vmatprep.mubr.msk.f32.mxu1 %vm5898_vm3, %v5896_v11 }
0x18c9   : > { %5289 = vmatmul.mubr.msk.f32.gmra.mrb[70].mxu1 %vm1005_vm4, %v3438_v40 }
0x18ca   : > { %5291 = vmatprep.mubr.msk.f32.mxu1 %vm5898_vm3, %v5896_v11 }
0x18cd   : > { %5292 = vmatmul.mubr.msk.f32.gmra.mrb[72].mxu1 %vm1005_vm4, %v3440_v41 }
0x18ce   : > { %5311 = vmatprep.mubr.msk.f32.mxu1 %vm5898_vm3, %v5896_v11 }
0x1980   : > { %v3421_v51 = vpop.f32.mrb[60].mxu0 }
0x1981   : > { %v5272_v42 = vpop.f32.mrb[61].mxu0 }
0x1984   : > { %v3426_v43 = vpop.f32.mrb[62].mxu0 }
0x1985   : > { %v5275_v44 = vpop.f32.mrb[63].mxu0 }
0x1988   : > { %v3431_v45 = vpop.f32.mrb[64].mxu0 }
0x1989   : > { %v5278_v46 = vpop.f32.mrb[65].mxu0 }
0x198a   : > { %v4666_v46 = vld [vmem:[%s7031_s10 + $0x30] sm:$0xff] }
0x198b   : > { %5310 = vmatpush3.msra.mxu1 %v4666_v46 }
0x198c   : > { %v3332_v48 = vpop.f32.mrb[62].mxu1  ;;  %5509 = vmatprep.subr.bf16.mxu1 %v5897_v24 }
0x198d   : > { %v6746_v50 = vadd.f32 %v3421_v51, %v3332_v48  ;;  %v5261_v52 = vpop.f32.mrb[63].mxu1 }
0x1990   : > { %v3337_v53 = vpop.f32.mrb[64].mxu1 }
0x1991   : > { %v6748_v54 = vadd.f32 %v3426_v43, %v3337_v53  ;;  %v5264_v55 = vpop.f32.mrb[65].mxu1 }
0x1994   : > { %v3342_v56 = vpop.f32.mrb[66].mxu1 }
0x1995   : > { %v6750_v57 = vadd.f32 %v3431_v45, %v3342_v56  ;;  %v5267_v59 = vpop.f32.mrb[67].mxu1 }
0x1998   : > { %v3525_v61 = vpop.f32.mrb[68].mxu1 }
0x1999   : > { %v3526_v62 = vadd.f32 %v3525_v61, %v6207_v10  ;;  %v5287_v63 = vpop.f32.mrb[69].mxu1 }
0x199b   : > { %v3539_v0 = vsel %vm1101_vm7, %v3526_v62, -inf }
0x199c   : > { %3540 = vmax.xlane.f32.xlu1 %v3539_v0  ;;  %v3530_v2 = vpop.f32.mrb[70].mxu1 }
0x199d   : > { %v3531_v3 = vadd.f32 %v3530_v2, %v6207_v10  ;;  %v5290_v5 = vpop.f32.mrb[71].mxu1 }
0x199f   : > { %v3542_v7 = vsel %vm1101_vm7, %v3531_v3, -inf }
0x19a0   : > { %3543 = vmax.xlane.f32.xlu0 %v3542_v7  ;;  %v3535_v8 = vpop.f32.mrb[72].mxu1 }
0x19a1   : > { %v3536_v4 = vadd.f32 %v3535_v8, %v6207_v10  ;;  %v5293_v58 = vpop.f32.mrb[73].mxu1 }
0x19a3   : > { %v3545_v9 = vsel %vm1101_vm7, %v3536_v4, -inf }
0x19a4   : > { %3546 = vmax.xlane.f32.xlu0 %v3545_v9 }
0x19ad   : > { %5660 = vrot.lane.b32.xlu1 %v6592_v30, %s7096_s30 }
0x1a29   : > { %v3541_v60 = vpop.xlane.xlu1 %3540 }
0x1a2a   : > { %v3548_v6 = vsub.f32 %v3526_v62, %v3541_v60 }
0x1a2c   : > { %v3551_v21 = vmul.f32 1.442695, %v3548_v6 }
0x1a2d   : > { %v5661_v12 = vpop.permute.xlu1 %5660  ;;  %v3544_v25 = vpop.xlane.xlu0 %3543 }
0x1a2e   : > { %5782 = vpow2.f32 %v3551_v21  ;;  %v5663_v28 = vunpack.i.h.bf16 %v5661_v12  ;;  %v5662_v13 = vunpack.i.l.bf16 %v5661_v12  ;;  %v3549_v14 = vsub.f32 %v3531_v3, %v3544_v25 }
0x1a30   : > { %v5503_v15 = vpack.c.bf16 %v5663_v28, %v5662_v13  ;;  %v3553_v16 = vmul.f32 1.442695, %v3549_v14 }
0x1a31   : > { %v3547_v17 = vpop.xlane.xlu0 %3546 }
0x1a32   : > { %5784 = vpow2.f32 %v3553_v16  ;;  %v3550_v18 = vsub.f32 %v3536_v4, %v3547_v17  ;;  %5504 = vmatpush3.bf16.msra.mxu0 %v5503_v15 }
0x1a33   : > { %5298 = vmatprep.subr.mxu0 %v5896_v11 }
0x1a34   : > { %v3555_v19 = vmul.f32 1.442695, %v3550_v18 }
0x1a36   : > { %5786 = vpow2.f32 %v3555_v19 }
0x1a38   : > { %v5783_v20 = vpop.eup %5782 }
0x1a39   : > { %v3557_v22 = vsel %vm1101_vm7, %v5783_v20, 0.0 }
0x1a3a   : > { %3558 = vadd.xlane.f32.xlu0 %v3557_v22 }
0x1a3c   : > { %v5785_v23 = vpop.eup %5784 }
0x1a3d   : > { %v3560_v26 = vsel %vm1101_vm7, %v5785_v23, 0.0 }
0x1a3e   : > { %3561 = vadd.xlane.f32.xlu1 %v3560_v26 }
0x1a40   : > { %v5787_v27 = vpop.eup %5786 }
0x1a41   : > { %v3563_v29 = vsel %vm1101_vm7, %v5787_v27, 0.0 }
0x1a42   : > { %3564 = vadd.xlane.f32.xlu0 %v3563_v29 }
0x1a4f   : > { %5665 = vrot.lane.b32.xlu1 %v6592_v30, %s7097_s28 }
0x1a53   : > { %3772 = vrot.lane.b32.xlu1 %v6594_v32, %s7097_s28  ;;  %s4506_s28 = scalar_lea.sflag [#allocation4], %s648_s23 }
0x1a57   : > { %3762 = vrot.lane.b32.xlu1 %v6608_v47, %s7098_s29 }
0x1a58   : > { %3576 = vrot.lane.b32.xlu0 %v6594_v32, %s7096_s30 }
0x1a5b   : > { %3766 = vrot.lane.b32.xlu1 %v6613_v35, %s7098_s29 }
0x1a5c   : > { %3764 = vrot.lane.b32.xlu0 %v6602_v34, %s7098_s29  ;;  %s5832_s29 = scalar_lea.vmem %s6981_s2, 16 }
0x1a5d   : > { %p5833_p11 = scmp.ne.s32.totalorder %s6981_s2, %s5832_s29 }
0x1a5f   : > { %p5834_p12 = pnand %p5833_p11, %p6060_p5 }
0x1a61   : > { %p5835_p13 = pneg %p5834_p12 }
0x1ac7   : > { %v3559_v31 = vpop.xlane.xlu0 %3558 }
0x1ac8   : > { %5788 = vrcp.f32 %v3559_v31 }
0x1acb   : > { %v3562_v33 = vpop.xlane.xlu1 %3561 }
0x1acc   : > { %5790 = vrcp.f32 %v3562_v33  ;;  %v4667_v33 = vld [vmem:[%s7031_s10 + $0x38] sm:$0xff] }
0x1acf   : > { %v3565_v36 = vpop.xlane.xlu0 %3564  ;;  %v5666_v37 = vpop.permute.xlu1 %5665 }
0x1ad0   : > { %5792 = vrcp.f32 %v3565_v36  ;;  %v5668_v47 = vunpack.i.h.bf16 %v5666_v37  ;;  %v5667_v40 = vunpack.i.l.bf16 %v5666_v37 }
0x1ad2   : > { %v5789_v49 = vpop.eup %5788  ;;  %v5506_v41 = vpack.c.bf16 %v5668_v47, %v5667_v40 }
0x1ad3   : > { %v3569_v38 = vmul.f32 %v5789_v49, %v5783_v20  ;;  %v3577_v39 = vpop.permute.xlu0 %3576  ;;  %v3773_v43 = vpop.permute.xlu1 %3772 }
0x1ad4   : > { %5299 = vmatpush3.msra.mxu0 %v3577_v39 }
0x1ad5   : > { %5301 = vmatmul.mubr.msk.f32.vlgmr.msra.gmra.mrb[66].mxu0 %vm1101_vm7, %v3569_v38  ;;  %5505 = vmatprep.subr.bf16.mxu0 %v5897_v24 }
0x1ad6   : > { %v5791_v35 = vpop.eup %5790  ;;  %5303 = vmatprep.mubr.msk.f32.mxu0 %vm5898_vm3, %v5896_v11 }
0x1ad7   : > { %v3570_v34 = vmul.f32 %v5791_v35, %v5785_v23  ;;  %v3763_v44 = vpop.permute.xlu1 %3762  ;;  %v3765_v1 = vpop.permute.xlu0 %3764 }
0x1ad9   : > { %5304 = vmatmul.mubr.msk.f32.gmra.mrb[68].mxu0 %vm1101_vm7, %v3570_v34 }
0x1ada   : > { %v5793_v51 = vpop.eup %5792  ;;  %5306 = vmatprep.mubr.msk.f32.mxu0 %vm5898_vm3, %v5896_v11 }
0x1adb   : > { %5508 = vmatpush3.bf16.xpose.msk.msra.mxu0 %vm6179_vm5, %v5506_v41  ;;  %v3571_v42 = vmul.f32 %v5793_v51, %v5787_v27  ;;  %v3767_v45 = vpop.permute.xlu1 %3766 }
0x1adc   : > { %5324 = vmatprep.subr.mxu0 %v5896_v11 }
0x1add   : > { %5307 = vmatmul.mubr.msk.f32.gmra.mrb[70].mxu0 %vm1101_vm7, %v3571_v42 }
0x1ade   : > { %5326 = vmatprep.mubr.msk.f32.mxu0 %vm5898_vm3, %v5896_v11 }
0x1ae3   : > { %5325 = vmatpush3.xpose.msk.msra.mxu0 %vm1005_vm4, %v3773_v43 }
0x1ae4   : > { %5350 = vmatprep.subr.mxu0 %v5896_v11 }
0x1ae6   : > { %5327 = vmatmul.mubr.msk.f32.vlgmr.msra.gmra.mrb[72].mxu0 %vm1005_vm4, %v3763_v44 }
0x1ae7   : > { %5329 = vmatprep.mubr.msk.f32.mxu0 %vm5898_vm3, %v5896_v11  ;;  %5351 = vmatpush3.msra.mxu0 %v4667_v33 }
0x1ae8   : > { %5518 = vmatprep.subr.bf16.mxu0 %v5897_v24 }
0x1aea   : > { %5330 = vmatmul.mubr.msk.f32.gmra.mrb[74].mxu0 %vm1005_vm4, %v3765_v1 }
0x1aeb   : > { %5332 = vmatprep.mubr.msk.f32.mxu0 %vm5898_vm3, %v5896_v11 }
0x1aee   : > { %5333 = vmatmul.mubr.msk.f32.gmra.mrb[76].mxu0 %vm1005_vm4, %v3767_v45 }
0x1aef   : > { %5352 = vmatprep.mubr.msk.f32.mxu0 %vm5898_vm3, %v5896_v11 }
0x1ba8   : > { %v3656_v48 = vpop.f32.mrb[66].mxu0 }
0x1ba9   : > { %v5302_v52 = vpop.f32.mrb[67].mxu0  ;;  %5312 = vmatmul.mubr.msk.f32.vlgmr.msra.gmra.mrb[74].mxu1 %vm1005_vm4, %v3656_v48 }
0x1baa   : > { %5314 = vmatprep.mubr.msk.f32.mxu1 %vm5898_vm3, %v5896_v11 }
0x1bac   : > { %v3661_v53 = vpop.f32.mrb[68].mxu0 }
0x1bad   : > { %v5305_v55 = vpop.f32.mrb[69].mxu0  ;;  %5315 = vmatmul.mubr.msk.f32.gmra.mrb[76].mxu1 %vm1005_vm4, %v3661_v53 }
0x1bae   : > { %5317 = vmatprep.mubr.msk.f32.mxu1 %vm5898_vm3, %v5896_v11 }
0x1bb0   : > { %v3666_v56 = vpop.f32.mrb[70].mxu0 }
0x1bb1   : > { %v5308_v59 = vpop.f32.mrb[71].mxu0  ;;  %5318 = vmatmul.mubr.msk.f32.gmra.mrb[78].mxu1 %vm1005_vm4, %v3666_v56  ;;  %v4717_v56 = vld [vmem:[%s7032_s11 + $0x1] ss:$0 sm:$0xff] }
0x1bb2   : > { %5341 = vmatprep.mubr.msk.f32.mxu1 %vm5898_vm3, %v5896_v11  ;;  %v5829_v59 = vld [vmem:[#allocation2] sm:$0xff] }
0x1bb9   : > { %v3852_v61 = vpop.f32.mrb[72].mxu0 }
0x1bba   : > { %v3853_v62 = vadd.f32 %v3852_v61, %v6207_v10  ;;  %v5328_v63 = vpop.f32.mrb[73].mxu0 }
0x1bbc   : > { %v3866_v0 = vsel %vm1101_vm7, %v3853_v62, -inf }
0x1bbd   : > { %3867 = vmax.xlane.f32.xlu0 %v3866_v0  ;;  %v3857_v2 = vpop.f32.mrb[74].mxu0 }
0x1bbe   : > { %v3858_v3 = vadd.f32 %v3857_v2, %v6207_v10  ;;  %v5331_v5 = vpop.f32.mrb[75].mxu0 }
0x1bc0   : > { %v3869_v7 = vsel %vm1101_vm7, %v3858_v3, -inf }
0x1bc1   : > { %3870 = vmax.xlane.f32.xlu1 %v3869_v7  ;;  %v3862_v8 = vpop.f32.mrb[76].mxu0 }
0x1bc2   : > { %v3863_v4 = vadd.f32 %v3862_v8, %v6207_v10  ;;  %v5334_v58 = vpop.f32.mrb[77].mxu0 }
0x1bc4   : > { %v3872_v9 = vsel %vm1101_vm7, %v3863_v4, -inf }
0x1bc5   : > { %3873 = vmax.xlane.f32.xlu0 %v3872_v9  ;;  %v5831_v9 = vld [vmem:[#allocation2 + $0x10] sm:$0xff] }
0x1c4a   : > { %v3868_v60 = vpop.xlane.xlu0 %3867 }
0x1c4b   : > { %v3875_v6 = vsub.f32 %v3853_v62, %v3868_v60 }
0x1c4d   : > { %v3878_v21 = vmul.f32 1.442695, %v3875_v6 }
0x1c4e   : > { %v3871_v12 = vpop.xlane.xlu1 %3870 }
0x1c4f   : > { %5794 = vpow2.f32 %v3878_v21  ;;  %v3876_v25 = vsub.f32 %v3858_v3, %v3871_v12  ;;  %v5830_v3 = vld [vmem:[#allocation2 + $0x8] sm:$0xff] }
0x1c51   : > { %v3880_v28 = vmul.f32 1.442695, %v3876_v25 }
0x1c52   : > { %v3874_v13 = vpop.xlane.xlu0 %3873 }
0x1c53   : > { %5796 = vpow2.f32 %v3880_v28  ;;  %v3877_v14 = vsub.f32 %v3863_v4, %v3874_v13 }
0x1c55   : > { %v3882_v15 = vmul.f32 1.442695, %v3877_v14 }
0x1c57   : > { %5798 = vpow2.f32 %v3882_v15 }
0x1c59   : > { %v5795_v16 = vpop.eup %5794 }
0x1c5a   : > { %v3884_v17 = vsel %vm1101_vm7, %v5795_v16, 0.0 }
0x1c5b   : > { %3885 = vadd.xlane.f32.xlu0 %v3884_v17 }
0x1c5d   : > { %v5797_v10 = vpop.eup %5796 }
0x1c5e   : > { %v3887_v18 = vsel %vm1101_vm7, %v5797_v10, 0.0 }
0x1c5f   : > { %3888 = vadd.xlane.f32.xlu0 %v3887_v18 }
0x1c61   : > { %v5799_v19 = vpop.eup %5798 }
0x1c62   : > { %v3890_v20 = vsel %vm1101_vm7, %v5799_v19, 0.0 }
0x1c63   : > { %3891 = vadd.xlane.f32.xlu1 %v3890_v20 }
0x1c74   : > { %3903 = vrot.lane.b32.xlu1 %v6594_v32, %s7099_s26 }
0x1c75   : > { %5670 = vrot.lane.b32.xlu0 %v6592_v30, %s7099_s26  ;;  %s4748_s26 = sshll.u32 %s6043_s3, 4  ;;  %s5911_s3 = smov [#allocation3]  }
0x1c76   : > { %s6979_s30 = scalar_lea.hbm %s7042_s21, %s4748_s26  ;;  %s5836_s0 = sshll.u32 %s5911_s3, 4  ;;  %s5837_s0 = int_to_ptr.vmem [resolvable:$false] %s5836_s0 }
0x1c77   : > { %s5838_s27 = scalar_lea.vmem %s5837_s0, 32  ;;  %p5839_p0 = scmp.lt.s32.totalorder %s6981_s2, %s5837_s0 }
0x1c78   : > { %p5840_p1 = scmp.lt.s32.totalorder %s5838_s27, %s5832_s29 }
0x1c7a   : > { %p5841_p2 = por %p5840_p1, %p5839_p0 }
0x1c7c   : > { %v3745_v22 = vpop.f32.mrb[74].mxu1  ;;  %p5842_p3 = pnand %p5841_p2, %p5835_p13 }
0x1c7d   : > { %v3759_v23 = vadd.f32 %v3745_v22, %v6746_v50  ;;  %v5313_v26 = vpop.f32.mrb[75].mxu1 }
0x1c80   : > { %v3750_v27 = vpop.f32.mrb[76].mxu1 }
0x1c81   : > { %v3760_v29 = vadd.f32 %v3750_v27, %v6748_v54  ;;  %v5316_v31 = vpop.f32.mrb[77].mxu1 }
0x1c84   : > { %v3755_v36 = vpop.f32.mrb[78].mxu1 }
0x1c85   : > { %v3761_v32 = vadd.f32 %v3755_v36, %v6750_v57  ;;  %v5319_v49 = vpop.f32.mrb[79].mxu1 }
0x1c86   : > { %v4723_v49 = vld [vmem:[%s7035_s14 + $0x28] sm:$0xff] }
0x1ce8   : > { %v3886_v30 = vpop.xlane.xlu0 %3885 }
0x1ce9   : > { %5800 = vrcp.f32 %v3886_v30 }
0x1cec   : > { %v3889_v37 = vpop.xlane.xlu0 %3888 }
0x1ced   : > { %5802 = vrcp.f32 %v3889_v37  ;;  %v4724_v37 = vld [vmem:[%s7035_s14 + $0x30] sm:$0xff] }
0x1cf0   : > { %v3892_v50 = vpop.xlane.xlu1 %3891  ;;  %v5671_v38 = vpop.permute.xlu0 %5670 }
0x1cf1   : > { %v5673_v39 = vunpack.i.h.bf16 %v5671_v38  ;;  %v5672_v54 = vunpack.i.l.bf16 %v5671_v38  ;;  %5804 = vrcp.f32 %v3892_v50  ;;  %v4725_v50 = vld [vmem:[%s7035_s14 + $0x38] sm:$0xff] }
0x1cf2   : > { %v5516_v38 = vpack.c.bf16 %v4725_v50, %v4724_v37 }
0x1cf3   : > { %v5510_v47 = vpack.c.bf16 %v5673_v39, %v5672_v54  ;;  %v5801_v40 = vpop.eup %5800 }
0x1cf4   : > { %v3896_v35 = vmul.f32 %v5801_v40, %v5795_v16  ;;  %v3904_v34 = vpop.permute.xlu1 %3903 }
0x1cf5   : > { %5511 = vmatpush3.bf16.msra.mxu1 %v5510_v47 }
0x1cf6   : > { %5339 = vmatprep.subr.mxu1 %v5896_v11 }
0x1cf7   : > { %v5803_v41 = vpop.eup %5802 }
0x1cf8   : > { %v3897_v57 = vmul.f32 %v5803_v41, %v5797_v10 }
0x1cf9   : > { %5340 = vmatpush3.msra.mxu1 %v3904_v34 }
0x1cfa   : > { %5342 = vmatmul.mubr.msk.f32.vlgmr.msra.gmra.mrb[80].mxu1 %vm1101_vm7, %v3896_v35  ;;  %5512 = vmatprep.subr.bf16.mxu1 %v5897_v24 }
0x1cfb   : > { %5344 = vmatprep.mubr.msk.f32.mxu1 %vm5898_vm3, %v5896_v11  ;;  %v5805_v51 = vpop.eup %5804 }
0x1cfc   : > { %v3898_v42 = vmul.f32 %v5805_v51, %v5799_v19 }
0x1cfe   : > { %5345 = vmatmul.mubr.msk.f32.gmra.mrb[82].mxu1 %vm1101_vm7, %v3897_v57 }
0x1cff   : > { %5347 = vmatprep.mubr.msk.f32.mxu1 %vm5898_vm3, %v5896_v11 }
0x1d02   : > { %5348 = vmatmul.mubr.msk.f32.gmra.mrb[84].mxu1 %vm1101_vm7, %v3898_v42 }
0x1d03   : > { %5369 = vmatprep.mubr.msk.f32.mxu1 %vm5898_vm3, %v5896_v11 }
0x1dcd   : > { %v3983_v43 = vpop.f32.mrb[80].mxu1 }
0x1dce   : > { %v5343_v44 = vpop.f32.mrb[81].mxu1  ;;  %5353 = vmatmul.mubr.msk.f32.vlgmr.msra.gmra.mrb[78].mxu0 %vm1005_vm4, %v3983_v43  ;;  %v4720_v43 = vld [vmem:[%s7033_s12 + $0x1] ss:$0 sm:$0xff] }
0x1dcf   : > { %5355 = vmatprep.mubr.msk.f32.mxu0 %vm5898_vm3, %v5896_v11 }
0x1dd1   : > { %v3988_v1 = vpop.f32.mrb[82].mxu1 }
0x1dd2   : > { %v5346_v45 = vpop.f32.mrb[83].mxu1  ;;  %5356 = vmatmul.mubr.msk.f32.gmra.mrb[80].mxu0 %vm1005_vm4, %v3988_v1  ;;  %v4721_v1 = vld [vmem:[%s7034_s13 + $0x1] ss:$0 sm:$0xff] }
0x1dd3   : > { %5358 = vmatprep.mubr.msk.f32.mxu0 %vm5898_vm3, %v5896_v11 }
0x1dd5   : > { %v3993_v46 = vpop.f32.mrb[84].mxu1 }
0x1dd6   : > { %v5349_v48 = vpop.f32.mrb[85].mxu1  ;;  %5359 = vmatmul.mubr.msk.f32.gmra.mrb[82].mxu0 %vm1005_vm4, %v3993_v46 }
0x1dd7   : > { %5394 = vmatprep.mubr.msk.f32.mxu0 %vm5898_vm3, %v5896_v11 }
0x1ea1   : > { %v4072_v52 = vpop.f32.mrb[78].mxu0 }
0x1ea2   : > { %v4086_v53 = vadd.f32 %v4072_v52, %v3759_v23  ;;  %v5354_v55 = vpop.f32.mrb[79].mxu0 }
0x1ea4   : > { %v4089_v61 = vadd.f32 %v5829_v59, %v4086_v53 }
0x1ea5   : > { %v4077_v62 = vpop.f32.mrb[80].mxu0 }
0x1ea6   : > { %v4100_v63 = vadd.f32 %v4717_v56, %v4089_v61  ;;  %v4087_v0 = vadd.f32 %v4077_v62, %v3760_v29  ;;  %v5357_v2 = vpop.f32.mrb[81].mxu0 }
0x1ea8   : > { %4103 = vst.msk [vmem:[#allocation2] sm:$0xff] %vm748_vm1, %v4100_v63  ;;  %v4090_v5 = vadd.f32 %v5830_v3, %v4087_v0  ;;  %v4734_v63 = vld [vmem:[%s7037_s16 + $0x40] sm:$0xff]  ;;  %v4735_v0 = vld [vmem:[%s7037_s16 + $0x48] sm:$0xff]  ;;  %v4736_v3 = vld [vmem:[%s7037_s16 + $0x50] sm:$0xff] }
0x1ea9   : > { %v4082_v7 = vpop.f32.mrb[82].mxu0  ;;  %v5519_v2 = vpack.c.bf16 %v4735_v0, %v4734_v63  ;;  %v4428_v63 = vld [vmem:[%s7041_s20 + $0x10] sm:$0xff]  ;;  %v4429_v0 = vld [vmem:[%s7041_s20 + $0x18] sm:$0xff] }
0x1eaa   : > { %v4101_v8 = vadd.f32 %v4717_v56, %v4090_v5  ;;  %v4088_v4 = vadd.f32 %v4082_v7, %v3761_v32  ;;  %v5360_v58 = vpop.f32.mrb[83].mxu0  ;;  %v4722_v32 = vld [vmem:[%s7035_s14 + $0x20] sm:$0xff]  ;;  %v4737_v5 = vld [vmem:[%s7037_s16 + $0x58] sm:$0xff] }
0x1eab   : > { %v5513_v30 = vpack.c.bf16 %v4723_v49, %v4722_v32  ;;  %5520 = vmatpush3.bf16.msra.mxu0 %v5519_v2  ;;  %v5522_v7 = vpack.c.bf16 %v4737_v5, %v4736_v3  ;;  %v5534_v2 = vpack.c.bf16 %v4429_v0, %v4428_v63 }
0x1eac   : > { %4104 = vst.msk [vmem:[#allocation2 + $0x8] sm:$0xff] %vm748_vm1, %v4101_v8  ;;  %v4091_v60 = vadd.f32 %v5831_v9, %v4088_v4  ;;  %5521 = vmatprep.subr.bf16.mxu0 %v5897_v24  ;;  %v4738_v8 = vld [vmem:[%s7037_s16 + $0x60] sm:$0xff]  ;;  %v4739_v4 = vld [vmem:[%s7037_s16 + $0x68] sm:$0xff]  ;;  %v4740_v9 = vld [vmem:[%s7037_s16 + $0x70] sm:$0xff] }
0x1ead   : > { %5514 = vmatpush3.bf16.msra.mxu1 %v5513_v30  ;;  %v5525_v58 = vpack.c.bf16 %v4739_v4, %v4738_v8 }
0x1eae   : > { %v4102_v6 = vadd.f32 %v4717_v56, %v4091_v60  ;;  %5515 = vmatprep.subr.bf16.mxu1 %v5897_v24  ;;  %v4741_v60 = vld [vmem:[%s7037_s16 + $0x78] sm:$0xff] }
0x1eaf   : > { %v6858_v21 = vld [vmem:[#allocation2] sm:$0xff]  ;;  %5523 = vmatpush3.bf16.msra.mxu0 %v5522_v7 }
0x1eb0   : > { %4105 = vst.msk [vmem:[#allocation2 + $0x10] sm:$0xff] %vm748_vm1, %v4102_v6  ;;  %v4113_v12 = vsel %vm748_vm1, %v6858_v21, 0.0  ;;  %5524 = vmatprep.subr.bf16.mxu0 %v5897_v24  ;;  %v5528_v6 = vpack.c.bf16 %v4741_v60, %v4740_v9 }
0x1eb1   : > { %4114 = vadd.xlane.f32.xlu1 %v4113_v12  ;;  %5517 = vmatpush3.bf16.msra.mxu1 %v5516_v38  ;;  %v4727_v12 = vld [vmem:[%s7036_s15 + $0x1] ss:$0 sm:$0xff] }
0x1eb2   : > { %5530 = vmatprep.subr.bf16.mxu1 %v5897_v24 }
0x1eb3   : > { %v6863_v25 = vld [vmem:[#allocation2 + $0x8] sm:$0xff]  ;;  %5526 = vmatpush3.bf16.msra.mxu0 %v5525_v58  ;;  %v4410_v58 = vld [vmem:[%s7040_s19] sm:$0x1] }
0x1eb4   : > { %v4116_v28 = vsel %vm748_vm1, %v6863_v25, 0.0  ;;  %5527 = vmatprep.subr.bf16.mxu0 %v5897_v24 }
0x1eb5   : > { %4117 = vadd.xlane.f32.xlu0 %v4116_v28 }
0x1eb7   : > { %v6867_v13 = vld [vmem:[#allocation2 + $0x10] sm:$0xff]  ;;  %5529 = vmatpush3.bf16.msra.mxu0 %v5528_v6 }
0x1eb8   : > { %v4119_v14 = vsel %vm748_vm1, %v6867_v13, 0.0 }
0x1eb9   : > { %4120 = vadd.xlane.f32.xlu0 %v4119_v14 }
0x1f3e   : > { %v4115_v15 = vpop.xlane.xlu1 %4114 }
0x1f3f   : > { %v4122_v16 = vmul.f32 0.03125, %v4115_v15 }
0x1f41   : > { %v4125_v17 = vsub.f32 %v6858_v21, %v4122_v16 }
0x1f42   : > { %v4118_v10 = vpop.xlane.xlu0 %4117 }
0x1f43   : > { %v4123_v18 = vmul.f32 0.03125, %v4118_v10  ;;  %v4128_v19 = vmul.f32 %v4125_v17, %v4125_v17 }
0x1f45   : > { %v4126_v20 = vsub.f32 %v6863_v25, %v4123_v18  ;;  %v4131_v22 = vsel %vm748_vm1, %v4128_v19, 0.0 }
0x1f46   : > { %4132 = vadd.xlane.f32.xlu1 %v4131_v22  ;;  %v4121_v23 = vpop.xlane.xlu0 %4120 }
0x1f47   : > { %v4124_v26 = vmul.f32 0.03125, %v4121_v23  ;;  %v4129_v27 = vmul.f32 %v4126_v20, %v4126_v20 }
0x1f49   : > { %v4127_v29 = vsub.f32 %v6867_v13, %v4124_v26  ;;  %v4134_v31 = vsel %vm748_vm1, %v4129_v27, 0.0 }
0x1f4a   : > { %4135 = vadd.xlane.f32.xlu0 %v4134_v31 }
0x1f4b   : > { %v4130_v33 = vmul.f32 %v4127_v29, %v4127_v29 }
0x1f4d   : > { %v4137_v36 = vsel %vm748_vm1, %v4130_v33, 0.0 }
0x1f4e   : > { %4138 = vadd.xlane.f32.xlu1 %v4137_v36 }
0x1fd3   : > { %v4133_v39 = vpop.xlane.xlu1 %4132 }
0x1fd4   : > { %v4140_v54 = vmul.f32 0.03125, %v4133_v39 }
0x1fd6   : > { %v4143_v47 = vadd.f32 1e-05, %v4140_v54 }
0x1fd7   : > { %v4136_v40 = vpop.xlane.xlu0 %4135 }
0x1fd8   : > { %5806 = vrsqrt.f32 %v4143_v47  ;;  %v4141_v35 = vmul.f32 0.03125, %v4136_v40 }
0x1fda   : > { %v4144_v34 = vadd.f32 1e-05, %v4141_v35  ;;  %v4743_v35 = vld [vmem:[%s7038_s17 + $0x1] ss:$0 sm:$0xff] }
0x1fdb   : > { %v4139_v41 = vpop.xlane.xlu1 %4138 }
0x1fdc   : > { %5808 = vrsqrt.f32 %v4144_v34  ;;  %v4142_v57 = vmul.f32 0.03125, %v4139_v41 }
0x1fde   : > { %v4145_v51 = vadd.f32 1e-05, %v4142_v57 }
0x1fe0   : > { %5810 = vrsqrt.f32 %v4145_v51 }
0x1fe2   : > { %v5807_v42 = vpop.eup %5806 }
0x1fe3   : > { %v4149_v44 = vmul.f32 %v5807_v42, %v4125_v17 }
0x1fe5   : > { %v4158_v45 = vmul.f32 %v4720_v43, %v4149_v44 }
0x1fe6   : > { %v5809_v46 = vpop.eup %5808 }
0x1fe7   : > { %v4167_v48 = vadd.f32 %v4721_v1, %v4158_v45  ;;  %v4150_v52 = vmul.f32 %v5809_v46, %v4126_v20 }
0x1fe9   : > { %5370 = vmatmul.mubr.msk.f32.vlgmr.msra.gmra.mrb[86].mxu1 %vm748_vm1, %v4167_v48  ;;  %v4159_v53 = vmul.f32 %v4720_v43, %v4150_v52 }
0x1fea   : > { %v5811_v55 = vpop.eup %5810  ;;  %5372 = vmatprep.mubr.msk.f32.mxu1 %vm5898_vm3, %v5896_v11 }
0x1feb   : > { %v4168_v56 = vadd.f32 %v4721_v1, %v4159_v53  ;;  %v4151_v59 = vmul.f32 %v5811_v55, %v4127_v29 }
0x1fed   : > { %5373 = vmatmul.mubr.msk.f32.gmra.mrb[88].mxu1 %vm748_vm1, %v4168_v56  ;;  %v4160_v61 = vmul.f32 %v4720_v43, %v4151_v59 }
0x1fee   : > { %5375 = vmatprep.mubr.msk.f32.mxu1 %vm5898_vm3, %v5896_v11 }
0x1fef   : > { %v4169_v62 = vadd.f32 %v4721_v1, %v4160_v61 }
0x1ff1   : > { %5376 = vmatmul.mubr.msk.f32.gmra.mrb[90].mxu1 %vm748_vm1, %v4169_v62 }
0x1ff2   : > { %5411 = vmatprep.mubr.msk.f32.mxu1 %vm5898_vm3, %v5896_v11 }
0x20bc   : > { %v4258_v28 = vpop.f32.mrb[86].mxu1 }
0x20bd   : > { %v4259_v14 = vadd.f32 %v4727_v12, %v4258_v28  ;;  %v5371_v15 = vpop.f32.mrb[87].mxu1 }
0x20bf   : > { %v4731_v16 = vmul.f32 -1.702, %v4259_v14 }
0x20c0   : > { %v4263_v17 = vpop.f32.mrb[88].mxu1 }
0x20c1   : > { %v4278_v10 = vmul.f32 1.442695, %v4731_v16  ;;  %v4264_v18 = vadd.f32 %v4727_v12, %v4263_v17  ;;  %v5374_v19 = vpop.f32.mrb[89].mxu1 }
0x20c3   : > { %5812 = vpow2.f32 %v4278_v10  ;;  %v4732_v20 = vmul.f32 -1.702, %v4264_v18 }
0x20c4   : > { %v4268_v22 = vpop.f32.mrb[90].mxu1 }
0x20c5   : > { %v4280_v23 = vmul.f32 1.442695, %v4732_v20  ;;  %v4269_v26 = vadd.f32 %v4727_v12, %v4268_v22  ;;  %v5377_v27 = vpop.f32.mrb[91].mxu1 }
0x20c7   : > { %5814 = vpow2.f32 %v4280_v23  ;;  %v4733_v29 = vmul.f32 -1.702, %v4269_v26 }
0x20c9   : > { %v4282_v31 = vmul.f32 1.442695, %v4733_v29 }
0x20cb   : > { %5816 = vpow2.f32 %v4282_v31 }
0x20cd   : > { %v5813_v33 = vpop.eup %5812 }
0x20ce   : > { %v4284_v36 = vadd.f32 1.0, %v5813_v33 }
0x20d0   : > { %5818 = vrcp.f32 %v4284_v36 }
0x20d1   : > { %v5815_v32 = vpop.eup %5814 }
0x20d2   : > { %v4285_v49 = vadd.f32 1.0, %v5815_v32 }
0x20d4   : > { %5820 = vrcp.f32 %v4285_v49 }
0x20d5   : > { %v5817_v30 = vpop.eup %5816 }
0x20d6   : > { %v4286_v37 = vadd.f32 1.0, %v5817_v30 }
0x20d8   : > { %5822 = vrcp.f32 %v4286_v37 }
0x20da   : > { %v5819_v50 = vpop.eup %5818 }
0x20db   : > { %v4293_v38 = vmul.f32 %v5819_v50, %v4259_v14 }
0x20dd   : > { %5395 = vmatmul.mubr.msk.f32.vlgmr.msra.gmra.mrb[84].mxu0 %vm2517_vm8, %v4293_v38 }
0x20de   : > { %v5821_v39 = vpop.eup %5820  ;;  %5397 = vmatprep.mubr.msk.f32.mxu0 %vm5898_vm3, %v5896_v11 }
0x20df   : > { %v4294_v54 = vmul.f32 %v5821_v39, %v4264_v18 }
0x20e1   : > { %5398 = vmatmul.mubr.msk.f32.gmra.mrb[86].mxu0 %vm2517_vm8, %v4294_v54 }
0x20e2   : > { %v5823_v47 = vpop.eup %5822  ;;  %5400 = vmatprep.mubr.msk.f32.mxu0 %vm5898_vm3, %v5896_v11 }
0x20e3   : > { %v4295_v40 = vmul.f32 %v5823_v47, %v4269_v26 }
0x20e5   : > { %5401 = vmatmul.mubr.msk.f32.gmra.mrb[88].mxu0 %vm2517_vm8, %v4295_v40 }
0x21b0   : > { %v4388_v34 = vpop.f32.mrb[84].mxu0 }
0x21b1   : > { %v4389_v41 = vadd.f32 %v4743_v35, %v4388_v34  ;;  %v5396_v57 = vpop.f32.mrb[85].mxu0 }
0x21b3   : > { %v4402_v51 = vadd.f32 %v4389_v41, %v6858_v21 }
0x21b4   : > { %v4393_v42 = vpop.f32.mrb[86].mxu0 }
0x21b5   : > { %4405 = vst.msk [vmem:[#allocation2] sm:$0xff] %vm748_vm1, %v4402_v51  ;;  %v4394_v43 = vadd.f32 %v4743_v35, %v4393_v42  ;;  %v5399_v44 = vpop.f32.mrb[87].mxu0 }
0x21b7   : > { %v4403_v1 = vadd.f32 %v4394_v43, %v6863_v25  ;;  %v4426_v25 = vld [vmem:[%s7041_s20] sm:$0xff] }
0x21b8   : > { %v4398_v11 = vpop.f32.mrb[88].mxu0 }
0x21b9   : > { %4406 = vst.msk [vmem:[#allocation2 + $0x8] sm:$0xff] %vm748_vm1, %v4403_v1  ;;  %v4399_v45 = vadd.f32 %v4743_v35, %v4398_v11  ;;  %v5402_v46 = vpop.f32.mrb[89].mxu0 }
0x21bb   : > { %v4404_v48 = vadd.f32 %v4399_v45, %v6867_v13  ;;  %v4427_v13 = vld [vmem:[%s7041_s20 + $0x8] sm:$0xff] }
0x21bc   : > { %v5531_v62 = vpack.c.bf16 %v4427_v13, %v4426_v25 }
0x21bd   : > { %4407 = vst.msk [vmem:[#allocation2 + $0x10] sm:$0xff] %vm748_vm1, %v4404_v48 }
0x21be   : > { %5532 = vmatpush3.bf16.msra.mxu1 %v5531_v62 }
0x21bf   : > { %5533 = vmatprep.subr.bf16.mxu1 %v5897_v24  ;;  %v4409_v24 = vld [vmem:[%s7039_s18] sm:$0x1] }
0x21c2   : > { %5535 = vmatpush3.bf16.msra.mxu1 %v5534_v2 }
0x21c4   : > { %v4408_v52 = vld [vmem:[#allocation2 + $0x10] sm:$0x1] }
0x21c5   : > { %v4411_v53 = vsel %vm755_vm2, %v4408_v52, 0.0 }
0x21c6   : > { %4412 = vadd.xlane.f32.xlu0 %v4411_v53 }
0x2253   : > { %v4413_v21 = vpop.xlane.xlu0 %4412 }
0x2254   : > { %v4414_v55 = vmul.f32 0.03125, %v4413_v21 }
0x2256   : > { %v4415_v56 = vsub.f32 %v4408_v52, %v4414_v55 }
0x2258   : > { %v4416_v59 = vmul.f32 %v4415_v56, %v4415_v56 }
0x225a   : > { %v4417_v61 = vsel %vm755_vm2, %v4416_v59, 0.0 }
0x225b   : > { %4418 = vadd.xlane.f32.xlu1 %v4417_v61 }
0x22e8   : > { %v4419_v3 = vpop.xlane.xlu1 %4418 }
0x22e9   : > { %v4420_v5 = vmul.f32 0.03125, %v4419_v3 }
0x22eb   : > { %v4421_v7 = vadd.f32 1e-05, %v4420_v5 }
0x22ed   : > { %5824 = vrsqrt.f32 %v4421_v7 }
0x22f7   : > { %v5825_v8 = vpop.eup %5824 }
0x22f8   : > { %v4423_v4 = vmul.f32 %v5825_v8, %v4415_v56 }
0x22fa   : > { %v4424_v9 = vmul.f32 %v4423_v4, %v4409_v24 }
0x22fc   : > { %v4425_v60 = vadd.f32 %v4424_v9, %v4410_v58 }
0x22fe   : > { %5412 = vmatmul.mubr.msk.f32.vlgmr.msra.gmra.mrb[92].mxu1 %vm748_vm1, %v4425_v60 }
0x23d1   : > { %v4499_v6 = vpop.f32.mrb[92].mxu1 }
0x23d2   : > { %4504 = vst.msk [vmem:[%s649_s22] sm:$0x1] %vm4503_vm9, %v4499_v6  ;;  %v5413_v12 = vpop.f32.mrb[93].mxu1 }
0x23d3   : > { %5845 = shalt.err (!%p5842_p3)
}
0x23d4   : > { %s5846_s23 = scalar_lea.hbm %s6979_s30, 16  ;;  %s5850_s4 = scalar_lea.hbm %s7042_s21, 32 }
0x23d5   : > { %p5847_p4 = scmp.ne.s32.totalorder %s6979_s30, %s5846_s23  ;;  %p5851_p9 = scmp.lt.u32.totalorder %s6979_s30, %s7042_s21 }
0x23d6   : > { %p5852_p10 = scmp.lt.u32.totalorder %s5850_s4, %s5846_s23  ;;  %p5854_p12 = scmp.lt.u32.totalorder %s5846_s23, %s6979_s30 }
0x23d7   : > { %p5848_p7 = pnand %p5847_p4, %p6060_p5 }
0x23d8   : > { %p5853_p11 = por %p5852_p10, %p5851_p9 }
0x23d9   : > { %p5849_p8 = pneg %p5848_p7 }
0x23da   : > { %p5855_p13 = por %p5854_p12, %p5853_p11 }
0x23dc   : > { %p5856_p0 = pnand %p5855_p13, %p5849_p8 }
0x23de   : > { %5859 = shalt.err (!%p5856_p0)
}
0x23df   : > { %5540 = dma.vmem_to_hbm [thread:$0]  (%p6060_p5), %s6981_s2, 16, %s6979_s30, %s4506_s28  }
0x23e0 PF: > { %s7100_s29 = sld [smem:[#allocation8_spill]]  ;;  %s7101_s27 = sld [smem:[#allocation6_spill]] }
0x23e6   : > { %p5546_p1 = scmp.ge.s32.totalorder %s7100_s29, 2  ;;  %s4530_s22 = sand.u32 1, %s7101_s27  }
0x23e7   : > { %s4531_s3 = scalar_lea.sflag [#allocation4], %s4530_s22 }
0x23e8   : > { %p5543_p2 = pnand %p5546_p1, %p6064_p6 }
0x23ea   : > { %5877 = dma.done.wait (!%p5543_p2), %s4531_s3, 16  }
0x23eb   : > { %5879 = vsyncadd (!%p5543_p2), %s4531_s3, 4294967280  ;;  %s7103_s27 = sld [smem:[#allocation9_spill]]  ;;  %s7104_s23 = sld [smem:[#allocation7_spill]] }
0x23ec   : > { %s7105_s26 = sld [smem:[#allocation10_spill]]  ;;  %s7106_s2 = smov %s5886_s25 }
0x23f1   : > { %p31_p3 = scmp.ge.s32.totalorder %s7103_s27, 4   ;;  %s7107_s25 = smov %s7104_s23 }
0x23f3   :  { %33 = sbr.rel (!%p31_p3) target bundleno = 10 (0xa), region = 151 }
0x23fa   :  { %4535 = vsyncpa [#allocation4], 1 }
0x23fb   :  { %4537 = vsyncpa [#allocation4 + $0x1], 1 }

</bundles_post_ra>
